<compile_context>
chip_gen: v6e
topology: v6e:2x2x1
jax: 0.10.0
libtpu: 0.0.40
codegen_flags: <defaults>
</compile_context>

<pallas_src>
import functools

import jax
import jax.numpy as jnp
from jax.experimental import pallas as pl
from jax.experimental.pallas import tpu as pltpu


def _round_up(x, m):
    return ((x + m - 1) // m) * m


# ---------------------------------------------------------------------------
# Fused kernel (per image): 3x3 conv (9 shifted matmuls, MXU) -> bias + ReLU
# (VPU) -> masked global average pool -> MLP head -> optional L2 normalize.
# ---------------------------------------------------------------------------
def _moco_fused_kernel(x_ref, wt_ref, bconv_ref, w1_ref, b1_ref, w2_ref,
                       b2_ref, q_ref, *, H, W, normalize):
    Wp2 = W + 2
    Npad = x_ref.shape[1]          # (H+2) * (W+2) flattened padded pixels
    p0 = Wp2 + 1                   # first padded position whose 9 taps are in range
    M = Npad - 2 * p0              # window covering every valid interior pixel

    x = x_ref[0]                   # (Npad, Cin) bf16 -- whole padded image in VMEM

    # 3x3 'same' conv as 9 statically-shifted channel matmuls
    # (bf16 x bf16 -> f32 accumulation on the MXU).
    acc = jnp.zeros((M, wt_ref.shape[2]), jnp.float32)
    for di in range(3):
        for dj in range(3):
            off = (di - 1) * Wp2 + (dj - 1)
            tap = x[p0 + off:p0 + off + M, :]              # (M, Cin), static slice
            acc = acc + jnp.dot(tap, wt_ref[di * 3 + dj],
                                preferred_element_type=jnp.float32)
    conv = jnp.maximum(acc + bconv_ref[...], 0.0)          # bias + ReLU, f32

    # Global average pool over the H*W valid pixels: the M-row window only
    # contains interior rows, so we just mask out the two horizontal pad
    # columns before the reduction.
    col = (p0 + jax.lax.broadcasted_iota(jnp.int32, (M, 1), 0)) % Wp2
    valid = (col >= 1) & (col <= W)
    pooled = jnp.sum(jnp.where(valid, conv, 0.0), axis=0,
                     keepdims=True) * (1.0 / (H * W))       # (1, Chp) f32

    # MLP head: Linear -> ReLU -> Linear (fused; pooled never leaves VMEM).
    h = jnp.dot(pooled.astype(jnp.bfloat16), w1_ref[...],
                preferred_element_type=jnp.float32)
    h = jnp.maximum(h + b1_ref[...], 0.0)
    q = jnp.dot(h.astype(jnp.bfloat16), w2_ref[...],
                preferred_element_type=jnp.float32) + b2_ref[...]

    if normalize:
        # matches torch.nn.functional.normalize(q, dim=1): q / max(||q||, eps)
        sumsq = jnp.sum(q * q, axis=1, keepdims=True)
        q = q * jax.lax.rsqrt(jnp.maximum(sumsq, 1e-24))

    q_ref[0] = q.astype(q_ref.dtype)


def moco_forward(im_q_nchw, params, *, normalize=False):
    """MoCo.forward(im_q) -> q.   im_q: [B, Cin, H, W] float32 (NCHW)."""
    B, Cin, H, W = im_q_nchw.shape
    Npad = (H + 2) * (W + 2)
    Ch = params["wconv"].shape[1]
    D = params["w2"].shape[1]

    Chp = _round_up(Ch, 128)       # hidden channels, lane aligned
    Dp = _round_up(D, 128)         # output features, lane aligned

    # ---- layout glue (wrapper / XLA): NCHW -> NHWC, 'same' spatial pad for
    # the 3x3 conv, flatten spatial, cast the single streamed operand to bf16.
    # The contraction dim (Cin) is NOT padded -- full-extent blocks are legal.
    x_nhwc = jnp.transpose(im_q_nchw, (0, 2, 3, 1))
    x_pad = jnp.pad(x_nhwc, ((0, 0), (1, 1), (1, 1), (0, 0)))
    x_flat = x_pad.reshape(B, Npad, Cin).astype(jnp.bfloat16)

    # per-tap conv weight slices [(di*3+dj), Cin, Chp]; zero pad preserves numerics
    w_taps = jnp.pad(params["wconv"].reshape(9, Cin, Ch),
                     ((0, 0), (0, 0), (0, Chp - Ch))).astype(jnp.bfloat16)
    bconv = jnp.pad(params["bconv"], ((0, 0), (0, Chp - Ch))).astype(jnp.float32)
    w1 = jnp.pad(params["w1"], ((0, Chp - Ch), (0, Chp - Ch))).astype(jnp.bfloat16)
    b1 = jnp.pad(params["b1"], ((0, 0), (0, Chp - Ch))).astype(jnp.float32)
    w2 = jnp.pad(params["w2"], ((0, Chp - Ch), (0, Dp - D))).astype(jnp.bfloat16)
    b2 = jnp.pad(params["b2"], ((0, 0), (0, Dp - D))).astype(jnp.float32)

    # ---- one fused kernel, grid over images (all "parallel")
    q3 = pl.pallas_call(
        functools.partial(_moco_fused_kernel, H=H, W=W, normalize=normalize),
        out_shape=jax.ShapeDtypeStruct((B, 1, Dp), jnp.float32),
        grid=(B,),
        in_specs=[
            pl.BlockSpec((1, Npad, Cin), lambda b: (b, 0, 0)),   # streamed image
            pl.BlockSpec((9, Cin, Chp), lambda b: (0, 0, 0)),    # resident weights
            pl.BlockSpec((1, Chp), lambda b: (0, 0)),
            pl.BlockSpec((Chp, Chp), lambda b: (0, 0)),
            pl.BlockSpec((1, Chp), lambda b: (0, 0)),
            pl.BlockSpec((Chp, Dp), lambda b: (0, 0)),
            pl.BlockSpec((1, Dp), lambda b: (0, 0)),
        ],
        out_specs=pl.BlockSpec((1, 1, Dp), lambda b: (b, 0, 0)),
        compiler_params=pltpu.CompilerParams(
            dimension_semantics=("parallel",)),
    )(x_flat, w_taps, bconv, w1, b1, w2, b2)

    return q3.reshape(B, Dp)[:, :D]


def init_params(key, cin=4, dim_mlp=32, dim=128, kh=3, kw=3):
    """Deterministic synthetic parameter init (synthetic encoder, not a
    checkpoint load).  Conv weight stored pre-flattened in im2col/tap order:
    [(kh*kw)*cin, dim_mlp]."""
    ks = jax.random.split(key, 6)
    s = 0.1
    wconv = s * jax.random.normal(ks[0], (kh * kw * cin, dim_mlp), jnp.float32)
    bconv = s * jax.random.normal(ks[1], (1, dim_mlp), jnp.float32)
    w1 = s * jax.random.normal(ks[2], (dim_mlp, dim_mlp), jnp.float32)
    b1 = s * jax.random.normal(ks[3], (1, dim_mlp), jnp.float32)
    w2 = s * jax.random.normal(ks[4], (dim_mlp, dim), jnp.float32)
    b2 = s * jax.random.normal(ks[5], (1, dim), jnp.float32)
    return {"wconv": wconv, "bconv": bconv, "w1": w1, "b1": b1,
            "w2": w2, "b2": b2}


if __name__ == "__main__":
    key = jax.random.PRNGKey(0)
    k_in, k_par = jax.random.split(key)

    B, Cin, H, W = 2, 4, 16, 16          # small NCHW input, like an image batch
    dim_mlp, dim = 32, 128               # encoder hidden width / MoCo feature dim

    im_q = jax.random.normal(k_in, (B, Cin, H, W), jnp.float32)
    params = init_params(k_par, cin=Cin, dim_mlp=dim_mlp, dim=dim)

    q = moco_forward(im_q, params, normalize=False)   # module default: normalize=False
    q = jax.block_until_ready(q)

    assert q.shape == (B, dim) and q.dtype == jnp.float32
    print("KERNEL_OK")
</pallas_src>

<mosaic_0001>
module attributes {stable_mosaic.version = 11 : i64} {
  func.func @_moco_fused_kernel(%arg0: i32, %arg1: memref<1x324x4xbf16, #tpu.memory_space<vmem>>, %arg2: memref<9x4x128xbf16, #tpu.memory_space<vmem>>, %arg3: memref<1x128xf32, #tpu.memory_space<vmem>>, %arg4: memref<128x128xbf16, #tpu.memory_space<vmem>>, %arg5: memref<1x128xf32, #tpu.memory_space<vmem>>, %arg6: memref<128x128xbf16, #tpu.memory_space<vmem>>, %arg7: memref<1x128xf32, #tpu.memory_space<vmem>>, %arg8: memref<1x1x128xf32, #tpu.memory_space<vmem>>) attributes {dimension_semantics = [#tpu.dimension_semantics<parallel>], iteration_bounds = array<i64: 2>, scalar_prefetch = 0 : i64, scratch_operands = 0 : i64, tpu.core_type = #tpu.core_type<tc>, window_params = [{transform_indices = @transform_0, window_bounds = array<i64: 1, 324, 4>}, {pipeline_mode = #tpu.pipeline_mode<synchronous>, transform_indices = @transform_1, window_bounds = array<i64: 9, 4, 128>}, {pipeline_mode = #tpu.pipeline_mode<synchronous>, transform_indices = @transform_2, window_bounds = array<i64: 1, 128>}, {pipeline_mode = #tpu.pipeline_mode<synchronous>, transform_indices = @transform_3, window_bounds = array<i64: 128, 128>}, {pipeline_mode = #tpu.pipeline_mode<synchronous>, transform_indices = @transform_4, window_bounds = array<i64: 1, 128>}, {pipeline_mode = #tpu.pipeline_mode<synchronous>, transform_indices = @transform_5, window_bounds = array<i64: 128, 128>}, {pipeline_mode = #tpu.pipeline_mode<synchronous>, transform_indices = @transform_6, window_bounds = array<i64: 1, 128>}, {transform_indices = @transform_7, window_bounds = array<i64: 1, 1, 128>}]} {
    %c0 = arith.constant 0 : index
    %c0_0 = arith.constant 0 : index
    %c0_1 = arith.constant 0 : index
    %0 = vector.load %arg1[%c0, %c0_0, %c0_1] : memref<1x324x4xbf16, #tpu.memory_space<vmem>>, vector<1x324x4xbf16>
    %1 = vector.shape_cast %0 : vector<1x324x4xbf16> to vector<324x4xbf16>
    %cst = arith.constant 0.000000e+00 : f32
    %2 = vector.broadcast %cst : f32 to vector<286x128xf32>
    %3 = vector.extract_strided_slice %1 {offsets = [0, 0], sizes = [286, 4], strides = [1, 1]} : vector<324x4xbf16> to vector<286x4xbf16>
    %c0_2 = arith.constant 0 : index
    %c0_3 = arith.constant 0 : index
    %c0_4 = arith.constant 0 : index
    %4 = vector.load %arg2[%c0_2, %c0_3, %c0_4] : memref<9x4x128xbf16, #tpu.memory_space<vmem>>, vector<1x4x128xbf16>
    %5 = vector.shape_cast %4 : vector<1x4x128xbf16> to vector<4x128xbf16>
    %cst_5 = arith.constant dense<0.000000e+00> : vector<286x128xf32>
    %6 = tpu.matmul %3, %5, %cst_5 {dimension_numbers = #tpu.dot_dimension_numbers<[1], [0], [0], [1], [0, 0, 1, 1], [], []>} : vector<286x4xbf16>, vector<4x128xbf16>, vector<286x128xf32> -> vector<286x128xf32>
    %7 = arith.addf %2, %6 : vector<286x128xf32>
    %8 = vector.extract_strided_slice %1 {offsets = [1, 0], sizes = [286, 4], strides = [1, 1]} : vector<324x4xbf16> to vector<286x4xbf16>
    %c1 = arith.constant 1 : index
    %c0_6 = arith.constant 0 : index
    %c0_7 = arith.constant 0 : index
    %9 = vector.load %arg2[%c1, %c0_6, %c0_7] : memref<9x4x128xbf16, #tpu.memory_space<vmem>>, vector<1x4x128xbf16>
    %10 = vector.shape_cast %9 : vector<1x4x128xbf16> to vector<4x128xbf16>
    %cst_8 = arith.constant dense<0.000000e+00> : vector<286x128xf32>
    %11 = tpu.matmul %8, %10, %cst_8 {dimension_numbers = #tpu.dot_dimension_numbers<[1], [0], [0], [1], [0, 0, 1, 1], [], []>} : vector<286x4xbf16>, vector<4x128xbf16>, vector<286x128xf32> -> vector<286x128xf32>
    %12 = arith.addf %7, %11 : vector<286x128xf32>
    %13 = vector.extract_strided_slice %1 {offsets = [2, 0], sizes = [286, 4], strides = [1, 1]} : vector<324x4xbf16> to vector<286x4xbf16>
    %c2 = arith.constant 2 : index
    %c0_9 = arith.constant 0 : index
    %c0_10 = arith.constant 0 : index
    %14 = vector.load %arg2[%c2, %c0_9, %c0_10] : memref<9x4x128xbf16, #tpu.memory_space<vmem>>, vector<1x4x128xbf16>
    %15 = vector.shape_cast %14 : vector<1x4x128xbf16> to vector<4x128xbf16>
    %cst_11 = arith.constant dense<0.000000e+00> : vector<286x128xf32>
    %16 = tpu.matmul %13, %15, %cst_11 {dimension_numbers = #tpu.dot_dimension_numbers<[1], [0], [0], [1], [0, 0, 1, 1], [], []>} : vector<286x4xbf16>, vector<4x128xbf16>, vector<286x128xf32> -> vector<286x128xf32>
    %17 = arith.addf %12, %16 : vector<286x128xf32>
    %18 = vector.extract_strided_slice %1 {offsets = [18, 0], sizes = [286, 4], strides = [1, 1]} : vector<324x4xbf16> to vector<286x4xbf16>
    %c3 = arith.constant 3 : index
    %c0_12 = arith.constant 0 : index
    %c0_13 = arith.constant 0 : index
    %19 = vector.load %arg2[%c3, %c0_12, %c0_13] : memref<9x4x128xbf16, #tpu.memory_space<vmem>>, vector<1x4x128xbf16>
    %20 = vector.shape_cast %19 : vector<1x4x128xbf16> to vector<4x128xbf16>
    %cst_14 = arith.constant dense<0.000000e+00> : vector<286x128xf32>
    %21 = tpu.matmul %18, %20, %cst_14 {dimension_numbers = #tpu.dot_dimension_numbers<[1], [0], [0], [1], [0, 0, 1, 1], [], []>} : vector<286x4xbf16>, vector<4x128xbf16>, vector<286x128xf32> -> vector<286x128xf32>
    %22 = arith.addf %17, %21 : vector<286x128xf32>
    %23 = vector.extract_strided_slice %1 {offsets = [19, 0], sizes = [286, 4], strides = [1, 1]} : vector<324x4xbf16> to vector<286x4xbf16>
    %c4 = arith.constant 4 : index
    %c0_15 = arith.constant 0 : index
    %c0_16 = arith.constant 0 : index
    %24 = vector.load %arg2[%c4, %c0_15, %c0_16] : memref<9x4x128xbf16, #tpu.memory_space<vmem>>, vector<1x4x128xbf16>
    %25 = vector.shape_cast %24 : vector<1x4x128xbf16> to vector<4x128xbf16>
    %cst_17 = arith.constant dense<0.000000e+00> : vector<286x128xf32>
    %26 = tpu.matmul %23, %25, %cst_17 {dimension_numbers = #tpu.dot_dimension_numbers<[1], [0], [0], [1], [0, 0, 1, 1], [], []>} : vector<286x4xbf16>, vector<4x128xbf16>, vector<286x128xf32> -> vector<286x128xf32>
    %27 = arith.addf %22, %26 : vector<286x128xf32>
    %28 = vector.extract_strided_slice %1 {offsets = [20, 0], sizes = [286, 4], strides = [1, 1]} : vector<324x4xbf16> to vector<286x4xbf16>
    %c5 = arith.constant 5 : index
    %c0_18 = arith.constant 0 : index
    %c0_19 = arith.constant 0 : index
    %29 = vector.load %arg2[%c5, %c0_18, %c0_19] : memref<9x4x128xbf16, #tpu.memory_space<vmem>>, vector<1x4x128xbf16>
    %30 = vector.shape_cast %29 : vector<1x4x128xbf16> to vector<4x128xbf16>
    %cst_20 = arith.constant dense<0.000000e+00> : vector<286x128xf32>
    %31 = tpu.matmul %28, %30, %cst_20 {dimension_numbers = #tpu.dot_dimension_numbers<[1], [0], [0], [1], [0, 0, 1, 1], [], []>} : vector<286x4xbf16>, vector<4x128xbf16>, vector<286x128xf32> -> vector<286x128xf32>
    %32 = arith.addf %27, %31 : vector<286x128xf32>
    %33 = vector.extract_strided_slice %1 {offsets = [36, 0], sizes = [286, 4], strides = [1, 1]} : vector<324x4xbf16> to vector<286x4xbf16>
    %c6 = arith.constant 6 : index
    %c0_21 = arith.constant 0 : index
    %c0_22 = arith.constant 0 : index
    %34 = vector.load %arg2[%c6, %c0_21, %c0_22] : memref<9x4x128xbf16, #tpu.memory_space<vmem>>, vector<1x4x128xbf16>
    %35 = vector.shape_cast %34 : vector<1x4x128xbf16> to vector<4x128xbf16>
    %cst_23 = arith.constant dense<0.000000e+00> : vector<286x128xf32>
    %36 = tpu.matmul %33, %35, %cst_23 {dimension_numbers = #tpu.dot_dimension_numbers<[1], [0], [0], [1], [0, 0, 1, 1], [], []>} : vector<286x4xbf16>, vector<4x128xbf16>, vector<286x128xf32> -> vector<286x128xf32>
    %37 = arith.addf %32, %36 : vector<286x128xf32>
    %38 = vector.extract_strided_slice %1 {offsets = [37, 0], sizes = [286, 4], strides = [1, 1]} : vector<324x4xbf16> to vector<286x4xbf16>
    %c7 = arith.constant 7 : index
    %c0_24 = arith.constant 0 : index
    %c0_25 = arith.constant 0 : index
    %39 = vector.load %arg2[%c7, %c0_24, %c0_25] : memref<9x4x128xbf16, #tpu.memory_space<vmem>>, vector<1x4x128xbf16>
    %40 = vector.shape_cast %39 : vector<1x4x128xbf16> to vector<4x128xbf16>
    %cst_26 = arith.constant dense<0.000000e+00> : vector<286x128xf32>
    %41 = tpu.matmul %38, %40, %cst_26 {dimension_numbers = #tpu.dot_dimension_numbers<[1], [0], [0], [1], [0, 0, 1, 1], [], []>} : vector<286x4xbf16>, vector<4x128xbf16>, vector<286x128xf32> -> vector<286x128xf32>
    %42 = arith.addf %37, %41 : vector<286x128xf32>
    %43 = vector.extract_strided_slice %1 {offsets = [38, 0], sizes = [286, 4], strides = [1, 1]} : vector<324x4xbf16> to vector<286x4xbf16>
    %c8 = arith.constant 8 : index
    %c0_27 = arith.constant 0 : index
    %c0_28 = arith.constant 0 : index
    %44 = vector.load %arg2[%c8, %c0_27, %c0_28] : memref<9x4x128xbf16, #tpu.memory_space<vmem>>, vector<1x4x128xbf16>
    %45 = vector.shape_cast %44 : vector<1x4x128xbf16> to vector<4x128xbf16>
    %cst_29 = arith.constant dense<0.000000e+00> : vector<286x128xf32>
    %46 = tpu.matmul %43, %45, %cst_29 {dimension_numbers = #tpu.dot_dimension_numbers<[1], [0], [0], [1], [0, 0, 1, 1], [], []>} : vector<286x4xbf16>, vector<4x128xbf16>, vector<286x128xf32> -> vector<286x128xf32>
    %47 = arith.addf %42, %46 : vector<286x128xf32>
    %c0_30 = arith.constant 0 : index
    %c0_31 = arith.constant 0 : index
    %48 = vector.load %arg3[%c0_30, %c0_31] : memref<1x128xf32, #tpu.memory_space<vmem>>, vector<1x128xf32>
    %49 = vector.broadcast %48 : vector<1x128xf32> to vector<286x128xf32>
    %50 = arith.addf %47, %49 : vector<286x128xf32>
    %cst_32 = arith.constant 0.000000e+00 : f32
    %51 = vector.broadcast %cst_32 : f32 to vector<286x128xf32>
    %52 = arith.maximumf %50, %51 : vector<286x128xf32>
    %53 = tpu.iota {dimensions = array<i32: 0>} : vector<286x1xi32>
    %c19_i32 = arith.constant 19 : i32
    %54 = vector.broadcast %c19_i32 : i32 to vector<286x1xi32>
    %55 = arith.addi %54, %53 : vector<286x1xi32>
    %c18_i32 = arith.constant 18 : i32
    %c0_i32 = arith.constant 0 : i32
    %56 = arith.cmpi eq, %c18_i32, %c0_i32 : i32
    %c1_i32 = arith.constant 1 : i32
    %57 = arith.select %56, %c1_i32, %c18_i32 : i32
    %58 = vector.broadcast %57 : i32 to vector<286x1xi32>
    %59 = arith.remsi %55, %58 : vector<286x1xi32>
    %c0_i32_33 = arith.constant 0 : i32
    %60 = vector.broadcast %c0_i32_33 : i32 to vector<286x1xi32>
    %61 = arith.cmpi ne, %59, %60 : vector<286x1xi32>
    %c0_i32_34 = arith.constant 0 : i32
    %62 = vector.broadcast %c0_i32_34 : i32 to vector<286x1xi32>
    %63 = arith.cmpi slt, %59, %62 : vector<286x1xi32>
    %c0_i32_35 = arith.constant 0 : i32
    %64 = arith.cmpi slt, %57, %c0_i32_35 : i32
    %65 = vector.broadcast %64 : i1 to vector<286x1xi1>
    %66 = vector.broadcast %65 : vector<286x1xi1> to vector<286x1xi1>
    %67 = arith.xori %63, %66 : vector<286x1xi1>
    %68 = arith.andi %67, %61 : vector<286x1xi1>
    %69 = vector.broadcast %57 : i32 to vector<286x1xi32>
    %70 = arith.addi %59, %69 : vector<286x1xi32>
    %71 = arith.select %68, %70, %59 : vector<286x1xi1>, vector<286x1xi32>
    %c1_i32_36 = arith.constant 1 : i32
    %72 = vector.broadcast %c1_i32_36 : i32 to vector<286x1xi32>
    %73 = arith.cmpi sge, %71, %72 : vector<286x1xi32>
    %c16_i32 = arith.constant 16 : i32
    %74 = vector.broadcast %c16_i32 : i32 to vector<286x1xi32>
    %75 = arith.cmpi sle, %71, %74 : vector<286x1xi32>
    %76 = arith.andi %73, %75 : vector<286x1xi1>
    %cst_37 = arith.constant 0.000000e+00 : f32
    %77 = vector.shape_cast %76 : vector<286x1xi1> to vector<286x1xi1>
    %78 = vector.broadcast %77 : vector<286x1xi1> to vector<286x128xi1>
    %79 = vector.broadcast %cst_37 : f32 to vector<286x128xf32>
    %80 = arith.select %78, %52, %79 : vector<286x128xi1>, vector<286x128xf32>
    %cst_38 = arith.constant dense<0.000000e+00> : vector<128xf32>
    %81 = vector.multi_reduction <add>, %80, %cst_38 [0] : vector<286x128xf32> to vector<128xf32>
    %82 = vector.shape_cast %81 : vector<128xf32> to vector<1x128xf32>
    %cst_39 = arith.constant 3.906250e-03 : f32
    %83 = vector.broadcast %cst_39 : f32 to vector<1x128xf32>
    %84 = arith.mulf %82, %83 : vector<1x128xf32>
    %85 = arith.truncf %84 : vector<1x128xf32> to vector<1x128xbf16>
    %c0_40 = arith.constant 0 : index
    %c0_41 = arith.constant 0 : index
    %86 = vector.load %arg4[%c0_40, %c0_41] : memref<128x128xbf16, #tpu.memory_space<vmem>>, vector<128x128xbf16>
    %cst_42 = arith.constant dense<0.000000e+00> : vector<1x128xf32>
    %87 = tpu.matmul %85, %86, %cst_42 {dimension_numbers = #tpu.dot_dimension_numbers<[1], [0], [0], [1], [0, 0, 1, 1], [], []>} : vector<1x128xbf16>, vector<128x128xbf16>, vector<1x128xf32> -> vector<1x128xf32>
    %c0_43 = arith.constant 0 : index
    %c0_44 = arith.constant 0 : index
    %88 = vector.load %arg5[%c0_43, %c0_44] : memref<1x128xf32, #tpu.memory_space<vmem>>, vector<1x128xf32>
    %89 = arith.addf %87, %88 : vector<1x128xf32>
    %cst_45 = arith.constant 0.000000e+00 : f32
    %90 = vector.broadcast %cst_45 : f32 to vector<1x128xf32>
    %91 = arith.maximumf %89, %90 : vector<1x128xf32>
    %92 = arith.truncf %91 : vector<1x128xf32> to vector<1x128xbf16>
    %c0_46 = arith.constant 0 : index
    %c0_47 = arith.constant 0 : index
    %93 = vector.load %arg6[%c0_46, %c0_47] : memref<128x128xbf16, #tpu.memory_space<vmem>>, vector<128x128xbf16>
    %cst_48 = arith.constant dense<0.000000e+00> : vector<1x128xf32>
    %94 = tpu.matmul %92, %93, %cst_48 {dimension_numbers = #tpu.dot_dimension_numbers<[1], [0], [0], [1], [0, 0, 1, 1], [], []>} : vector<1x128xbf16>, vector<128x128xbf16>, vector<1x128xf32> -> vector<1x128xf32>
    %c0_49 = arith.constant 0 : index
    %c0_50 = arith.constant 0 : index
    %95 = vector.load %arg7[%c0_49, %c0_50] : memref<1x128xf32, #tpu.memory_space<vmem>>, vector<1x128xf32>
    %96 = arith.addf %94, %95 : vector<1x128xf32>
    %c0_51 = arith.constant 0 : index
    %c0_52 = arith.constant 0 : index
    %c0_53 = arith.constant 0 : index
    %97 = vector.load %arg8[%c0_51, %c0_52, %c0_53] : memref<1x1x128xf32, #tpu.memory_space<vmem>>, vector<1x1x128xf32>
    %98 = vector.shape_cast %97 : vector<1x1x128xf32> to vector<1x128xf32>
    %99 = vector.shape_cast %96 : vector<1x128xf32> to vector<1x1x128xf32>
    tpu.vector_store %arg8[%c0_51, %c0_52, %c0_53], %99 {strides = array<i32>} : memref<1x1x128xf32, #tpu.memory_space<vmem>>, vector<1x1x128xf32>,
    return
  }
  func.func @transform_0(%arg0: i32) -> (i32, i32, i32) {
    %c0_i32 = arith.constant 0 : i32
    %c0_i32_0 = arith.constant 0 : i32
    %c0_i32_1 = arith.constant 0 : i32
    return %arg0, %c0_i32, %c0_i32_0 : i32, i32, i32
  }
  func.func @transform_1(%arg0: i32) -> (i32, i32, i32) {
    %c0_i32 = arith.constant 0 : i32
    %c0_i32_0 = arith.constant 0 : i32
    %c0_i32_1 = arith.constant 0 : i32
    %c0_i32_2 = arith.constant 0 : i32
    return %c0_i32, %c0_i32_0, %c0_i32_1 : i32, i32, i32
  }
  func.func @transform_2(%arg0: i32) -> (i32, i32) {
    %c0_i32 = arith.constant 0 : i32
    %c0_i32_0 = arith.constant 0 : i32
    %c0_i32_1 = arith.constant 0 : i32
    return %c0_i32, %c0_i32_0 : i32, i32
  }
  func.func @transform_3(%arg0: i32) -> (i32, i32) {
    %c0_i32 = arith.constant 0 : i32
    %c0_i32_0 = arith.constant 0 : i32
    %c0_i32_1 = arith.constant 0 : i32
    return %c0_i32, %c0_i32_0 : i32, i32
  }
  func.func @transform_4(%arg0: i32) -> (i32, i32) {
    %c0_i32 = arith.constant 0 : i32
    %c0_i32_0 = arith.constant 0 : i32
    %c0_i32_1 = arith.constant 0 : i32
    return %c0_i32, %c0_i32_0 : i32, i32
  }
  func.func @transform_5(%arg0: i32) -> (i32, i32) {
    %c0_i32 = arith.constant 0 : i32
    %c0_i32_0 = arith.constant 0 : i32
    %c0_i32_1 = arith.constant 0 : i32
    return %c0_i32, %c0_i32_0 : i32, i32
  }
  func.func @transform_6(%arg0: i32) -> (i32, i32) {
    %c0_i32 = arith.constant 0 : i32
    %c0_i32_0 = arith.constant 0 : i32
    %c0_i32_1 = arith.constant 0 : i32
    return %c0_i32, %c0_i32_0 : i32, i32
  }
  func.func @transform_7(%arg0: i32) -> (i32, i32, i32) {
    %c0_i32 = arith.constant 0 : i32
    %c0_i32_0 = arith.constant 0 : i32
    %c0_i32_1 = arith.constant 0 : i32
    return %arg0, %c0_i32, %c0_i32_0 : i32, i32, i32
  }
}

</mosaic_0001>

<bundles_post_ra>
// kernel: tpu_custom_call.1
= control target key start
LH: loop header
LB: loop body
LE: loop exit
PB: predicated region body
PF: predicated region fallthrough
CT: control target
= control target key end

     0   :  { %12 = vsyncpa [#allocation3], 0  ;;  %s8551_s0 = inlined_call_operand.vmem [shape: bf16[2,324,4], index: 0, kind: input, shape index: {}]   ;;  %s8552_s1 = inlined_call_operand.vmem [shape: bf16[9,4,128], index: 1, kind: input, shape index: {}]   ;;  %s8553_s2 = inlined_call_operand.vmem [shape: f32[1,128], index: 2, kind: input, shape index: {}]   ;;  %s8554_s3 = inlined_call_operand.vmem [shape: bf16[128,128], index: 3, kind: input, shape index: {}]   ;;  %s8555_s4 = inlined_call_operand.vmem [shape: f32[1,128], index: 4, kind: input, shape index: {}]   ;;  %s8556_s5 = inlined_call_operand.vmem [shape: bf16[128,128], index: 5, kind: input, shape index: {}]   ;;  %s8557_s6 = inlined_call_operand.vmem [shape: f32[1,128], index: 6, kind: input, shape index: {}]   ;;  %s8558_s7 = inlined_call_operand.hbm [shape: f32[2,1,128], index: 7, kind: output, shape index: {}]  }
   0x1   :  { %14 = vsyncpa [#allocation3 + $0x1], 0  ;;  %s5459_s24 = smov 0   ;;  %s5461_s25 = smov 0  }
   0x2   :  { %s5463_s26 = smov 0   ;;  %s5465_s27 = smov 0  }
   0x3 LB: > { %s5480_s28 = sadd.s32 4294967295, %s5414_s27   ;;  %s4385_s29 = sadd.s32 4294967294, %s5414_s27   ;;  %s5414_s27 = sphi %s5465_s27, %s8882_s27   ;;  %s5410_s26 = sphi %s5463_s26, %s8881_s26   ;;  %s5406_s25 = sphi %s5461_s25, %s8880_s25   ;;  %s5402_s24 = sphi %s5459_s24, %s8879_s24  }
   0x4   : > { %s5484_s30 = sadd.s32 1, %s5414_s27   ;;  %s179_s8 = sadd.s32 1, %s5410_s26 }
   0x5   : > { %s176_s9 = ssub.s32 %s5414_s27, %s5484_s30  ;;  %p189_p0 = scmp.ne.s32.totalorder %s5410_s26, %s5406_s25 }
   0x6   : > { %p177_p1 = scmp.eq.s32.totalorder %s176_s9, 0  ;;  %p190_p2 = scmp.eq.s32.totalorder %s5480_s28, 1 }
   0x7   : > { %p195_p3 = scmp.ne.s32.totalorder %s5406_s25, %s5402_s24  ;;  %p196_p4 = scmp.eq.s32.totalorder %s4385_s29, 1 }
   0x8   : > { %s5495_s10 = scalar_select %p177_p1, %s5410_s26, %s179_s8  }
   0x9   : > { %p5497_p5 = por %p190_p2, %p189_p0  ;;  %p5501_p6 = por %p196_p4, %p195_p3 }
   0xa   : > { %p4388_p7 = scmp.ge.s32.totalorder %s5414_s27, 1  ;;  %p240_p8 = scmp.lt.s32.totalorder %s5414_s27, 3 }
   0xc   : > { %p241_p9 = pnand %p4388_p7, %p240_p8 }
   0xe   : > { %244 = sbr.rel (%p241_p9) target bundleno = 1024 (0x400), region = 48 }
  0x13   : > { %v4390_v0 = vld [vmem:[%s8552_s1 + $0x2] sm:$0x3]  ;;  %vm610_vm0 = vcmask 1041408   ;;  %p271_p10 = scmp.lt.s32.totalorder %s5480_s28, 1  ;;  %v4445_v2 = vld [vmem:[%s8552_s1 + $0x4] sm:$0x3] }
  0x14   : > { %5175 = vmatprep.subr.msk.bf16.mxu0 %vm610_vm0, %v4390_v0  ;;  %5176 = vmatprep.subr.msk.bf16.mxu1 %vm610_vm0, %v4390_v0  ;;  %v612_v1 = vsel %vm610_vm0, %v4390_v0, 0  ;;  %v318_v3 = vld [vmem:[%s8552_s1] sm:$0x3]  ;;  %vm411_vm1 = vsmask.f32 7424  ;;  %vm555_vm2 = vcmask 31744  }
  0x15   : > { %4792 = vmatpush3.bf16.msra.mxu0 %v612_v1  ;;  %5174 = vmatpush3.bf16.msra.mxu1 %v612_v1  ;;  %s272_s19 = scalar_select %p271_p10, %s5480_s28, 1  ;;  %v1100_v12 = vsel %vm610_vm0, %v4445_v2, 0  ;;  %v828_v16 = vsel %vm610_vm0, %v318_v3, 0  ;;  %v5587_v32 = vld [vmem:[%s8552_s1 + $0x8] sm:$0x3]  ;;  %vm1009_vm3 = vcmask 1046528  }
  0x16   : > { %5178 = vmatprep.subr.msk.bf16.mxu0 %vm610_vm0, %v4445_v2  ;;  %5177 = vmatprep.subr.msk.bf16.mxu1 %vm610_vm0, %v318_v3  ;;  %v4464_v43 = vld [vmem:[%s8552_s1 + $0x6] sm:$0x3]  ;;  %vm1551_vm4 = vsmask.f32 6400  ;;  %vm8595_vm5 = vcmask 1045504   ;;  %vm2807_vm7 = vcmask 1044480  }
  0x17   : > { %s5185_s20 = smul.u32 164, %s272_s19  ;;  %vm2449_vm6 = vsmask.f32 5376  ;;  %s269_s16 = sand.u32 1, %s5406_s25  }
  0x18   : > { %s4599_s19 = sshll.u32 %s5480_s28, 4  ;;  %s4318_s8 = scalar_lea.sflag [#allocation3], %s269_s16 }
  0x19   : > { %s5526_s23 = scalar_lea.vmem %s8551_s0, %s5185_s20  ;;  %s270_s20 = scalar_lea.vmem [#allocation2], %s269_s16 }
  0x1a   : > { %v5529_v4 = vld [vmem:[%s5526_s23] sm:$0xff]   ;;  %v5532_v5 = vld [vmem:[%s5526_s23 + $0x8] sm:$0xff]   ;;  %v5539_v10 = vld [vmem:[%s5526_s23 + $0x70] sm:$0xff]   ;;  %s4330_s21 = sshll.u32 %s270_s20, 4  ;;  %s8510_s29 = scalar_lea.hbm %s8558_s7, %s4599_s19  ;;  %s8512_s21 = int_to_ptr.vmem [resolvable:$true] %s4330_s21 }
  0x1b   : > { %v413_v6 = vshrl.u32 %v5529_v4, 16  ;;  %v415_v7 = vshll.u32 %v5529_v4, 16  ;;  %v420_v8 = vshll.u32 %v5532_v5, 16  ;;  %v424_v9 = vshrl.u32 %v5532_v5, 16  ;;  %v5542_v11 = vld [vmem:[%s5526_s23 + $0x78] sm:$0xff]   ;;  %v5548_v15 = vld [vmem:[%s5526_s23 + $0x10] sm:$0xff]  }
  0x1c   : > { %v5552_v17 = vshll.u32 %v5539_v10, 16  ;;  %v5555_v18 = vshrl.u32 %v5539_v10, 16  ;;  %v5558_v19 = vshll.u32 %v5542_v11, 16  ;;  %v5561_v20 = vshrl.u32 %v5542_v11, 16  ;;  %v5569_v24 = vld [vmem:[%s5526_s23 + $0x80] sm:$0xff]   ;;  %v5574_v27 = vld [vmem:[%s5526_s23 + $0x18] sm:$0xff]  }
  0x1d   : > { %v417_v13 = vrot.slane %v415_v7, 1  ;;  %v422_v14 = vrot.slane %v420_v8, 1  ;;  %v5566_v23 = vshll.u32 %v5548_v15, 16  ;;  %v5577_v28 = vshrl.u32 %v5548_v15, 16  ;;  %v5598_v36 = vld [vmem:[%s5526_s23 + $0x88] sm:$0xff]   ;;  %v5604_v38 = vld [vmem:[%s5526_s23 + $0x20] sm:$0xff]  }
  0x1e   : > { %8599 = vst [vmem:[#allocation5_spill] sm:$0xff] %v5558_v19  ;;  %v8559_v25 = vrot.slane %v5552_v17, 1  ;;  %v534_v26 = vrot.slane %v5558_v19, 1  ;;  %v5582_v31 = vshll.u32 %v5569_v24, 16  ;;  %v5595_v35 = vshll.u32 %v5574_v27, 16  ;;  %v5625_v48 = vld [vmem:[%s5526_s23 + $0x28] sm:$0xff]  }
  0x1f   : > { %v418_v21 = vor.u32 %v417_v13, %v413_v6  ;;  %v426_v22 = vor.u32 %v424_v9, %v422_v14  ;;  %v430_v30 = vrot.slane %v5566_v23, 1  ;;  %v5601_v37 = vshrl.u32 %v5569_v24, 16  ;;  %v5642_v57 = vld [vmem:[%s5526_s23 + $0x30] sm:$0xff]   ;;  %v5645_v58 = vld [vmem:[%s5526_s23 + $0x38] sm:$0xff]   ;;  %v5676_v13 = vld [vmem:[%s5526_s23 + $0x40] sm:$0xff]   ;;  %s5354_s9 = scalar_lea.vmem %s8512_s21, 16 }
  0x20   : > { %8600 = vst [vmem:[#allocation6_spill] sm:$0xff] %v5582_v31  ;;  %v530_v33 = vor.u32 %v5555_v18, %v8559_v25  ;;  %v538_v34 = vor.u32 %v5561_v20, %v534_v26  ;;  %v542_v40 = vrot.slane %v5582_v31, 1  ;;  %v5610_v42 = vshrl.u32 %v5574_v27, 16  ;;  %8604 = vst [vmem:[#allocation10_spill] sm:$0xff] %v5645_v58  ;;  %p5355_p11 = scmp.ne.s32.totalorder %s8512_s21, %s5354_s9  ;;  %s5418_s28 = smov [#allocation2]  }
  0x21   : > { %v423_v29 = vsel %vm411_vm1, %v418_v21, %v422_v14  ;;  %8601 = vst [vmem:[#allocation7_spill] sm:$0xff] %v5601_v37  ;;  %v431_v39 = vsel %vm411_vm1, %v426_v22, %v430_v30  ;;  %v434_v41 = vor.u32 %v5577_v28, %v430_v30  ;;  %v438_v45 = vrot.slane %v5595_v35, 1  ;;  %8605 = vst [vmem:[#allocation11_spill] sm:$0xff] %v5676_v13  ;;  %v5684_v22 = vld [vmem:[%s5526_s23 + $0x48] sm:$0xff]   ;;  %s5358_s13 = sshll.u32 %s5418_s28, 4  ;;  %s5359_s13 = int_to_ptr.vmem [resolvable:$false] %s5358_s13 }
  0x22   : > { %4793 = vmatprep.mubr.msk.bf16.mxu0 %vm555_vm2, %v423_v29  ;;  %v535_v44 = vsel %vm411_vm1, %v530_v33, %v534_v26  ;;  %v5619_v46 = vshll.u32 %v5598_v36, 16  ;;  %v5622_v47 = vshll.u32 %v5604_v38, 16  ;;  %v543_v49 = vsel %vm411_vm1, %v538_v34, %v542_v40  ;;  %8606 = vst [vmem:[#allocation12_spill] sm:$0xff] %v5684_v22  ;;  %p5356_p12 = pnand %p5355_p11, %p5497_p5  ;;  %s5360_s14 = scalar_lea.vmem %s5359_s13, 32 }
  0x23   : > { %4794 = vmatmul.mubr.msk.bf16.vlgmr.msra.gmra.mxu0 %vm555_vm2, %v431_v39  ;;  %4821 = vmatprep.mubr.msk.bf16.mxu1 %vm555_vm2, %v535_v44  ;;  %v546_v50 = vor.u32 %v5601_v37, %v542_v40  ;;  %v5631_v51 = vshrl.u32 %v5598_v36, 16  ;;  %v5634_v52 = vshrl.u32 %v5604_v38, 16  ;;  %v439_v53 = vsel %vm411_vm1, %v434_v41, %v438_v45  ;;  %v5706_v44 = vld [vmem:[%s5526_s23 + $0x50] sm:$0xff]   ;;  %p5361_p0 = scmp.lt.s32.totalorder %s8512_s21, %s5359_s13  ;;  %p5362_p1 = scmp.lt.s32.totalorder %s5360_s14, %s5354_s9 }
  0x24   : > { %8602 = vst [vmem:[#allocation8_spill] sm:$0xff] %v5619_v46  ;;  %4868 = vmatpush3.bf16.msra.mxu0 %v1100_v12  ;;  %4822 = vmatmul.mubr.msk.bf16.vlgmr.msra.gmra.mxu1 %vm555_vm2, %v543_v49  ;;  %v550_v54 = vrot.slane %v5619_v46, 1  ;;  %v442_v55 = vor.u32 %v5610_v42, %v438_v45  ;;  %v446_v56 = vrot.slane %v5622_v47, 1  ;;  %v5651_v59 = vshll.u32 %v5625_v48, 16  ;;  %8607 = vst [vmem:[#allocation13_spill] sm:$0xff] %v5706_v44  ;;  %p5357_p13 = pneg %p5356_p12 }
  0x25   : > { %8603 = vst [vmem:[#allocation9_spill] sm:$0xff] %v5631_v51  ;;  %5180 = vmatprep.subr.msk.bf16.mxu0 %vm610_vm0, %v5587_v32  ;;  %4797 = vmatprep.mubr.msk.bf16.mxu0 %vm555_vm2, %v439_v53  ;;  %v5660_v0 = vshrl.u32 %v5625_v48, 16  ;;  %v5663_v1 = vshll.u32 %v5642_v57, 16  ;;  %v5667_v3 = vshrl.u32 %v5642_v57, 16  ;;  %v5670_v6 = vshll.u32 %v5645_v58, 16  ;;  %v5720_v53 = vld [vmem:[%s5526_s23 + $0x58] sm:$0xff]   ;;  %p5363_p2 = por %p5362_p1, %p5361_p0 }
  0x26   : > { %4830 = vmatpush3.bf16.msra.mxu1 %v828_v16  ;;  %v551_v60 = vsel %vm411_vm1, %v546_v50, %v550_v54  ;;  %v450_v61 = vor.u32 %v5634_v52, %v446_v56  ;;  %v447_v62 = vsel %vm411_vm1, %v442_v55, %v446_v56  ;;  %v454_v63 = vrot.slane %v5651_v59, 1  ;;  %v5713_v49 = vld [vmem:[%s8552_s1 + $0xa] sm:$0x3] }
  0x27   : > { %5179 = vmatprep.subr.msk.bf16.mxu1 %vm610_vm0, %v4464_v43  ;;  %4825 = vmatprep.mubr.msk.bf16.mxu1 %vm555_vm2, %v551_v60  ;;  %v554_v2 = vor.u32 %v5631_v51, %v550_v54  ;;  %v462_v12 = vrot.slane %v5663_v1, 1  ;;  %v470_v21 = vrot.slane %v5670_v6, 1  ;;  %v5689_v26 = vshll.u32 %v5676_v13, 16  ;;  %p5364_p3 = pnand %p5363_p2, %p5357_p13 }
  0x28   : > { %v455_v7 = vsel %vm411_vm1, %v450_v61, %v454_v63  ;;  %v458_v14 = vor.u32 %v5660_v0, %v454_v63  ;;  %v5693_v30 = vshrl.u32 %v5645_v58, 16  ;;  %v5697_v34 = vshrl.u32 %v5676_v13, 16 }
  0x29   : > { %v466_v16 = vor.u32 %v5667_v3, %v462_v12  ;;  %v5700_v39 = vshll.u32 %v5684_v22, 16  ;;  %v1331_v40 = vsel %vm610_vm0, %v4464_v43, 0  ;;  %v478_v41 = vrot.slane %v5689_v26, 1 }
  0x2a   : > { %v463_v29 = vsel %vm411_vm1, %v458_v14, %v462_v12  ;;  %v474_v45 = vor.u32 %v5693_v30, %v470_v21  ;;  %v5725_v54 = vshll.u32 %v5706_v44, 16  ;;  %v5731_v55 = vrot.slane %v420_v8, 2 }
  0x2b   : > { %4798 = vmatmul.mubr.msk.bf16.gmra.mxu0 %vm555_vm2, %v447_v62  ;;  %v471_v33 = vsel %vm411_vm1, %v466_v16, %v470_v21  ;;  %v482_v43 = vor.u32 %v5697_v34, %v478_v41  ;;  %v486_v50 = vrot.slane %v5700_v39, 1  ;;  %v5735_v60 = vshrl.u32 %v5684_v22, 16  ;;  %v5760_v21 = vld [vmem:[%s5526_s23 + $0x68] sm:$0xff]  }
  0x2c   : > { %4801 = vmatprep.mubr.msk.bf16.mxu0 %vm555_vm2, %v455_v7  ;;  %4826 = vmatmul.mubr.msk.bf16.gmra.mxu1 %vm555_vm2, %v554_v2  ;;  %v479_v56 = vsel %vm411_vm1, %v474_v45, %v478_v41  ;;  %v5739_v62 = vshrl.u32 %v5706_v44, 16  ;;  %v5742_v63 = vshll.u32 %v5720_v53, 16  ;;  %v494_v2 = vrot.slane %v5725_v54, 1  ;;  %v5747_v7 = vld [vmem:[%s5526_s23 + $0x60] sm:$0xff]   ;;  %8608 = vst [vmem:[#allocation14_spill] sm:$0xff] %v5760_v21 }
  0x2d   : > { %4831 = vmatprep.mubr.msk.bf16.mxu1 %vm555_vm2, %v5529_v4  ;;  %v487_v61 = vsel %vm411_vm1, %v482_v43, %v486_v50  ;;  %v5751_v8 = vrot.slane %v424_v9, 1  ;;  %v490_v12 = vor.u32 %v5735_v60, %v486_v50  ;;  %v1564_v9 = vrot.slane %v5622_v47, 2 }
  0x2e   : > { %v498_v14 = vor.u32 %v5739_v62, %v494_v2  ;;  %v502_v16 = vrot.slane %v5742_v63, 1  ;;  %v5773_v45 = vshrl.u32 %v5720_v53, 16  ;;  %v1011_v25 = vrot.slane %v5532_v5, 1 }
  0x2f   : > { %v495_v41 = vsel %vm411_vm1, %v490_v12, %v494_v2  ;;  %v1027_v46 = vrot.slane %v5684_v22, 1 }
  0x30   : > { %v503_v50 = vsel %vm411_vm1, %v498_v14, %v502_v16  ;;  %v506_v2 = vor.u32 %v5773_v45, %v502_v16 }
  0x33   : > { %4802 = vmatmul.mubr.msk.bf16.gmra.mxu0 %vm555_vm2, %v463_v29 }
  0x34   : > { %4805 = vmatprep.mubr.msk.bf16.mxu0 %vm555_vm2, %v471_v33  ;;  %4832 = vmatmul.mubr.msk.bf16.vlgmr.msra.gmra.mxu1 %vm555_vm2, %v5532_v5  ;;  %v1563_v33 = vrot.slane %v5634_v52, 1 }
  0x35   : > { %4835 = vmatprep.mubr.msk.bf16.mxu1 %vm555_vm2, %v5548_v15  ;;  %4906 = vmatpush3.bf16.msra.mxu1 %v1331_v40  ;;  %v5769_v40 = vshll.u32 %v5747_v7, 16 }
  0x36   : > { %5181 = vmatprep.subr.msk.bf16.mxu1 %vm610_vm0, %v5713_v49  ;;  %v5775_v43 = vor.u32 %v1564_v9, %v1563_v33  ;;  %v5796_v9 = vshrl.u32 %v5760_v21, 16 }
  0x37   : > { %v510_v29 = vrot.slane %v5769_v40, 1 }
  0x39   : > { %v511_v33 = vsel %vm411_vm1, %v506_v2, %v510_v29 }
  0x3b   : > { %4806 = vmatmul.mubr.msk.bf16.gmra.mxu0 %vm555_vm2, %v479_v56  ;;  %v5779_v56 = vshrl.u32 %v5747_v7, 16 }
  0x3c   : > { %4809 = vmatprep.mubr.msk.bf16.mxu0 %vm555_vm2, %v487_v61  ;;  %4836 = vmatmul.mubr.msk.bf16.gmra.mxu1 %vm555_vm2, %v5574_v27  ;;  %v5782_v61 = vshll.u32 %v5760_v21, 16 }
  0x3d   : > { %4839 = vmatprep.mubr.msk.bf16.mxu1 %vm555_vm2, %v5604_v38  ;;  %v514_v12 = vor.u32 %v5779_v56, %v510_v29  ;;  %v8609_v29 = vrot.slane %v5552_v17, 1 }
  0x3e   : > { %v518_v14 = vrot.slane %v5782_v61, 1 }
  0x40   : > { %v522_v16 = vor.u32 %v5796_v9, %v518_v14 }
  0x42   : > { %v527_v2 = vsel %vm411_vm1, %v522_v16, %v8609_v29  ;;  %v1017_v29 = vrot.slane %v5604_v38, 1 }
  0x43   : > { %4810 = vmatmul.mubr.msk.bf16.gmra.mxu0 %vm555_vm2, %v495_v41  ;;  %v519_v41 = vsel %vm411_vm1, %v514_v12, %v518_v14  ;;  %v1013_v14 = vrot.slane %v5548_v15, 1 }
  0x44   : > { %4813 = vmatprep.mubr.msk.bf16.mxu0 %vm555_vm2, %v503_v50  ;;  %4840 = vmatmul.mubr.msk.bf16.gmra.mxu1 %vm555_vm2, %v5625_v48  ;;  %v1010_v50 = vrot.slane %v5529_v4, 1  ;;  %v1015_v4 = vrot.slane %v5574_v27, 1 }
  0x45   : > { %4843 = vmatprep.mubr.msk.bf16.mxu1 %vm555_vm2, %v5642_v57 }
  0x46   : > { %v1012_v12 = vsel %vm1009_vm3, %v1010_v50, %v1011_v25  ;;  %v1016_v16 = vsel %vm1009_vm3, %v1013_v14, %v1015_v4  ;;  %v5827_v50 = vld [vmem:[%s8552_s1 + $0xc] sm:$0x3] }
  0x4b   : > { %4814 = vmatmul.mubr.msk.bf16.gmra.mxu0 %vm555_vm2, %v511_v33  ;;  %v1014_v33 = vsel %vm1009_vm3, %v1011_v25, %v1013_v14  ;;  %v1019_v25 = vrot.slane %v5625_v48, 1  ;;  %v1023_v14 = vrot.slane %v5645_v58, 1 }
  0x4c   : > { %4817 = vmatprep.mubr.msk.bf16.mxu0 %vm555_vm2, %v519_v41  ;;  %4844 = vmatmul.mubr.msk.bf16.gmra.mxu1 %vm555_vm2, %v5645_v58  ;;  %v1688_v41 = vsel %vm610_vm0, %v5587_v32, 0  ;;  %v1018_v32 = vsel %vm1009_vm3, %v1015_v4, %v1017_v29 }
  0x4d   : > { %4847 = vmatprep.mubr.msk.bf16.mxu1 %vm555_vm2, %v5676_v13 }
  0x53   : > { %4818 = vmatmul.mubr.msk.bf16.gmra.mxu0 %vm555_vm2, %v527_v2  ;;  %v1020_v2 = vsel %vm1009_vm3, %v1017_v29, %v1019_v25  ;;  %v1025_v29 = vrot.slane %v5676_v13, 1  ;;  %v1031_v13 = vrot.slane %v5720_v53, 1 }
  0x54   : > { %4869 = vmatprep.mubr.msk.bf16.mxu0 %vm555_vm2, %v1012_v12  ;;  %4848 = vmatmul.mubr.msk.bf16.gmra.mxu1 %vm555_vm2, %v5684_v22  ;;  %v1021_v12 = vrot.slane %v5642_v57, 1 }
  0x55   : > { %4851 = vmatprep.mubr.msk.bf16.mxu1 %vm555_vm2, %v5706_v44  ;;  %v1026_v51 = vsel %vm1009_vm3, %v1023_v14, %v1025_v29 }
  0x56   : > { %v1024_v4 = vsel %vm1009_vm3, %v1021_v12, %v1023_v14  ;;  %v1998_v14 = vsel %vm610_vm0, %v5713_v49, 0 }
  0x5b   : > { %4870 = vmatmul.mubr.msk.bf16.vlgmr.msra.gmra.mxu0 %vm555_vm2, %v1014_v33 }
  0x5c   : > { %4944 = vmatpush3.bf16.msra.mxu0 %v1688_v41  ;;  %4873 = vmatprep.mubr.msk.bf16.mxu0 %vm555_vm2, %v1016_v16  ;;  %v1022_v41 = vsel %vm1009_vm3, %v1019_v25, %v1021_v12  ;;  %v1028_v25 = vsel %vm1009_vm3, %v1025_v29, %v1027_v46  ;;  %v1029_v12 = vrot.slane %v5706_v44, 1  ;;  %v1033_v29 = vrot.slane %v5747_v7, 1  ;;  %v5878_v44 = vld [vmem:[%s8552_s1 + $0xe] sm:$0x3] }
  0x5d   : > { %4852 = vmatmul.mubr.msk.bf16.gmra.mxu1 %vm555_vm2, %v5720_v53  ;;  %5182 = vmatprep.subr.msk.bf16.mxu0 %vm610_vm0, %v5827_v50 }
  0x5e   : > { %4855 = vmatprep.mubr.msk.bf16.mxu1 %vm555_vm2, %v5747_v7  ;;  %v1030_v22 = vsel %vm1009_vm3, %v1027_v46, %v1029_v12  ;;  %v1032_v58 = vsel %vm1009_vm3, %v1029_v12, %v1031_v13  ;;  %v1035_v46 = vrot.slane %v5760_v21, 1  ;;  %v1034_v49 = vsel %vm1009_vm3, %v1031_v13, %v1033_v29 }
  0x5f   : > { %v1037_v12 = vrot.slane %v5539_v10, 1 }
  0x61   : > { %v1038_v13 = vsel %vm1009_vm3, %v1035_v46, %v1037_v12 }
  0x63   : > { %4874 = vmatmul.mubr.msk.bf16.gmra.mxu0 %vm555_vm2, %v1018_v32 }
  0x64   : > { %4877 = vmatprep.mubr.msk.bf16.mxu0 %vm555_vm2, %v1020_v2 }
  0x65   : > { %4856 = vmatmul.mubr.msk.bf16.gmra.mxu1 %vm555_vm2, %v5760_v21 }
  0x66   : > { %4859 = vmatprep.mubr.msk.bf16.mxu1 %vm555_vm2, %v5539_v10 }
  0x6b   : > { %4878 = vmatmul.mubr.msk.bf16.gmra.mxu0 %vm555_vm2, %v1022_v41 }
  0x6c   : > { %4881 = vmatprep.mubr.msk.bf16.mxu0 %vm555_vm2, %v1024_v4 }
  0x6d   : > { %4860 = vmatmul.mubr.msk.bf16.gmra.mxu1 %vm555_vm2, %v5542_v11 }
  0x6e   : > { %4863 = vmatprep.mubr.msk.bf16.mxu1 %vm555_vm2, %v5569_v24 }
  0x73   : > { %4882 = vmatmul.mubr.msk.bf16.gmra.mxu0 %vm555_vm2, %v1026_v51 }
  0x74   : > { %4885 = vmatprep.mubr.msk.bf16.mxu0 %vm555_vm2, %v1028_v25 }
  0x75   : > { %4864 = vmatmul.mubr.msk.bf16.gmra.mxu1 %vm555_vm2, %v5598_v36 }
  0x76   : > { %4907 = vmatprep.mubr.msk.bf16.mxu1 %vm555_vm2, %v1014_v33  ;;  %v1036_v33 = vsel %vm1009_vm3, %v1033_v29, %v1035_v46  ;;  %v1555_v46 = vrot.slane %v5577_v28, 1 }
  0x7b   : > { %4886 = vmatmul.mubr.msk.bf16.gmra.mxu0 %vm555_vm2, %v1030_v22 }
  0x7c   : > { %4889 = vmatprep.mubr.msk.bf16.mxu0 %vm555_vm2, %v1032_v58 }
  0x7d   : > { %4908 = vmatmul.mubr.msk.bf16.vlgmr.msra.gmra.mxu1 %vm555_vm2, %v1016_v16  ;;  %v1039_v16 = vrot.slane %v5542_v11, 1 }
  0x7e   : > { %4911 = vmatprep.mubr.msk.bf16.mxu1 %vm555_vm2, %v1018_v32  ;;  %4982 = vmatpush3.bf16.msra.mxu1 %v1998_v14  ;;  %v2458_v32 = vrot.slane %v5622_v47, 3  ;;  %v2457_v14 = vrot.slane %v5634_v52, 2  ;;  %v1043_v47 = vrot.slane %v5598_v36, 1 }
  0x7f   : > { %5183 = vmatprep.subr.msk.bf16.mxu1 %vm610_vm0, %v5878_v44  ;;  %v1040_v29 = vsel %vm1009_vm3, %v1037_v12, %v1039_v16  ;;  %v1556_v12 = vrot.slane %v5566_v23, 2 }
  0x80   : > { %v5897_v21 = vor.u32 %v2458_v32, %v2457_v14 }
  0x81   : > { %v1557_v32 = vor.u32 %v1556_v12, %v1555_v46  ;;  %v1568_v46 = vrot.slane %v5651_v59, 2  ;;  %v1571_v12 = vrot.slane %v5667_v3, 1 }
  0x83   : > { %4890 = vmatmul.mubr.msk.bf16.gmra.mxu0 %vm555_vm2, %v1034_v49 }
  0x84   : > { %4893 = vmatprep.mubr.msk.bf16.mxu0 %vm555_vm2, %v1036_v33 }
  0x85   : > { %4912 = vmatmul.mubr.msk.bf16.gmra.mxu1 %vm555_vm2, %v1020_v2  ;;  %v1041_v2 = vrot.slane %v5569_v24, 1 }
  0x86   : > { %4915 = vmatprep.mubr.msk.bf16.mxu1 %vm555_vm2, %v1022_v41 }
  0x87   : > { %v1042_v52 = vsel %vm1009_vm3, %v1039_v16, %v1041_v2  ;;  %v1044_v41 = vsel %vm1009_vm3, %v1041_v2, %v1043_v47  ;;  %v8610_v16 = vor.u32 %v5731_v55, %v5751_v8  ;;  %v2232_v55 = vsel %vm610_vm0, %v5827_v50, 0 }
  0x89   : > { %v1558_v14 = vsel %vm1551_vm4, %v8610_v16, %v1557_v32  ;;  %v1576_v16 = vrot.slane %v5670_v6, 2 }
  0x8b   : > { %4894 = vmatmul.mubr.msk.bf16.gmra.mxu0 %vm555_vm2, %v1038_v13 }
  0x8c   : > { %4897 = vmatprep.mubr.msk.bf16.mxu0 %vm555_vm2, %v1040_v29 }
  0x8d   : > { %4916 = vmatmul.mubr.msk.bf16.gmra.mxu1 %vm555_vm2, %v1024_v4  ;;  %v1560_v4 = vrot.slane %v5595_v35, 2 }
  0x8e   : > { %4919 = vmatprep.mubr.msk.bf16.mxu1 %vm555_vm2, %v1026_v51  ;;  %v1559_v51 = vrot.slane %v5610_v42, 1 }
  0x90   : > { %v1561_v2 = vor.u32 %v1560_v4, %v1559_v51  ;;  %v1572_v51 = vrot.slane %v5663_v1, 2  ;;  %v1575_v4 = vrot.slane %v5693_v30, 1 }
  0x92   : > { %v1566_v8 = vsel %vm1551_vm4, %v1561_v2, %v5775_v43  ;;  %v1573_v50 = vor.u32 %v1572_v51, %v1571_v12  ;;  %v1587_v51 = vrot.slane %v5739_v62, 1 }
  0x93   : > { %4898 = vmatmul.mubr.msk.bf16.gmra.mxu0 %vm555_vm2, %v1042_v52 }
  0x94   : > { %4901 = vmatprep.mubr.msk.bf16.mxu0 %vm555_vm2, %v1044_v41 }
  0x95   : > { %4920 = vmatmul.mubr.msk.bf16.gmra.mxu1 %vm555_vm2, %v1028_v25  ;;  %v1567_v25 = vrot.slane %v5660_v0, 1 }
  0x96   : > { %4923 = vmatprep.mubr.msk.bf16.mxu1 %vm555_vm2, %v1030_v22  ;;  %v1562_v22 = vsel %vm1551_vm4, %v1557_v32, %v1561_v2  ;;  %v1579_v2 = vrot.slane %v5697_v34, 1 }
  0x9b   : > { %4902 = vmatmul.mubr.msk.bf16.gmra.mxu0 %vm555_vm2, %v1043_v47 }
  0x9c   : > { %4945 = vmatprep.mubr.msk.bf16.mxu0 %vm555_vm2, %v1558_v14 }
  0x9d   : > { %4924 = vmatmul.mubr.msk.bf16.gmra.mxu1 %vm555_vm2, %v1032_v58  ;;  %v5935_v58 = vld [vmem:[%s8552_s1 + $0x10] sm:$0x3] }
  0x9e   : > { %4927 = vmatprep.mubr.msk.bf16.mxu1 %vm555_vm2, %v1034_v49  ;;  %v1569_v49 = vor.u32 %v1568_v46, %v1567_v25 }
  0xa0   : > { %v1570_v32 = vsel %vm1551_vm4, %v5775_v43, %v1569_v49  ;;  %v1574_v14 = vsel %vm1551_vm4, %v1569_v49, %v1573_v50  ;;  %v1588_v49 = vrot.slane %v5725_v54, 2 }
  0xa3   : > { %4946 = vmatmul.mubr.msk.bf16.vlgmr.msra.gmra.mxu0 %vm555_vm2, %v1562_v22  ;;  %v1580_v22 = vrot.slane %v5689_v26, 2 }
  0xa4   : > { %5020 = vmatpush3.bf16.msra.mxu0 %v2232_v55  ;;  %4949 = vmatprep.mubr.msk.bf16.mxu0 %vm555_vm2, %v1566_v8  ;;  %v1583_v55 = vrot.slane %v5735_v60, 1  ;;  %v1584_v8 = vrot.slane %v5700_v39, 2 }
  0xa5   : > { %4928 = vmatmul.mubr.msk.bf16.gmra.mxu1 %vm555_vm2, %v1036_v33  ;;  %5184 = vmatprep.subr.msk.bf16.mxu0 %vm610_vm0, %v5935_v58  ;;  %v5952_v33 = vld [vmem:[%s5526_s23 + $0x90] sm:$0xff]   ;;  %v1581_v43 = vor.u32 %v1580_v22, %v1579_v2  ;;  %v1592_v2 = vrot.slane %v5742_v63, 2  ;;  %v1595_v22 = vrot.slane %v5779_v56, 1 }
  0xa6   : > { %4931 = vmatprep.mubr.msk.bf16.mxu1 %vm555_vm2, %v1038_v13  ;;  %8611 = vst [vmem:[#allocation15_spill] sm:$0xff] %v5952_v33  ;;  %v1577_v13 = vor.u32 %v1576_v16, %v1575_v4  ;;  %v1322_v25 = vrot.slane %v5952_v33, 1  ;;  %v1907_v4 = vrot.slane %v5548_v15, 2 }
  0xa8   : > { %v1578_v46 = vsel %vm1551_vm4, %v1573_v50, %v1577_v13  ;;  %v1582_v12 = vsel %vm1551_vm4, %v1577_v13, %v1581_v43  ;;  %v1589_v50 = vor.u32 %v1588_v49, %v1587_v51  ;;  %v1603_v49 = vrot.slane %v5555_v18, 1 }
  0xab   : > { %4950 = vmatmul.mubr.msk.bf16.gmra.mxu0 %vm555_vm2, %v1570_v32  ;;  %v1906_v32 = vrot.slane %v5532_v5, 2 }
  0xac   : > { %4953 = vmatprep.mubr.msk.bf16.mxu0 %vm555_vm2, %v1574_v14  ;;  %v1591_v14 = vrot.slane %v5773_v45, 1 }
  0xad   : > { %4932 = vmatmul.mubr.msk.bf16.gmra.mxu1 %vm555_vm2, %v1040_v29  ;;  %v1323_v29 = vsel %vm1009_vm3, %v1043_v47, %v1322_v25  ;;  %v1908_v13 = vsel %vm8595_vm5, %v1906_v32, %v1907_v4  ;;  %v1913_v32 = vrot.slane %v5625_v48, 2 }
  0xae   : > { %4935 = vmatprep.mubr.msk.bf16.mxu1 %vm555_vm2, %v1042_v52  ;;  %v1585_v52 = vor.u32 %v1584_v8, %v1583_v55  ;;  %v1593_v5 = vor.u32 %v1592_v2, %v1591_v14  ;;  %v1599_v8 = vrot.slane %v5796_v9, 1  ;;  %v1607_v14 = vrot.slane %v5561_v20, 1 }
  0xb0   : > { %v1586_v16 = vsel %vm1551_vm4, %v1581_v43, %v1585_v52  ;;  %v1590_v47 = vsel %vm1551_vm4, %v1585_v52, %v1589_v50  ;;  %v1909_v43 = vrot.slane %v5574_v27, 2  ;;  %v1594_v55 = vsel %vm1551_vm4, %v1589_v50, %v1593_v5 }
  0xb3   : > { %4954 = vmatmul.mubr.msk.bf16.gmra.mxu0 %vm555_vm2, %v1578_v46  ;;  %v1911_v46 = vrot.slane %v5604_v38, 2  ;;  %v2590_v38 = vsel %vm610_vm0, %v5878_v44, 0  ;;  %v1608_v44 = vrot.slane %v5558_v19, 2 }
  0xb4   : > { %4957 = vmatprep.mubr.msk.bf16.mxu0 %vm555_vm2, %v1582_v12  ;;  %v1600_v12 = vrot.slane %v5782_v61, 2 }
  0xb5   : > { %4936 = vmatmul.mubr.msk.bf16.gmra.mxu1 %vm555_vm2, %v1044_v41  ;;  %v1596_v41 = vrot.slane %v5769_v40, 2  ;;  %v5995_v27 = vsel %vm8595_vm5, %v1909_v43, %v1911_v46 }
  0xb6   : > { %4939 = vmatprep.mubr.msk.bf16.mxu1 %vm555_vm2, %v1323_v29  ;;  %v1604_v29 = vrot.slane %v5552_v17, 2  ;;  %v1601_v52 = vor.u32 %v1600_v12, %v1599_v8 }
  0xb7   : > { %v1597_v15 = vor.u32 %v1596_v41, %v1595_v22  ;;  %v1612_v22 = vrot.slane %v5582_v31, 2  ;;  %v6013_v41 = vsel %vm8595_vm5, %v1911_v46, %v1913_v32 }
  0xb8   : > { %v1605_v50 = vor.u32 %v1604_v29, %v1603_v49  ;;  %v8615_v29 = vld [vmem:[#allocation8_spill] sm:$0xff] }
  0xb9   : > { %v1598_v51 = vsel %vm1551_vm4, %v1593_v5, %v1597_v15  ;;  %v8570_v5 = vshrl.u32 %v5952_v33, 16 }
  0xba   : > { %v1606_v2 = vsel %vm1551_vm4, %v1601_v52, %v1605_v50 }
  0xbb   : > { %4958 = vmatmul.mubr.msk.bf16.gmra.mxu0 %vm555_vm2, %v1586_v16  ;;  %v1602_v16 = vsel %vm1551_vm4, %v1597_v15, %v1601_v52  ;;  %v8569_v15 = vshll.u32 %v5952_v33, 16 }
  0xbc   : > { %4961 = vmatprep.mubr.msk.bf16.mxu0 %vm555_vm2, %v1590_v47  ;;  %v1611_v47 = vrot.slane %v5601_v37, 1 }
  0xbd   : > { %4940 = vmatmul.mubr.msk.bf16.gmra.mxu1 %vm555_vm2, %v1322_v25  ;;  %v5991_v25 = vsel %vm8595_vm5, %v1907_v4, %v1909_v43  ;;  %v1915_v4 = vrot.slane %v5642_v57, 2  ;;  %v1609_v57 = vor.u32 %v1608_v44, %v1607_v14  ;;  %v8612_v43 = vld [vmem:[#allocation10_spill] sm:$0xff]  ;;  %v6037_v14 = vld [vmem:[%s5526_s23 + $0x98] sm:$0xf] }
  0xbe   : > { %4983 = vmatprep.mubr.msk.bf16.mxu1 %vm555_vm2, %v1908_v13  ;;  %v1613_v13 = vor.u32 %v1612_v22, %v1611_v47  ;;  %v1917_v46 = vrot.slane %v8612_v43, 2  ;;  %v6049_v47 = vcombine.low %v6037_v14, %v6037_v14  ;;  %v8617_v43 = vld [vmem:[#allocation13_spill] sm:$0xff] }
  0xbf   : > { %v6017_v48 = vsel %vm8595_vm5, %v1913_v32, %v1915_v4  ;;  %v1610_v12 = vsel %vm1551_vm4, %v1605_v50, %v1609_v57  ;;  %v1622_v32 = vrot.slane %v8570_v5, 1 }
  0xc0   : > { %v1614_v52 = vsel %vm1551_vm4, %v1609_v57, %v1613_v13  ;;  %v6040_v44 = vsel %vm8595_vm5, %v1915_v4, %v1917_v46  ;;  %v8616_v4 = vld [vmem:[#allocation12_spill] sm:$0xff] }
  0xc1   : > { %v1921_v57 = vrot.slane %v8616_v4, 2 }
  0xc3   : > { %4962 = vmatmul.mubr.msk.bf16.gmra.mxu0 %vm555_vm2, %v1594_v55  ;;  %v8613_v55 = vld [vmem:[#allocation11_spill] sm:$0xff] }
  0xc4   : > { %4965 = vmatprep.mubr.msk.bf16.mxu0 %vm555_vm2, %v1598_v51  ;;  %v1919_v8 = vrot.slane %v8613_v55, 2  ;;  %v8614_v51 = vld [vmem:[#allocation9_spill] sm:$0xff]  ;;  %v1923_v55 = vrot.slane %v8617_v43, 2 }
  0xc5   : > { %4984 = vmatmul.mubr.msk.bf16.vlgmr.msra.gmra.mxu1 %vm555_vm2, %v5991_v25  ;;  %v1615_v49 = vrot.slane %v8614_v51, 1 }
  0xc6   : > { %4987 = vmatprep.mubr.msk.bf16.mxu1 %vm555_vm2, %v5995_v27  ;;  %5058 = vmatpush3.bf16.msra.mxu1 %v2590_v38  ;;  %v1616_v38 = vrot.slane %v8615_v29, 2  ;;  %v6044_v50 = vsel %vm8595_vm5, %v1917_v46, %v1919_v8 }
  0xcb   : > { %4966 = vmatmul.mubr.msk.bf16.gmra.mxu0 %vm555_vm2, %v1602_v16  ;;  %v1625_v16 = vrot.slane %v8569_v15, 2 }
  0xcc   : > { %4969 = vmatprep.mubr.msk.bf16.mxu0 %vm555_vm2, %v1606_v2  ;;  %v1617_v2 = vor.u32 %v1616_v38, %v1615_v49  ;;  %v6061_v38 = vsel %vm8595_vm5, %v1919_v8, %v1921_v57 }
  0xcd   : > { %4988 = vmatmul.mubr.msk.bf16.gmra.mxu1 %vm555_vm2, %v6013_v41  ;;  %v1626_v22 = vor.u32 %v1625_v16, %v1622_v32  ;;  %v1927_v16 = vrot.slane %v5747_v7, 2  ;;  %v8619_v7 = vld [vmem:[#allocation14_spill] sm:$0xff] }
  0xce   : > { %4991 = vmatprep.mubr.msk.bf16.mxu1 %vm555_vm2, %v6017_v48  ;;  %v1618_v46 = vsel %vm1551_vm4, %v1613_v13, %v1617_v2  ;;  %v1925_v13 = vrot.slane %v5720_v53, 2 }
  0xcf   : > { %v1627_v49 = vsel %vm1551_vm4, %v1617_v2, %v1626_v22 }
  0xd0   : > { %v6076_v2 = vsel %vm8595_vm5, %v1923_v55, %v1925_v13 }
  0xd3   : > { %4970 = vmatmul.mubr.msk.bf16.gmra.mxu0 %vm555_vm2, %v1610_v12  ;;  %v1629_v12 = vshll.u32 %v6049_v47, 16 }
  0xd4   : > { %4973 = vmatprep.mubr.msk.bf16.mxu0 %vm555_vm2, %v1614_v52  ;;  %v6065_v52 = vsel %vm8595_vm5, %v1921_v57, %v1923_v55  ;;  %v6080_v57 = vsel %vm8595_vm5, %v1925_v13, %v1927_v16 }
  0xd5   : > { %4992 = vmatmul.mubr.msk.bf16.gmra.mxu1 %vm555_vm2, %v6040_v44  ;;  %v1631_v32 = vrot.slane %v1629_v12, 2  ;;  %v1931_v12 = vrot.slane %v5539_v10, 2 }
  0xd6   : > { %4995 = vmatprep.mubr.msk.bf16.mxu1 %vm555_vm2, %v6044_v50 }
  0xd7   : > { %v1632_v8 = vsel %vm1551_vm4, %v1626_v22, %v1631_v32  ;;  %v1929_v22 = vrot.slane %v8619_v7, 2 }
  0xd9   : > { %v6099_v13 = vsel %vm8595_vm5, %v1927_v16, %v1929_v22  ;;  %v6106_v7 = vsel %vm8595_vm5, %v1929_v22, %v1931_v12  ;;  %v1933_v16 = vrot.slane %v5542_v11, 2  ;;  %v1935_v22 = vrot.slane %v5569_v24, 2 }
  0xdb   : > { %4974 = vmatmul.mubr.msk.bf16.gmra.mxu0 %vm555_vm2, %v1618_v46 }
  0xdc   : > { %4977 = vmatprep.mubr.msk.bf16.mxu0 %vm555_vm2, %v1627_v49 }
  0xdd   : > { %4996 = vmatmul.mubr.msk.bf16.gmra.mxu1 %vm555_vm2, %v6061_v38 }
  0xde   : > { %4999 = vmatprep.mubr.msk.bf16.mxu1 %vm555_vm2, %v6065_v52 }
  0xe3   : > { %v4795_v4 = vpop.f32.mrf.mxu0  ;;  %4978 = vmatmul.mubr.msk.bf16.gmra.mxu0 %vm555_vm2, %v1632_v8 }
  0xe4   : > { %5021 = vmatprep.mubr.msk.bf16.mxu0 %vm555_vm2, %v5991_v25  ;;  %v6084_v43 = vpop.f32.mrf.mxu1  ;;  %v2900_v25 = vsel %vm610_vm0, %v5935_v58, 0 }
  0xe5   : > { %8618 = vst [vmem:[#allocation10_spill] sm:$0xff] %v6084_v43  ;;  %5000 = vmatmul.mubr.msk.bf16.gmra.mxu1 %vm555_vm2, %v6076_v2  ;;  %v648_v53 = vpop.f32.mrf.mxu0 }
  0xe6   : > { %5003 = vmatprep.mubr.msk.bf16.mxu1 %vm555_vm2, %v6080_v57  ;;  %v6091_v55 = vpop.f32.mrf.mxu1 }
  0xe7   : > { %8620 = vst [vmem:[#allocation11_spill] sm:$0xff] %v6091_v55  ;;  %v4796_v46 = vpop.f32.mrf.mxu0  ;;  %v6130_v55 = vsel %vm8595_vm5, %v1933_v16, %v1935_v22 }
  0xe8   : > { %v6094_v49 = vpop.f32.mrf.mxu1 }
  0xe9   : > { %8621 = vst [vmem:[#allocation12_spill] sm:$0xff] %v6094_v49  ;;  %v651_v32 = vpop.f32.mrf.mxu0 }
  0xea   : > { %v6101_v8 = vpop.f32.mrf.mxu1 }
  0xeb   : > { %8622 = vst [vmem:[#allocation13_spill] sm:$0xff] %v6101_v8  ;;  %v4799_v15 = vpop.f32.mrf.mxu0  ;;  %5022 = vmatmul.mubr.msk.bf16.vlgmr.msra.gmra.mxu0 %vm555_vm2, %v5995_v27 }
  0xec   : > { %5096 = vmatpush3.bf16.msra.mxu0 %v2900_v25  ;;  %5025 = vmatprep.mubr.msk.bf16.mxu0 %vm555_vm2, %v6013_v41  ;;  %v6110_v10 = vpop.f32.mrf.mxu1  ;;  %v6123_v41 = vsel %vm8595_vm5, %v1931_v12, %v1933_v16  ;;  %v1937_v12 = vrot.slane %v5598_v36, 2 }
  0xed   : > { %8623 = vst [vmem:[#allocation14_spill] sm:$0xff] %v6110_v10  ;;  %5004 = vmatmul.mubr.msk.bf16.gmra.mxu1 %vm555_vm2, %v6099_v13  ;;  %v664_v58 = vpop.f32.mrf.mxu0 }
  0xee   : > { %5007 = vmatprep.mubr.msk.bf16.mxu1 %vm555_vm2, %v6106_v7  ;;  %v6117_v5 = vpop.f32.mrf.mxu1  ;;  %v6149_v51 = vsel %vm8595_vm5, %v1935_v22, %v1937_v12 }
  0xef   : > { %8624 = vst [vmem:[#allocation16_spill] sm:$0xff] %v6117_v5  ;;  %v4800_v27 = vpop.f32.mrf.mxu0 }
  0xf0   : > { %v6120_v25 = vpop.f32.mrf.mxu1 }
  0xf1   : > { %8625 = vst [vmem:[#allocation17_spill] sm:$0xff] %v6120_v25  ;;  %v667_v8 = vpop.f32.mrf.mxu0 }
  0xf2   : > { %v6125_v10 = vpop.f32.mrf.mxu1 }
  0xf3   : > { %8626 = vst [vmem:[#allocation18_spill] sm:$0xff] %v6125_v10  ;;  %v4803_v49 = vpop.f32.mrf.mxu0  ;;  %5026 = vmatmul.mubr.msk.bf16.gmra.mxu0 %vm555_vm2, %v6017_v48  ;;  %v6142_v48 = vrot.slane %v5952_v33, 2  ;;  %v2450_v33 = vrot.slane %v5577_v28, 2 }
  0xf4   : > { %5029 = vmatprep.mubr.msk.bf16.mxu0 %vm555_vm2, %v6040_v44  ;;  %v4833_v11 = vpop.f32.mrf.mxu1 }
  0xf5   : > { %5008 = vmatmul.mubr.msk.bf16.gmra.mxu1 %vm555_vm2, %v6123_v41  ;;  %v680_v24 = vpop.f32.mrf.mxu0  ;;  %v6136_v25 = vadd.f32 %v4833_v11, %v4795_v4  ;;  %v6153_v4 = vsel %vm8595_vm5, %v1937_v12, %v6142_v48 }
  0xf6   : > { %5011 = vmatprep.mubr.msk.bf16.mxu1 %vm555_vm2, %v6130_v55  ;;  %v864_v16 = vpop.f32.mrf.mxu1 }
  0xf7   : > { %v4804_v10 = vpop.f32.mrf.mxu0  ;;  %v6144_v5 = vadd.f32 %v864_v16, %v648_v53  ;;  %v2451_v53 = vrot.slane %v5566_v23, 3  ;;  %v2453_v16 = vrot.slane %v5610_v42, 2  ;;  %v1941_v23 = vrot.slane %v6049_v47, 2 }
  0xf8   : > { %v4834_v44 = vpop.f32.mrf.mxu1 }
  0xf9   : > { %v683_v43 = vpop.f32.mrf.mxu0  ;;  %v6146_v29 = vadd.f32 %v4834_v44, %v4796_v46  ;;  %v2454_v46 = vrot.slane %v5595_v35, 3  ;;  %v2452_v35 = vor.u32 %v2451_v53, %v2450_v33  ;;  %v2461_v33 = vrot.slane %v5660_v0, 2 }
  0xfa   : > { %v867_v11 = vpop.f32.mrf.mxu1 }
  0xfb   : > { %v4807_v36 = vpop.f32.mrf.mxu0  ;;  %5030 = vmatmul.mubr.msk.bf16.gmra.mxu0 %vm555_vm2, %v6044_v50  ;;  %v6161_v44 = vadd.f32 %v867_v11, %v651_v32  ;;  %v2455_v50 = vor.u32 %v2454_v46, %v2453_v16 }
  0xfc   : > { %5033 = vmatprep.mubr.msk.bf16.mxu0 %vm555_vm2, %v6061_v38  ;;  %v4837_v22 = vpop.f32.mrf.mxu1 }
  0xfd   : > { %5012 = vmatmul.mubr.msk.bf16.gmra.mxu1 %vm555_vm2, %v6149_v51  ;;  %v696_v12 = vpop.f32.mrf.mxu0  ;;  %v6167_v31 = vadd.f32 %v4837_v22, %v4799_v15  ;;  %v1942_v15 = vsel %vm8595_vm5, %v6142_v48, %v1941_v23  ;;  %v2456_v47 = vsel %vm2449_vm6, %v2452_v35, %v2455_v50 }
  0xfe   : > { %5015 = vmatprep.mubr.msk.bf16.mxu1 %vm555_vm2, %v6153_v4  ;;  %v880_v28 = vpop.f32.mrf.mxu1 }
  0xff   : > { %v4808_v42 = vpop.f32.mrf.mxu0  ;;  %v6172_v32 = vadd.f32 %v880_v28, %v664_v58  ;;  %v2462_v58 = vrot.slane %v5651_v59, 3 }
 0x100   : > { %v4838_v38 = vpop.f32.mrf.mxu1 }
 0x101   : > { %v699_v11 = vpop.f32.mrf.mxu0  ;;  %v6174_v37 = vadd.f32 %v4838_v38, %v4800_v27  ;;  %v2463_v28 = vor.u32 %v2462_v58, %v2461_v33  ;;  %v2465_v38 = vrot.slane %v5667_v3, 2 }
 0x102   : > { %v883_v22 = vpop.f32.mrf.mxu1 }
 0x103   : > { %v4811_v19 = vpop.f32.mrf.mxu0  ;;  %5034 = vmatmul.mubr.msk.bf16.gmra.mxu0 %vm555_vm2, %v6065_v52  ;;  %v6183_v53 = vadd.f32 %v883_v22, %v667_v8 }
 0x104   : > { %5037 = vmatprep.mubr.msk.bf16.mxu0 %vm555_vm2, %v6076_v2  ;;  %v4841_v27 = vpop.f32.mrf.mxu1  ;;  %v2460_v2 = vsel %vm2449_vm6, %v2455_v50, %v5897_v21 }
 0x105   : > { %5016 = vmatmul.mubr.msk.bf16.gmra.mxu1 %vm555_vm2, %v1942_v15  ;;  %v712_v16 = vpop.f32.mrf.mxu0  ;;  %v6188_v46 = vadd.f32 %v4841_v27, %v4803_v49  ;;  %v2466_v15 = vrot.slane %v5663_v1, 3 }
 0x106   : > { %5059 = vmatprep.mubr.msk.bf16.mxu1 %vm555_vm2, %v2456_v47  ;;  %v896_v52 = vpop.f32.mrf.mxu1  ;;  %v2469_v47 = vrot.slane %v5693_v30, 2 }
 0x107   : > { %v4812_v23 = vpop.f32.mrf.mxu0  ;;  %v6191_v35 = vadd.f32 %v896_v52, %v680_v24  ;;  %v2464_v24 = vsel %vm2449_vm6, %v5897_v21, %v2463_v28 }
 0x108   : > { %v4842_v0 = vpop.f32.mrf.mxu1 }
 0x109   : > { %v715_v59 = vpop.f32.mrf.mxu0  ;;  %v6193_v8 = vadd.f32 %v4842_v0, %v4804_v10  ;;  %v2470_v10 = vrot.slane %v5670_v6, 3  ;;  %v2474_v0 = vrot.slane %v5689_v26, 3 }
 0x10a   : > { %v899_v49 = vpop.f32.mrf.mxu1 }
 0x10b   : > { %v4815_v22 = vpop.f32.mrf.mxu0  ;;  %5038 = vmatmul.mubr.msk.bf16.gmra.mxu0 %vm555_vm2, %v6080_v57  ;;  %v6205_v33 = vadd.f32 %v899_v49, %v683_v43  ;;  %v2467_v57 = vor.u32 %v2466_v15, %v2465_v38  ;;  %v2471_v30 = vor.u32 %v2470_v10, %v2469_v47  ;;  %v2477_v15 = vrot.slane %v5735_v60, 2 }
 0x10c   : > { %5041 = vmatprep.mubr.msk.bf16.mxu0 %vm555_vm2, %v6099_v13  ;;  %v4845_v3 = vpop.f32.mrf.mxu1  ;;  %v2478_v49 = vrot.slane %v5700_v39, 3 }
 0x10d   : > { %5060 = vmatmul.mubr.msk.bf16.vlgmr.msra.gmra.mxu1 %vm555_vm2, %v2460_v2  ;;  %v728_v1 = vpop.f32.mrf.mxu0  ;;  %v6210_v50 = vadd.f32 %v4845_v3, %v4807_v36  ;;  %v2468_v52 = vsel %vm2449_vm6, %v2463_v28, %v2467_v57  ;;  %v2473_v36 = vrot.slane %v5697_v34, 2  ;;  %v316_v28 = vld [vmem:[%s5526_s23 + $0x9c] sm:$0xf] }
 0x10e   : > { %5063 = vmatprep.mubr.msk.bf16.mxu1 %vm555_vm2, %v2464_v24  ;;  %v912_v58 = vpop.f32.mrf.mxu1  ;;  %v2479_v39 = vor.u32 %v2478_v49, %v2477_v15  ;;  %v6247_v10 = vcombine.low %v6037_v14, %v316_v28  ;;  %v2485_v14 = vrot.slane %v5773_v45, 2  ;;  %v6282_v49 = vld [vmem:[%s5526_s23 + $0xa0] ss:$0 sps:$4 sm:$0x33]  }
 0x10f   : > { %v6213_v21 = vpop.f32.mrf.mxu0  ;;  %v6215_v27 = vadd.f32 %v912_v58, %v696_v12  ;;  %v2472_v12 = vsel %vm2449_vm6, %v2467_v57, %v2471_v30  ;;  %v2481_v58 = vrot.slane %v5739_v62, 2 }
 0x110   : > { %v4846_v6 = vpop.f32.mrf.mxu1 }
 0x111   : > { %v6217_v43 = vpop.f32.mrf.mxu0  ;;  %v6219_v13 = vadd.f32 %v4846_v6, %v4808_v42  ;;  %v2482_v6 = vrot.slane %v5725_v54, 3 }
 0x112   : > { %v915_v2 = vpop.f32.mrf.mxu1 }
 0x113   : > { %v6224_v38 = vpop.f32.mrf.mxu0  ;;  %5042 = vmatmul.mubr.msk.bf16.gmra.mxu0 %vm555_vm2, %v6106_v7  ;;  %v6231_v42 = vadd.f32 %v915_v2, %v699_v11  ;;  %v2475_v7 = vor.u32 %v2474_v0, %v2473_v36  ;;  %v2486_v0 = vrot.slane %v5742_v63, 3  ;;  %v2483_v63 = vor.u32 %v2482_v6, %v2481_v58 }
 0x114   : > { %5045 = vmatprep.mubr.msk.bf16.mxu0 %vm555_vm2, %v6123_v41  ;;  %v4849_v34 = vpop.f32.mrf.mxu1 }
 0x115   : > { %5064 = vmatmul.mubr.msk.bf16.gmra.mxu1 %vm555_vm2, %v2468_v52  ;;  %v6236_v26 = vpop.f32.mrf.mxu0  ;;  %v6239_v24 = vadd.f32 %v4849_v34, %v4811_v19  ;;  %v2476_v19 = vsel %vm2449_vm6, %v2471_v30, %v2475_v7 }
 0x116   : > { %5067 = vmatprep.mubr.msk.bf16.mxu1 %vm555_vm2, %v2472_v12  ;;  %v928_v47 = vpop.f32.mrf.mxu1  ;;  %v2487_v12 = vor.u32 %v2486_v0, %v2485_v14 }
 0x117   : > { %v6242_v60 = vpop.f32.mrf.mxu0  ;;  %v6244_v11 = vadd.f32 %v928_v47, %v712_v16  ;;  %v2480_v16 = vsel %vm2449_vm6, %v2475_v7, %v2479_v39  ;;  %v2490_v7 = vrot.slane %v5769_v40, 3  ;;  %v2494_v40 = vrot.slane %v5782_v61, 3 }
 0x118   : > { %v4850_v41 = vpop.f32.mrf.mxu1 }
 0x119   : > { %v6249_v3 = vpop.f32.mrf.mxu0  ;;  %v6251_v57 = vadd.f32 %v4850_v41, %v4812_v23 }
 0x11a   : > { %v931_v52 = vpop.f32.mrf.mxu1 }
 0x11b   : > { %v4871_v36 = vpop.f32.mrf.mxu0  ;;  %5046 = vmatmul.mubr.msk.bf16.gmra.mxu0 %vm555_vm2, %v6130_v55  ;;  %v6261_v2 = vadd.f32 %v931_v52, %v715_v59  ;;  %v2221_v55 = vrot.slane %v6247_v10, 2  ;;  %v5337_v52 = vld [vmem:[%s5526_s23 + $0x10] sm:$0xff]  }
 0x11c   : > { %v6264_v23 = vadd.f32 %v4871_v36, %v6136_v25  ;;  %5049 = vmatprep.mubr.msk.bf16.mxu0 %vm555_vm2, %v6149_v51  ;;  %v2808_v36 = vrot.slane %v5337_v52, 3 }
 0x11d   : > { %v4853_v54 = vpop.f32.mrf.mxu1  ;;  %5068 = vmatmul.mubr.msk.bf16.gmra.mxu1 %vm555_vm2, %v2476_v19  ;;  %v1136_v62 = vpop.f32.mrf.mxu0 }
 0x11e   : > { %v6270_v30 = vadd.f32 %v4853_v54, %v4815_v22  ;;  %v6273_v45 = vadd.f32 %v1136_v62, %v6144_v5  ;;  %5071 = vmatprep.mubr.msk.bf16.mxu1 %vm555_vm2, %v2480_v16  ;;  %v2222_v22 = vsel %vm8595_vm5, %v6142_v48, %v2221_v55  ;;  %v2489_v5 = vrot.slane %v5779_v56, 2 }
 0x11f   : > { %v944_v59 = vpop.f32.mrf.mxu1  ;;  %v4872_v25 = vpop.f32.mrf.mxu0  ;;  %v2488_v48 = vsel %vm2449_vm6, %v2483_v63, %v2487_v12  ;;  %v2493_v56 = vrot.slane %v5796_v9, 2  ;;  %v5338_v9 = vld [vmem:[%s5526_s23 + $0x18] sm:$0xff]  }
 0x120   : > { %v6276_v15 = vadd.f32 %v944_v59, %v728_v1  ;;  %v6279_v51 = vadd.f32 %v4872_v25, %v6146_v29  ;;  %v2484_v29 = vsel %vm2449_vm6, %v2479_v39, %v2483_v63  ;;  %v2223_v39 = vrot.slane %v6282_v49, 2 }
 0x121   : > { %v4854_v34 = vpop.f32.mrf.mxu1  ;;  %v1139_v28 = vpop.f32.mrf.mxu0  ;;  %v2491_v6 = vor.u32 %v2490_v7, %v2489_v5  ;;  %v2809_v16 = vrot.slane %v5338_v9, 3  ;;  %v2495_v0 = vor.u32 %v2494_v40, %v2493_v56  ;;  %v8627_v7 = vld [vmem:[#allocation5_spill] sm:$0xff] }
 0x122   : > { %v6289_v47 = vadd.f32 %v4854_v34, %v6213_v21  ;;  %v6292_v1 = vadd.f32 %v1139_v28, %v6161_v44  ;;  %v2224_v63 = vsel %vm8595_vm5, %v2221_v55, %v2223_v39 }
 0x123   : > { %v947_v41 = vpop.f32.mrf.mxu1  ;;  %v4875_v19 = vpop.f32.mrf.mxu0  ;;  %5050 = vmatmul.mubr.msk.bf16.gmra.mxu0 %vm555_vm2, %v6153_v4  ;;  %v2810_v25 = vsel %vm2807_vm7, %v2808_v36, %v2809_v16  ;;  %v2496_v5 = vsel %vm2449_vm6, %v2491_v6, %v2495_v0 }
 0x124   : > { %v6301_v21 = vadd.f32 %v947_v41, %v6217_v43  ;;  %v6304_v44 = vadd.f32 %v4875_v19, %v6167_v31  ;;  %5053 = vmatprep.mubr.msk.bf16.mxu0 %vm555_vm2, %v2222_v22 }
 0x125   : > { %v4857_v58 = vpop.f32.mrf.mxu1  ;;  %5072 = vmatmul.mubr.msk.bf16.gmra.mxu1 %vm555_vm2, %v2484_v29  ;;  %v1152_v4 = vpop.f32.mrf.mxu0  ;;  %v2502_v29 = vrot.slane %v8627_v7, 3 }
 0x126   : > { %v6312_v61 = vadd.f32 %v4857_v58, %v6224_v38  ;;  %v6315_v43 = vadd.f32 %v1152_v4, %v6172_v32  ;;  %5075 = vmatprep.mubr.msk.bf16.mxu1 %vm555_vm2, %v2488_v48  ;;  %v2492_v32 = vsel %vm2449_vm6, %v2487_v12, %v2491_v6  ;;  %v2501_v12 = vrot.slane %v5561_v20, 2  ;;  %v5340_v48 = vld [vmem:[%s5526_s23 + $0x28] sm:$0xff]  }
 0x127   : > { %v960_v31 = vpop.f32.mrf.mxu1  ;;  %v4876_v14 = vpop.f32.mrf.mxu0  ;;  %v2813_v56 = vrot.slane %v5340_v48, 3  ;;  %v2518_v48 = vshrl.u32 %v6247_v10, 16 }
 0x128   : > { %v6319_v54 = vadd.f32 %v960_v31, %v6236_v26  ;;  %v6322_v62 = vadd.f32 %v4876_v14, %v6174_v37  ;;  %v2497_v26 = vrot.slane %v5555_v18, 2  ;;  %v2498_v37 = vrot.slane %v5552_v17, 3  ;;  %v5339_v18 = vld [vmem:[%s5526_s23 + $0x20] sm:$0xff]   ;;  %v8628_v31 = vld [vmem:[#allocation7_spill] sm:$0xff] }
 0x129   : > { %v4858_v59 = vpop.f32.mrf.mxu1  ;;  %v1155_v38 = vpop.f32.mrf.mxu0  ;;  %v2811_v17 = vrot.slane %v5339_v18, 3  ;;  %v2503_v39 = vor.u32 %v2502_v29, %v2501_v12  ;;  %v2505_v14 = vrot.slane %v8628_v31, 2  ;;  %v5342_v12 = vld [vmem:[%s5526_s23 + $0x38] sm:$0xff]  }
 0x12a   : > { %v6328_v34 = vadd.f32 %v4858_v59, %v6242_v60  ;;  %v6331_v28 = vadd.f32 %v1155_v38, %v6183_v53  ;;  %v2817_v7 = vrot.slane %v5342_v12, 3  ;;  %v5344_v12 = vld [vmem:[%s5526_s23 + $0x48] sm:$0xff]  }
 0x12b   : > { %v963_v22 = vpop.f32.mrf.mxu1  ;;  %v4879_v55 = vpop.f32.mrf.mxu0  ;;  %5054 = vmatmul.mubr.msk.bf16.gmra.mxu0 %vm555_vm2, %v2224_v63  ;;  %v2812_v4 = vsel %vm2807_vm7, %v2809_v16, %v2811_v17  ;;  %v2814_v36 = vsel %vm2807_vm7, %v2811_v17, %v2813_v56  ;;  %v8629_v63 = vld [vmem:[#allocation6_spill] sm:$0xff] }
 0x12c   : > { %v6340_v60 = vadd.f32 %v963_v22, %v6249_v3  ;;  %v6343_v53 = vadd.f32 %v4879_v55, %v6188_v46  ;;  %5097 = vmatprep.mubr.msk.bf16.mxu0 %vm555_vm2, %v2810_v25  ;;  %v2499_v3 = vor.u32 %v2498_v37, %v2497_v26  ;;  %v2506_v59 = vrot.slane %v8629_v63, 3  ;;  %v8631_v26 = vld [vmem:[#allocation8_spill] sm:$0xff] }
 0x12d   : > { %v6347_v41 = vpop.f32.mrf.mxu1  ;;  %5076 = vmatmul.mubr.msk.bf16.gmra.mxu1 %vm555_vm2, %v2492_v32  ;;  %v1168_v19 = vpop.f32.mrf.mxu0  ;;  %v8630_v32 = vld [vmem:[#allocation9_spill] sm:$0xff]  ;;  %v2510_v37 = vrot.slane %v8631_v26, 3 }
 0x12e   : > { %v6352_v20 = vadd.f32 %v1168_v19, %v6191_v35  ;;  %5079 = vmatprep.mubr.msk.bf16.mxu1 %vm555_vm2, %v2496_v5  ;;  %v2500_v9 = vsel %vm2449_vm6, %v2495_v0, %v2499_v3  ;;  %v2504_v16 = vsel %vm2449_vm6, %v2499_v3, %v2503_v39  ;;  %v2509_v25 = vrot.slane %v8630_v32, 2  ;;  %v5341_v0 = vld [vmem:[%s5526_s23 + $0x30] sm:$0xff]  }
 0x12f   : > { %v6355_v40 = vpop.f32.mrf.mxu1  ;;  %v4880_v46 = vpop.f32.mrf.mxu0  ;;  %v2815_v22 = vrot.slane %v5341_v0, 3  ;;  %v2507_v18 = vor.u32 %v2506_v59, %v2505_v14  ;;  %v2521_v3 = vshll.u32 %v6247_v10, 16  ;;  %v5343_v0 = vld [vmem:[%s5526_s23 + $0x40] sm:$0xff]  }
 0x130   : > { %v6358_v58 = vadd.f32 %v4880_v46, %v6193_v8  ;;  %v2511_v19 = vor.u32 %v2510_v37, %v2509_v25  ;;  %v2520_v25 = vrot.slane %v2518_v48, 2  ;;  %v2530_v48 = vshll.u32 %v6282_v49, 16 }
 0x131   : > { %v6361_v6 = vpop.f32.mrf.mxu1  ;;  %v1171_v52 = vpop.f32.mrf.mxu0  ;;  %v2523_v26 = vrot.slane %v2521_v3, 3 }
 0x132   : > { %v6365_v35 = vadd.f32 %v1171_v52, %v6205_v33  ;;  %v2512_v32 = vsel %vm2449_vm6, %v2507_v18, %v2511_v19 }
 0x133   : > { %v6370_v8 = vpop.f32.mrf.mxu1  ;;  %v4883_v38 = vpop.f32.mrf.mxu0  ;;  %5098 = vmatmul.mubr.msk.bf16.vlgmr.msra.gmra.mxu0 %vm555_vm2, %v2812_v4  ;;  %v2816_v4 = vsel %vm2807_vm7, %v2813_v56, %v2815_v22 }
 0x134   : > { %v6377_v33 = vadd.f32 %v4883_v38, %v6210_v50  ;;  %5101 = vmatprep.mubr.msk.bf16.mxu0 %vm555_vm2, %v2814_v36  ;;  %v2818_v36 = vsel %vm2807_vm7, %v2815_v22, %v2817_v7 }
 0x135   : > { %v6381_v55 = vpop.f32.mrf.mxu1  ;;  %5080 = vmatmul.mubr.msk.bf16.gmra.mxu1 %vm555_vm2, %v2500_v9  ;;  %v1184_v5 = vpop.f32.mrf.mxu0  ;;  %v8632_v9 = vld [vmem:[#allocation15_spill] sm:$0xff] }
 0x136   : > { %v6386_v29 = vadd.f32 %v1184_v5, %v6215_v27  ;;  %5083 = vmatprep.mubr.msk.bf16.mxu1 %vm555_vm2, %v2504_v16  ;;  %v8633_v31 = vshrl.u32 %v8632_v9, 16  ;;  %v8634_v63 = vshll.u32 %v8632_v9, 16 }
 0x137   : > { %v6389_v17 = vpop.f32.mrf.mxu1  ;;  %v4884_v50 = vpop.f32.mrf.mxu0 }
 0x138   : > { %v6394_v46 = vadd.f32 %v4884_v50, %v6219_v13  ;;  %v2513_v14 = vrot.slane %v8633_v31, 2  ;;  %v2514_v59 = vrot.slane %v8634_v63, 3  ;;  %v2508_v13 = vsel %vm2449_vm6, %v2503_v39, %v2507_v18 }
 0x139   : > { %v6397_v52 = vpop.f32.mrf.mxu1  ;;  %v1187_v27 = vpop.f32.mrf.mxu0  ;;  %v2821_v50 = vrot.slane %v5344_v12, 3 }
 0x13a   : > { %v6405_v38 = vadd.f32 %v1187_v27, %v6231_v42  ;;  %v2819_v42 = vrot.slane %v5343_v0, 3  ;;  %v2515_v5 = vor.u32 %v2514_v59, %v2513_v14 }
 0x13b   : > { %v6408_v16 = vpop.f32.mrf.mxu1  ;;  %v4887_v56 = vpop.f32.mrf.mxu0  ;;  %5102 = vmatmul.mubr.msk.bf16.gmra.mxu0 %vm555_vm2, %v2816_v4 }
 0x13c   : > { %v6413_v37 = vadd.f32 %v4887_v56, %v6239_v24  ;;  %5105 = vmatprep.mubr.msk.bf16.mxu0 %vm555_vm2, %v2818_v36  ;;  %v2527_v24 = vshrl.u32 %v6282_v49, 16  ;;  %v2524_v36 = vor.u32 %v2523_v26, %v2520_v25  ;;  %v2516_v63 = vsel %vm2449_vm6, %v2511_v19, %v2515_v5  ;;  %v5345_v26 = vld [vmem:[%s5526_s23 + $0x50] sm:$0xff]  }
 0x13d   : > { %v4909_v22 = vpop.f32.mrf.mxu1  ;;  %5084 = vmatmul.mubr.msk.bf16.gmra.mxu1 %vm555_vm2, %v2508_v13  ;;  %v1200_v39 = vpop.f32.mrf.mxu0  ;;  %v2822_v59 = vsel %vm2807_vm7, %v2819_v42, %v2821_v50 }
 0x13e   : > { %v6420_v4 = vadd.f32 %v4909_v22, %v6264_v23  ;;  %v6423_v18 = vadd.f32 %v1200_v39, %v6244_v11  ;;  %5087 = vmatprep.mubr.msk.bf16.mxu1 %vm555_vm2, %v2512_v32  ;;  %v2820_v23 = vsel %vm2807_vm7, %v2817_v7, %v2819_v42  ;;  %v2532_v32 = vrot.slane %v2530_v48, 3  ;;  %v5346_v42 = vld [vmem:[%s5526_s23 + $0x58] sm:$0xff]  }
 0x13f   : > { %v1367_v3 = vpop.f32.mrf.mxu1  ;;  %v4888_v27 = vpop.f32.mrf.mxu0  ;;  %v2525_v7 = vsel %vm2449_vm6, %v2515_v5, %v2524_v36  ;;  %v2825_v22 = vrot.slane %v5346_v42, 3 }
 0x140   : > { %v6429_v9 = vadd.f32 %v1367_v3, %v6273_v45  ;;  %v6432_v31 = vadd.f32 %v4888_v27, %v6251_v57  ;;  %v2529_v45 = vrot.slane %v2527_v24, 2 }
 0x141   : > { %v4910_v11 = vpop.f32.mrf.mxu1  ;;  %v1203_v14 = vpop.f32.mrf.mxu0 }
 0x142   : > { %v6438_v13 = vadd.f32 %v4910_v11, %v6279_v51  ;;  %v6441_v56 = vadd.f32 %v1203_v14, %v6261_v2  ;;  %v2823_v51 = vrot.slane %v5345_v26, 3 }
 0x143   : > { %v6443_v57 = vpop.f32.mrf.mxu1  ;;  %v4891_v25 = vpop.f32.mrf.mxu0  ;;  %5106 = vmatmul.mubr.msk.bf16.gmra.mxu0 %vm555_vm2, %v2820_v23 }
 0x144   : > { %v6448_v19 = vadd.f32 %v4891_v25, %v6270_v30  ;;  %5109 = vmatprep.mubr.msk.bf16.mxu0 %vm555_vm2, %v2822_v59  ;;  %v2533_v30 = vor.u32 %v2532_v32, %v2529_v45  ;;  %v2824_v27 = vsel %vm2807_vm7, %v2821_v50, %v2823_v51  ;;  %v5347_v45 = vld [vmem:[%s5526_s23 + $0x60] sm:$0xff]   ;;  %v5348_v25 = vld [vmem:[%s5526_s23 + $0x68] sm:$0xff]  }
 0x145   : > { %v4913_v0 = vpop.f32.mrf.mxu1  ;;  %5088 = vmatmul.mubr.msk.bf16.gmra.mxu1 %vm555_vm2, %v2516_v63  ;;  %v1216_v2 = vpop.f32.mrf.mxu0 }
 0x146   : > { %v6455_v39 = vadd.f32 %v4913_v0, %v6304_v44  ;;  %v6458_v12 = vadd.f32 %v1216_v2, %v6276_v15  ;;  %5091 = vmatprep.mubr.msk.bf16.mxu1 %vm555_vm2, %v2525_v7  ;;  %v2826_v15 = vsel %vm2807_vm7, %v2823_v51, %v2825_v22  ;;  %v2534_v63 = vsel %vm2449_vm6, %v2524_v36, %v2533_v30 }
 0x147   : > { %v1383_v5 = vpop.f32.mrf.mxu1  ;;  %v4892_v24 = vpop.f32.mrf.mxu0  ;;  %v2829_v36 = vrot.slane %v5348_v25, 3  ;;  %v8638_v25 = vld [vmem:[#allocation13_spill] sm:$0xff] }
 0x148   : > { %v6462_v48 = vadd.f32 %v1383_v5, %v6315_v43  ;;  %v6465_v3 = vadd.f32 %v4892_v24, %v6289_v47  ;;  %v8635_v5 = vld [vmem:[#allocation10_spill] sm:$0xff] }
 0x149   : > { %v4914_v23 = vpop.f32.mrf.mxu1  ;;  %v1219_v44 = vpop.f32.mrf.mxu0 }
 0x14a   : > { %v6470_v11 = vadd.f32 %v4914_v23, %v6322_v62  ;;  %v6473_v14 = vadd.f32 %v1219_v44, %v6301_v21  ;;  %v2827_v62 = vrot.slane %v5347_v45, 3  ;;  %v8637_v45 = vld [vmem:[#allocation12_spill] sm:$0xff] }
 0x14b   : > { %v1386_v43 = vpop.f32.mrf.mxu1  ;;  %v4895_v59 = vpop.f32.mrf.mxu0  ;;  %5110 = vmatmul.mubr.msk.bf16.gmra.mxu0 %vm555_vm2, %v2824_v27 }
 0x14c   : > { %v6478_v47 = vadd.f32 %v1386_v43, %v6331_v28  ;;  %v6481_v50 = vadd.f32 %v4895_v59, %v6312_v61  ;;  %5113 = vmatprep.mubr.msk.bf16.mxu0 %vm555_vm2, %v2826_v15  ;;  %v2828_v2 = vsel %vm2807_vm7, %v2825_v22, %v2827_v62 }
 0x14d   : > { %v4917_v32 = vpop.f32.mrf.mxu1  ;;  %5092 = vmatmul.mubr.msk.bf16.gmra.mxu1 %vm555_vm2, %v2534_v63  ;;  %v1232_v21 = vpop.f32.mrf.mxu0 }
 0x14e   : > { %v6488_v7 = vadd.f32 %v4917_v32, %v6343_v53  ;;  %v6491_v26 = vadd.f32 %v1232_v21, %v6319_v54  ;;  %v2830_v53 = vsel %vm2807_vm7, %v2827_v62, %v2829_v36  ;;  %v985_v54 = vadd.f32 %v6347_v41, %v8635_v5  ;;  %v5349_v41 = vld [vmem:[%s5526_s23 + $0x70] sm:$0xff]  }
 0x14f   : > { %v1399_v28 = vpop.f32.mrf.mxu1  ;;  %v4896_v51 = vpop.f32.mrf.mxu0  ;;  %v988_v62 = vadd.f32 %v6361_v6, %v8637_v45 }
 0x150   : > { %v6494_v61 = vadd.f32 %v1399_v28, %v6352_v20  ;;  %v6497_v0 = vadd.f32 %v4896_v51, %v6328_v34  ;;  %v8636_v34 = vld [vmem:[#allocation11_spill] sm:$0xff]  ;;  %v980_v28 = vadd.f32 %v6370_v8, %v8638_v25 }
 0x151   : > { %v4918_v42 = vpop.f32.mrf.mxu1  ;;  %v1235_v30 = vpop.f32.mrf.mxu0  ;;  %v977_v22 = vadd.f32 %v6355_v40, %v8636_v34 }
 0x152   : > { %v6504_v24 = vadd.f32 %v4918_v42, %v6358_v58  ;;  %v6507_v20 = vadd.f32 %v1235_v30, %v6340_v60  ;;  %v2831_v58 = vrot.slane %v5349_v41, 3  ;;  %v5350_v60 = vld [vmem:[%s5526_s23 + $0x78] sm:$0xff]  }
 0x153   : > { %v1402_v27 = vpop.f32.mrf.mxu1  ;;  %v4899_v23 = vpop.f32.mrf.mxu0  ;;  %5114 = vmatmul.mubr.msk.bf16.gmra.mxu0 %vm555_vm2, %v2828_v2  ;;  %v2833_v59 = vrot.slane %v5350_v60, 3  ;;  %v8641_v60 = vld [vmem:[#allocation17_spill] sm:$0xff] }
 0x154   : > { %v6513_v44 = vadd.f32 %v1402_v27, %v6365_v35  ;;  %v6515_v15 = vadd.f32 %v4899_v23, %v985_v54  ;;  %5117 = vmatprep.mubr.msk.bf16.mxu0 %vm555_vm2, %v2830_v53  ;;  %v2832_v42 = vsel %vm2807_vm7, %v2829_v36, %v2831_v58  ;;  %v8639_v53 = vld [vmem:[#allocation14_spill] sm:$0xff]  ;;  %v8640_v23 = vld [vmem:[#allocation16_spill] sm:$0xff]  ;;  %v1004_v45 = vadd.f32 %v6397_v52, %v8641_v60 }
 0x155   : > { %v4921_v63 = vpop.f32.mrf.mxu1  ;;  %v1248_v43 = vpop.f32.mrf.mxu0  ;;  %v1001_v5 = vadd.f32 %v6381_v55, %v8639_v53  ;;  %v993_v36 = vadd.f32 %v6389_v17, %v8640_v23  ;;  %v5351_v55 = vld [vmem:[%s5526_s23 + $0x80] sm:$0xff]   ;;  %v2841_v23 = vrot.slane %v6247_v10, 3 }
 0x156   : > { %v6523_v32 = vadd.f32 %v4921_v63, %v6377_v33  ;;  %v6525_v40 = vadd.f32 %v1248_v43, %v977_v22  ;;  %v2834_v33 = vsel %vm2807_vm7, %v2831_v58, %v2833_v59  ;;  %v2835_v41 = vrot.slane %v5351_v55, 3  ;;  %v5352_v63 = vld [vmem:[%s5526_s23 + $0x88] sm:$0xff]  }
 0x157   : > { %v1415_v35 = vpop.f32.mrf.mxu1  ;;  %v4900_v21 = vpop.f32.mrf.mxu0  ;;  %v2837_v43 = vrot.slane %v5352_v63, 3 }
 0x158   : > { %v6530_v51 = vadd.f32 %v1415_v35, %v6386_v29  ;;  %v6532_v2 = vadd.f32 %v4900_v21, %v988_v62 }
 0x159   : > { %v4922_v30 = vpop.f32.mrf.mxu1  ;;  %v1251_v6 = vpop.f32.mrf.mxu0  ;;  %v2838_v52 = vsel %vm2807_vm7, %v2835_v41, %v2837_v43 }
 0x15a   : > { %v6539_v54 = vadd.f32 %v4922_v30, %v6394_v46  ;;  %v6541_v8 = vadd.f32 %v1251_v6, %v980_v28  ;;  %v2836_v28 = vsel %vm2807_vm7, %v2833_v59, %v2835_v41  ;;  %v5353_v59 = vld [vmem:[%s5526_s23 + $0x90] sm:$0xff]  }
 0x15b   : > { %v1418_v29 = vpop.f32.mrf.mxu1  ;;  %v4903_v27 = vpop.f32.mrf.mxu0  ;;  %5118 = vmatmul.mubr.msk.bf16.gmra.mxu0 %vm555_vm2, %v2832_v42 }
 0x15c   : > { %v6547_v34 = vadd.f32 %v1418_v29, %v6405_v38  ;;  %v6549_v22 = vadd.f32 %v4903_v27, %v1001_v5  ;;  %5121 = vmatprep.mubr.msk.bf16.mxu0 %vm555_vm2, %v2834_v33  ;;  %v2839_v5 = vrot.slane %v5353_v59, 3 }
 0x15d   : > { %v4925_v46 = vpop.f32.mrf.mxu1  ;;  %v1264_v58 = vpop.f32.mrf.mxu0 }
 0x15e   : > { %v6557_v62 = vadd.f32 %v4925_v46, %v6413_v37  ;;  %v6559_v17 = vadd.f32 %v1264_v58, %v993_v36  ;;  %v2840_v58 = vsel %vm2807_vm7, %v2837_v43, %v2839_v5 }
 0x15f   : > { %v1431_v38 = vpop.f32.mrf.mxu1  ;;  %v4904_v35 = vpop.f32.mrf.mxu0 }
 0x160   : > { %v6562_v21 = vadd.f32 %v1431_v38, %v6423_v18  ;;  %v6564_v25 = vadd.f32 %v4904_v35, %v1004_v45 }
 0x161   : > { %v4926_v42 = vpop.f32.mrf.mxu1  ;;  %v6567_v30 = vpop.f32.mrf.mxu0 }
 0x162   : > { %v6571_v37 = vadd.f32 %v4926_v42, %v6432_v31 }
 0x163   : > { %v1434_v6 = vpop.f32.mrf.mxu1  ;;  %v4947_v33 = vpop.f32.mrf.mxu0  ;;  %5122 = vmatmul.mubr.msk.bf16.gmra.mxu0 %vm555_vm2, %v2836_v28 }
 0x164   : > { %v6575_v53 = vadd.f32 %v1434_v6, %v6441_v56  ;;  %v6578_v18 = vadd.f32 %v4947_v33, %v6420_v4  ;;  %5125 = vmatprep.mubr.msk.bf16.mxu0 %vm555_vm2, %v2838_v52  ;;  %v1511_v4 = vadd.f32 %v6443_v57, %v6292_v1  ;;  %v2843_v57 = vrot.slane %v6282_v49, 3 }
 0x165   : > { %v4929_v29 = vpop.f32.mrf.mxu1  ;;  %v1724_v27 = vpop.f32.mrf.mxu0 }
 0x166   : > { %v6584_v31 = vadd.f32 %v4929_v29, %v6448_v19  ;;  %v6587_v36 = vadd.f32 %v1724_v27, %v6429_v9  ;;  %v2842_v19 = vsel %vm2807_vm7, %v2839_v5, %v2841_v23  ;;  %v2844_v52 = vsel %vm2807_vm7, %v2841_v23, %v2843_v57 }
 0x167   : > { %v1447_v55 = vpop.f32.mrf.mxu1  ;;  %v4948_v56 = vpop.f32.mrf.mxu0 }
 0x168   : > { %v6592_v41 = vadd.f32 %v1447_v55, %v6458_v12  ;;  %v6595_v46 = vadd.f32 %v4948_v56, %v6438_v13 }
 0x169   : > { %v4930_v10 = vpop.f32.mrf.mxu1  ;;  %v1727_v63 = vpop.f32.mrf.mxu0 }
 0x16a   : > { %v6600_v9 = vadd.f32 %v4930_v10, %v6465_v3  ;;  %v6602_v60 = vadd.f32 %v1727_v63, %v1511_v4 }
 0x16b   : > { %v1450_v45 = vpop.f32.mrf.mxu1  ;;  %v4951_v38 = vpop.f32.mrf.mxu0  ;;  %5126 = vmatmul.mubr.msk.bf16.gmra.mxu0 %vm555_vm2, %v2840_v58 }
 0x16c   : > { %v6606_v1 = vadd.f32 %v1450_v45, %v6473_v14  ;;  %v6609_v13 = vadd.f32 %v4951_v38, %v6455_v39  ;;  %5129 = vmatprep.mubr.msk.bf16.mxu0 %vm555_vm2, %v2842_v19 }
 0x16d   : > { %v4933_v12 = vpop.f32.mrf.mxu1  ;;  %v1740_v43 = vpop.f32.mrf.mxu0 }
 0x16e   : > { %v6614_v3 = vadd.f32 %v4933_v12, %v6481_v50  ;;  %v6617_v35 = vadd.f32 %v1740_v43, %v6462_v48  ;;  %v8642_v12 = vld [vmem:[#allocation18_spill] sm:$0xff] }
 0x16f   : > { %v1463_v28 = vpop.f32.mrf.mxu1  ;;  %v4952_v42 = vpop.f32.mrf.mxu0  ;;  %v996_v43 = vadd.f32 %v6408_v16, %v8642_v12 }
 0x170   : > { %v6620_v14 = vadd.f32 %v1463_v28, %v6491_v26  ;;  %v6623_v39 = vadd.f32 %v4952_v42, %v6470_v11 }
 0x171   : > { %v4934_v6 = vpop.f32.mrf.mxu1  ;;  %v1743_v49 = vpop.f32.mrf.mxu0 }
 0x172   : > { %v6627_v33 = vadd.f32 %v4934_v6, %v6497_v0  ;;  %v6630_v50 = vadd.f32 %v1743_v49, %v6478_v47 }
 0x173   : > { %v1466_v48 = vpop.f32.mrf.mxu1  ;;  %v4955_v59 = vpop.f32.mrf.mxu0  ;;  %5130 = vmatmul.mubr.msk.bf16.gmra.mxu0 %vm555_vm2, %v2844_v52 }
 0x174   : > { %v6634_v26 = vadd.f32 %v1466_v48, %v6507_v20  ;;  %v6637_v11 = vadd.f32 %v4955_v59, %v6488_v7  ;;  %v3194_v7 = vlaneseq }
 0x175   : > { %v4937_v5 = vpop.f32.mrf.mxu1  ;;  %v1756_v29 = vpop.f32.mrf.mxu0 }
 0x176   : > { %v6640_v27 = vadd.f32 %v4937_v5, %v6515_v15  ;;  %v6643_v0 = vadd.f32 %v1756_v29, %v6494_v61  ;;  %v6663_v45 = vshrl.u32 %v3194_v7, 7 }
 0x177   : > { %v1479_v47 = vpop.f32.mrf.mxu1  ;;  %v4956_v23 = vpop.f32.mrf.mxu0 }
 0x178   : > { %v6646_v55 = vadd.f32 %v1479_v47, %v6525_v40  ;;  %v6649_v56 = vadd.f32 %v4956_v23, %v6504_v24  ;;  %v3197_v52 = vadd.s32 16, %v6663_v45 }
 0x179   : > { %v4938_v20 = vpop.f32.mrf.mxu1  ;;  %v1759_v4 = vpop.f32.mrf.mxu0 }
 0x17a   : > { %v6652_v58 = vadd.f32 %v4938_v20, %v6532_v2  ;;  %v6655_v15 = vadd.f32 %v1759_v4, %v6513_v44  ;;  %v6692_v5 = vadd.s32 19, %v3197_v52 }
 0x17b   : > { %v1482_v10 = vpop.f32.mrf.mxu1  ;;  %v4959_v61 = vpop.f32.mrf.mxu0 }
 0x17c   : > { %v6658_v63 = vadd.f32 %v1482_v10, %v6541_v8  ;;  %v6661_v40 = vadd.f32 %v4959_v61, %v6523_v32  ;;  %v6707_v4 = vmul.u32.u64.low 3817748708, %v6692_v5  ;;  %v6708_v7 = vmul.u32.u64.high 3817748708, %v6692_v5, %v6707_v4 }
 0x17d   : > { %v4941_v19 = vpop.f32.mrf.mxu1  ;;  %v1772_v24 = vpop.f32.mrf.mxu0  ;;  %v3199_v4 = vadd.s32 32, %v6663_v45 }
 0x17e   : > { %v6666_v38 = vadd.f32 %v4941_v19, %v6549_v22  ;;  %v6669_v2 = vadd.f32 %v1772_v24, %v6530_v51  ;;  %v1312_v22 = vadd.f32 %v6567_v30, %v996_v43 }
 0x17f   : > { %v1495_v44 = vpop.f32.mrf.mxu1  ;;  %v4960_v57 = vpop.f32.mrf.mxu0 }
 0x180   : > { %v6674_v8 = vadd.f32 %v1495_v44, %v6559_v17  ;;  %v6677_v32 = vadd.f32 %v4960_v57, %v6539_v54 }
 0x181   : > { %v4942_v28 = vpop.f32.mrf.mxu1  ;;  %v1775_v42 = vpop.f32.mrf.mxu0 }
 0x182   : > { %v6682_v51 = vadd.f32 %v4942_v28, %v6564_v25  ;;  %v6685_v6 = vadd.f32 %v1775_v42, %v6547_v34  ;;  %v3196_v28 = vadd.s32 8, %v6663_v45 }
 0x183   : > { %v1498_v49 = vpop.f32.mrf.mxu1  ;;  %v4963_v16 = vpop.f32.mrf.mxu0 }
 0x184   : > { %v6687_v48 = vadd.f32 %v1498_v49, %v1312_v22  ;;  %v6690_v17 = vadd.f32 %v4963_v16, %v6557_v62 }
 0x185   : > { %v4985_v54 = vpop.f32.mrf.mxu1  ;;  %v1788_v59 = vpop.f32.mrf.mxu0 }
 0x186   : > { %v6695_v29 = vadd.f32 %v4985_v54, %v6578_v18  ;;  %v6698_v25 = vadd.f32 %v1788_v59, %v6562_v21  ;;  %v6711_v18 = vadd.s32 19, %v6663_v45  ;;  %v3295_v54 = vshrl.u32 %v6708_v7, 4 }
 0x187   : > { %v2034_v30 = vpop.f32.mrf.mxu1  ;;  %v4964_v34 = vpop.f32.mrf.mxu0 }
 0x188   : > { %v6701_v47 = vadd.f32 %v2034_v30, %v6587_v36  ;;  %v6704_v23 = vadd.f32 %v4964_v34, %v6571_v37  ;;  %v3198_v37 = vadd.s32 24, %v6663_v45  ;;  %v6753_v30 = vadd.s32 19, %v3196_v28 }
 0x189   : > { %v4986_v62 = vpop.f32.mrf.mxu1  ;;  %v1791_v20 = vpop.f32.mrf.mxu0  ;;  %v6727_v12 = vmul.u32.u64.low 3817748708, %v6711_v18  ;;  %v6728_v43 = vmul.u32.u64.high 3817748708, %v6711_v18, %v6727_v12 }
 0x18a   : > { %v6714_v21 = vadd.f32 %v4986_v62, %v6595_v46  ;;  %v6717_v10 = vadd.f32 %v1791_v20, %v6575_v53  ;;  %v6737_v52 = vadd.s32 19, %v3198_v37 }
 0x18b   : > { %v2037_v36 = vpop.f32.mrf.mxu1  ;;  %v4967_v61 = vpop.f32.mrf.mxu0  ;;  %v3273_v37 = vshrl.u32 %v6728_v43, 4 }
 0x18c   : > { %v6721_v19 = vadd.f32 %v2037_v36, %v6602_v60  ;;  %v6724_v24 = vadd.f32 %v4967_v61, %v6584_v31  ;;  %v3201_v31 = vadd.s32 48, %v6663_v45  ;;  %v3296_v61 = vmul.u32 18, %v3295_v54 }
 0x18d   : > { %v4989_v44 = vpop.f32.mrf.mxu1  ;;  %v1804_v57 = vpop.f32.mrf.mxu0  ;;  %v3274_v54 = vmul.u32 18, %v3273_v37 }
 0x18e   : > { %v6731_v46 = vadd.f32 %v4989_v44, %v6609_v13  ;;  %v6734_v53 = vadd.f32 %v1804_v57, %v6592_v41  ;;  %v3202_v44 = vadd.s32 56, %v6663_v45 }
 0x18f   : > { %v2050_v42 = vpop.f32.mrf.mxu1  ;;  %v4968_v60 = vpop.f32.mrf.mxu0 }
 0x190   : > { %v6741_v22 = vadd.f32 %v2050_v42, %v6617_v35  ;;  %v6744_v49 = vadd.f32 %v4968_v60, %v6600_v9  ;;  %v6756_v35 = vmul.u32.u64.low 3817748708, %v6737_v52  ;;  %v6757_v20 = vmul.u32.u64.high 3817748708, %v6737_v52, %v6756_v35 }
 0x191   : > { %v4990_v16 = vpop.f32.mrf.mxu1  ;;  %v1807_v13 = vpop.f32.mrf.mxu0  ;;  %v6759_v9 = vadd.s32 19, %v3201_v31 }
 0x192   : > { %v6748_v41 = vadd.f32 %v4990_v16, %v6623_v39  ;;  %v6751_v59 = vadd.f32 %v1807_v13, %v6606_v1  ;;  %v6784_v16 = vadd.s32 19, %v3199_v4  ;;  %v6801_v4 = vsub.s32 %v6692_v5, %v3296_v61 }
 0x193   : > { %v2053_v34 = vpop.f32.mrf.mxu1  ;;  %v4971_v62 = vpop.f32.mrf.mxu0  ;;  %v6781_v60 = vmul.u32.u64.low 3817748708, %v6759_v9  ;;  %v6782_v31 = vmul.u32.u64.high 3817748708, %v6759_v9, %v6781_v60  ;;  %v3275_v5 = vsub.s32 %v6711_v18, %v3274_v54  ;;  %v5321_v18 = vld [vmem:[%s8554_s3 + $0x38] sm:$0xff]  }
 0x194   : > { %v6763_v7 = vadd.f32 %v2053_v34, %v6630_v50  ;;  %v6766_v39 = vadd.f32 %v4971_v62, %v6614_v3  ;;  %v6777_v28 = vmul.u32.u64.low 3817748708, %v6753_v30  ;;  %v6778_v50 = vmul.u32.u64.high 3817748708, %v6753_v30, %v6777_v28 }
 0x195   : > { %v4993_v1 = vpop.f32.mrf.mxu1  ;;  %v1820_v36 = vpop.f32.mrf.mxu0  ;;  %v6792_v34 = vadd.s32 19, %v3202_v44  ;;  %vm3665_vm8 = vcmp.ne.s32.totalorder %v6801_v4, 0  ;;  %vm3701_vm9 = vcmp.lt.s32.totalorder %v6801_v4, 0  ;;  %v3773_v54 = vadd.s32 18, %v6801_v4 }
 0x196   : > { %v6771_v57 = vadd.f32 %v4993_v1, %v6637_v11  ;;  %v6774_v12 = vadd.f32 %v1820_v36, %v6620_v14  ;;  %v3306_v36 = vshrl.u32 %v6757_v20, 4  ;;  %v3205_v20 = vadd.s32 80, %v6663_v45  ;;  %vm6860_vm12 = vmand %vm3701_vm9, %vm3665_vm8 }
 0x197   : > { %v2066_v42 = vpop.f32.mrf.mxu1  ;;  %v4972_v3 = vpop.f32.mrf.mxu0  ;;  %vm3663_vm10 = vcmp.ne.s32.totalorder %v3275_v5, 0  ;;  %vm3699_vm11 = vcmp.lt.s32.totalorder %v3275_v5, 0 }
 0x198   : > { %v6787_v43 = vadd.f32 %v2066_v42, %v6643_v0  ;;  %v6790_v11 = vadd.f32 %v4972_v3, %v6627_v33  ;;  %v6805_v33 = vmul.u32.u64.low 3817748708, %v6784_v16  ;;  %v6806_v28 = vmul.u32.u64.high 3817748708, %v6784_v16, %v6805_v33  ;;  %vm3735_vm13 = vmand %vm3699_vm11, %vm3663_vm10 }
 0x199   : > { %v4994_v14 = vpop.f32.mrf.mxu1  ;;  %v1823_v13 = vpop.f32.mrf.mxu0  ;;  %v6817_v61 = vmul.u32.u64.low 3817748708, %v6792_v34  ;;  %v6818_v3 = vmul.u32.u64.high 3817748708, %v6792_v34, %v6817_v61 }
 0x19a   : > { %v6795_v62 = vadd.f32 %v4994_v14, %v6649_v56  ;;  %v6798_v35 = vadd.f32 %v1823_v13, %v6634_v26  ;;  %v3200_v26 = vadd.s32 40, %v6663_v45  ;;  %v3203_v61 = vadd.s32 64, %v6663_v45 }
 0x19b   : > { %v2069_v1 = vpop.f32.mrf.mxu1  ;;  %v4975_v0 = vpop.f32.mrf.mxu0 }
 0x19c   : > { %v6809_v37 = vadd.f32 %v2069_v1, %v6655_v15  ;;  %v6812_v56 = vadd.f32 %v4975_v0, %v6640_v27  ;;  %v3284_v27 = vshrl.u32 %v6778_v50, 4  ;;  %v3307_v1 = vmul.u32 18, %v3306_v36 }
 0x19d   : > { %v4997_v44 = vpop.f32.mrf.mxu1  ;;  %v1836_v42 = vpop.f32.mrf.mxu0  ;;  %v6841_v50 = vadd.s32 19, %v3200_v26  ;;  %v5322_v26 = vld [vmem:[%s8554_s3 + $0x30] sm:$0xff]  }
 0x19e   : > { %v6822_v60 = vadd.f32 %v4997_v44, %v6661_v40  ;;  %v6825_v15 = vadd.f32 %v1836_v42, %v6646_v55  ;;  %v3339_v40 = vshrl.u32 %v6782_v31, 4  ;;  %v6843_v42 = vadd.s32 19, %v3205_v20 }
 0x19f   : > { %v2082_v14 = vpop.f32.mrf.mxu1  ;;  %v4976_v13 = vpop.f32.mrf.mxu0  ;;  %v3285_v36 = vmul.u32 18, %v3284_v27  ;;  %v3317_v27 = vshrl.u32 %v6806_v28, 4  ;;  %v3350_v28 = vshrl.u32 %v6818_v3, 4 }
 0x1a0   : > { %8643 = vst [vmem:[#allocation5_spill] sm:$0xff] %v6822_v60  ;;  %v6836_v55 = vadd.f32 %v2082_v14, %v6669_v2  ;;  %v6839_v0 = vadd.f32 %v4976_v13, %v6652_v58  ;;  %v8576_v60 = vmov 0.0   ;;  %v3771_v58 = vadd.s32 18, %v3275_v5 }
 0x1a1   : > { %v4998_v33 = vpop.f32.mrf.mxu1  ;;  %v1839_v44 = vpop.f32.mrf.mxu0  ;;  %5133 = vmatprep.subr.bf16.mxu1 %v8576_v60 }
 0x1a2   : > { %8644 = vst [vmem:[#allocation7_spill] sm:$0xff] %v6836_v55  ;;  %v6848_v31 = vadd.f32 %v4998_v33, %v6677_v32  ;;  %v6851_v2 = vadd.f32 %v1839_v44, %v6658_v63  ;;  %5134 = vmatpush3.bf16.msra.mxu1 %v5321_v18  ;;  %v3308_v63 = vsub.s32 %v6737_v52, %v3307_v1  ;;  %v3340_v32 = vmul.u32 18, %v3339_v40 }
 0x1a3   : > { %v2085_v20 = vpop.f32.mrf.mxu1  ;;  %v4979_v14 = vpop.f32.mrf.mxu0  ;;  %v3206_v18 = vadd.s32 88, %v6663_v45  ;;  %5135 = vmatprep.subr.bf16.mxu1 %v8576_v60  ;;  %v6882_v40 = vmul.u32.u64.low 3817748708, %v6843_v42  ;;  %v6883_v60 = vmul.u32.u64.high 3817748708, %v6843_v42, %v6882_v40 }
 0x1a4   : > { %8645 = vst [vmem:[#allocation6_spill] sm:$0xff] %v6848_v31  ;;  %v6869_v33 = vadd.f32 %v2085_v20, %v6685_v6  ;;  %v6872_v44 = vadd.f32 %v4979_v14, %v6666_v38  ;;  %v6877_v31 = vmul.u32.u64.low 3817748708, %v6841_v50  ;;  %v6878_v55 = vmul.u32.u64.high 3817748708, %v6841_v50, %v6877_v31 }
 0x1a5   : > { %v5001_v52 = vpop.f32.mrf.mxu1  ;;  %v1852_v1 = vpop.f32.mrf.mxu0  ;;  %v6885_v6 = vadd.s32 19, %v3203_v61  ;;  %v6896_v31 = vsel %vm6860_vm12, %v3773_v54, %v6801_v4  ;;  %v6899_v14 = vsub.s32 %v6753_v30, %v3285_v36  ;;  %v6901_v40 = vsel %vm3735_vm13, %v3771_v58, %v3275_v5 }
 0x1a6   : > { %8648 = vst [vmem:[#allocation9_spill] sm:$0xff] %v6869_v33  ;;  %v6888_v38 = vadd.f32 %v5001_v52, %v6690_v17  ;;  %v6891_v20 = vadd.f32 %v1852_v1, %v6674_v8  ;;  %8649 = vst [vmem:[#allocation8_spill] sm:$0xff] %v6896_v31  ;;  %5136 = vmatpush3.bf16.msra.mxu1 %v5322_v26  ;;  %vm3666_vm14 = vcmp.ne.s32.totalorder %v3308_v63, 0  ;;  %v3204_v8 = vadd.s32 72, %v6663_v45 }
 0x1a7   : > { %v2098_v3 = vpop.f32.mrf.mxu1  ;;  %v4980_v33 = vpop.f32.mrf.mxu0  ;;  %8650 = vst [vmem:[#allocation15_spill] sm:$0xff] %v6901_v40  ;;  %v6904_v17 = vsub.s32 %v6759_v9, %v3340_v32  ;;  %v8651_v61 = vmov 0.0   ;;  %vm3702_vm15 = vcmp.lt.s32.totalorder %v3308_v63, 0  ;;  %v3318_v30 = vmul.u32 18, %v3317_v27 }
 0x1a8   : > { %5137 = vmatprep.subr.bf16.mxu1 %v8651_v61  ;;  %v6909_v13 = vadd.f32 %v2098_v3, %v6698_v25  ;;  %v6912_v4 = vadd.f32 %v4980_v33, %v6682_v51  ;;  %v3351_v5 = vmul.u32 18, %v3350_v28  ;;  %v6918_v9 = vadd.s32 19, %v3206_v18  ;;  %vm6929_vm1 = vmand %vm3702_vm15, %vm3666_vm14  ;;  %v5323_v3 = vld [vmem:[%s8554_s3 + $0x28] sm:$0xff]  }
 0x1a9   : > { %v5002_v54 = vpop.f32.mrf.mxu1  ;;  %v1855_v36 = vpop.f32.mrf.mxu0  ;;  %v6915_v58 = vmul.u32.u64.low 3817748708, %v6885_v6  ;;  %v6916_v26 = vmul.u32.u64.high 3817748708, %v6885_v6, %v6915_v58  ;;  %v3774_v52 = vadd.s32 18, %v3308_v63  ;;  %vm3664_vm0 = vcmp.ne.s32.totalorder %v6899_v14, 0 }
 0x1aa   : > { %v6921_v32 = vadd.f32 %v5002_v54, %v6704_v23  ;;  %v6924_v25 = vadd.f32 %v1855_v36, %v6687_v48  ;;  %vm3700_vm2 = vcmp.lt.s32.totalorder %v6899_v14, 0  ;;  %vm3669_vm3 = vcmp.ne.s32.totalorder %v6904_v17, 0  ;;  %5138 = vmatpush3.bf16.msra.mxu1 %v5323_v3 }
 0x1ab   : > { %v2101_v51 = vpop.f32.mrf.mxu1  ;;  %v5023_v27 = vpop.f32.mrf.mxu0  ;;  %vm3705_vm4 = vcmp.lt.s32.totalorder %v6904_v17, 0  ;;  %v6936_v23 = vadd.s32 19, %v3204_v8  ;;  %v6945_v1 = vsub.s32 %v6784_v16, %v3318_v30  ;;  %v3328_v28 = vshrl.u32 %v6878_v55, 4  ;;  %vm6974_vm6 = vmand %vm3700_vm2, %vm3664_vm0  ;;  %5139 = vmatprep.subr.bf16.mxu1 %v8651_v61 }
 0x1ac   : > { %v6939_v48 = vadd.f32 %v2101_v51, %v6717_v10  ;;  %v6942_v18 = vadd.f32 %v5023_v27, %v6695_v29  ;;  %v6952_v8 = vsub.s32 %v6792_v34, %v3351_v5  ;;  %v3383_v10 = vshrl.u32 %v6883_v60, 4  ;;  %vm6995_vm7 = vmand %vm3705_vm4, %vm3669_vm3 }
 0x1ad   : > { %v5005_v54 = vpop.f32.mrf.mxu1  ;;  %v2268_v36 = vpop.f32.mrf.mxu0  ;;  %v6956_v58 = vmul.u32.u64.low 3817748708, %v6918_v9  ;;  %v6957_v29 = vmul.u32.u64.high 3817748708, %v6918_v9, %v6956_v58  ;;  %v6967_v30 = vsel %vm6929_vm1, %v3774_v52, %v3308_v63  ;;  %v3209_v51 = vadd.s32 112, %v6663_v45 }
 0x1ae   : > { %v6960_v16 = vadd.f32 %v5005_v54, %v6724_v24  ;;  %v6963_v55 = vadd.f32 %v2268_v36, %v6701_v47  ;;  %8654 = vst [vmem:[#allocation10_spill] sm:$0xff] %v6967_v30  ;;  %v3772_v47 = vadd.s32 18, %v6899_v14  ;;  %v3777_v24 = vadd.s32 18, %v6904_v17 }
 0x1af   : > { %v2114_v34 = vpop.f32.mrf.mxu1  ;;  %v5024_v5 = vpop.f32.mrf.mxu0  ;;  %v6981_v63 = vmul.u32.u64.low 3817748708, %v6936_v23  ;;  %v6982_v52 = vmul.u32.u64.high 3817748708, %v6936_v23, %v6981_v63  ;;  %vm3667_vm8 = vcmp.ne.s32.totalorder %v6945_v1, 0  ;;  %v3329_v54 = vmul.u32 18, %v3328_v28 }
 0x1b0   : > { %v6986_v27 = vadd.f32 %v2114_v34, %v6734_v53  ;;  %v6989_v33 = vadd.f32 %v5024_v5, %v6714_v21  ;;  %vm3703_vm9 = vcmp.lt.s32.totalorder %v6945_v1, 0  ;;  %vm3670_vm10 = vcmp.ne.s32.totalorder %v6952_v8, 0 }
 0x1b1   : > { %v5006_v36 = vpop.f32.mrf.mxu1  ;;  %v2271_v58 = vpop.f32.mrf.mxu0  ;;  %v3384_v53 = vmul.u32 18, %v3383_v10  ;;  %v3361_v21 = vshrl.u32 %v6916_v26, 4  ;;  %vm3706_vm11 = vcmp.lt.s32.totalorder %v6952_v8, 0  ;;  %v7010_v63 = vadd.s32 19, %v3209_v51  ;;  %vm7034_vm12 = vmand %vm3703_vm9, %vm3667_vm8 }
 0x1b2   : > { %v7004_v34 = vadd.f32 %v5006_v36, %v6744_v49  ;;  %v7007_v5 = vadd.f32 %v2271_v58, %v6721_v19  ;;  %v7015_v31 = vsel %vm6974_vm6, %v3772_v47, %v6899_v14  ;;  %v7020_v26 = vsel %vm6995_vm7, %v3777_v24, %v6904_v17  ;;  %vm7049_vm13 = vmand %vm3706_vm11, %vm3670_vm10 }
 0x1b3   : > { %v2117_v28 = vpop.f32.mrf.mxu1  ;;  %v5027_v30 = vpop.f32.mrf.mxu0  ;;  %8659 = vst [vmem:[#allocation11_spill] sm:$0xff] %v7015_v31  ;;  %8660 = vst [vmem:[#allocation12_spill] sm:$0xff] %v7020_v26  ;;  %v3775_v49 = vadd.s32 18, %v6945_v1  ;;  %v3207_v19 = vadd.s32 96, %v6663_v45  ;;  %v3778_v17 = vadd.s32 18, %v6952_v8  ;;  %v7040_v60 = vsub.s32 %v6841_v50, %v3329_v54 }
 0x1b4   : > { %v7025_v10 = vadd.f32 %v2117_v28, %v6751_v59  ;;  %v7028_v51 = vadd.f32 %v5027_v30, %v6731_v46  ;;  %v5324_v59 = vld [vmem:[%s8554_s3 + $0x20] sm:$0xff]   ;;  %v7054_v24 = vsub.s32 %v6843_v42, %v3384_v53  ;;  %v3362_v3 = vmul.u32 18, %v3361_v21 }
 0x1b5   : > { %v5009_v47 = vpop.f32.mrf.mxu1  ;;  %v2284_v46 = vpop.f32.mrf.mxu0  ;;  %v3394_v50 = vshrl.u32 %v6957_v29, 4  ;;  %v3210_v54 = vadd.s32 120, %v6663_v45  ;;  %v7065_v28 = vmul.u32.u64.low 3817748708, %v7010_v63  ;;  %v7066_v26 = vmul.u32.u64.high 3817748708, %v7010_v63, %v7065_v28  ;;  %5140 = vmatpush3.bf16.msra.mxu1 %v5324_v59 }
 0x1b6   : > { %8661 = vst [vmem:[#allocation13_spill] sm:$0xff] %v7028_v51  ;;  %v7059_v36 = vadd.f32 %v5009_v47, %v6766_v39  ;;  %v7062_v58 = vadd.f32 %v2284_v46, %v6741_v22  ;;  %v7071_v42 = vsel %vm7034_vm12, %v3775_v49, %v6945_v1  ;;  %v3372_v29 = vshrl.u32 %v6982_v52, 4  ;;  %5141 = vmatprep.subr.bf16.mxu1 %v8651_v61 }
 0x1b7   : > { %v2130_v31 = vpop.f32.mrf.mxu1  ;;  %v5028_v40 = vpop.f32.mrf.mxu0  ;;  %8667 = vst [vmem:[#allocation16_spill] sm:$0xff] %v7071_v42  ;;  %v7074_v53 = vadd.s32 19, %v3207_v19  ;;  %v3208_v39 = vadd.s32 104, %v6663_v45  ;;  %v7087_v14 = vsel %vm7049_vm13, %v3778_v17, %v6952_v8  ;;  %vm3668_vm14 = vcmp.ne.s32.totalorder %v7040_v60, 0 }
 0x1b8   : > { %8666 = vst [vmem:[#allocation14_spill] sm:$0xff] %v7062_v58  ;;  %v7079_v22 = vadd.f32 %v2130_v31, %v6774_v12  ;;  %v7082_v21 = vadd.f32 %v5028_v40, %v6748_v41  ;;  %8669 = vst [vmem:[#allocation18_spill] sm:$0xff] %v7087_v14  ;;  %vm3704_vm15 = vcmp.lt.s32.totalorder %v7040_v60, 0  ;;  %v7092_v49 = vadd.s32 18, %v7040_v60  ;;  %v8694_v14 = vld [vmem:[#allocation9_spill] sm:$0xff] }
 0x1b9   : > { %v5010_v1 = vpop.f32.mrf.mxu1  ;;  %v2287_v52 = vpop.f32.mrf.mxu0  ;;  %v3395_v19 = vmul.u32 18, %v3394_v50  ;;  %v7094_v12 = vadd.s32 19, %v3210_v54  ;;  %vm3673_vm0 = vcmp.ne.s32.totalorder %v7054_v24, 0  ;;  %v7104_v40 = vsub.s32 %v6885_v6, %v3362_v3  ;;  %v5325_v3 = vld [vmem:[%s8554_s3 + $0x18] sm:$0xff]   ;;  %vm7170_vm7 = vmand %vm3704_vm15, %vm3668_vm14 }
 0x1ba   : > { %8668 = vst [vmem:[#allocation17_spill] sm:$0xff] %v7082_v21  ;;  %v7097_v41 = vadd.f32 %v5010_v1, %v6790_v11  ;;  %v7100_v31 = vadd.f32 %v2287_v52, %v6763_v7  ;;  %v3373_v59 = vmul.u32 18, %v3372_v29  ;;  %v7110_v30 = vadd.s32 19, %v3208_v39  ;;  %5142 = vmatpush3.bf16.msra.mxu1 %v5325_v3 }
 0x1bb   : > { %v2133_v8 = vpop.f32.mrf.mxu1  ;;  %v5031_v17 = vpop.f32.mrf.mxu0  ;;  %v7107_v47 = vmul.u32.u64.low 3817748708, %v7074_v53  ;;  %v7108_v46 = vmul.u32.u64.high 3817748708, %v7074_v53, %v7107_v47  ;;  %vm3709_vm1 = vcmp.lt.s32.totalorder %v7054_v24, 0  ;;  %v3213_v6 = vadd.s32 144, %v6663_v45  ;;  %5143 = vmatprep.subr.bf16.mxu1 %v8651_v61 }
 0x1bc   : > { %8670 = vst [vmem:[#allocation19_spill] sm:$0xff] %v7100_v31  ;;  %v7113_v11 = vadd.f32 %v2133_v8, %v6798_v35  ;;  %v7116_v7 = vadd.f32 %v5031_v17, %v6771_v57  ;;  %v7124_v28 = vsub.s32 %v6918_v9, %v3395_v19  ;;  %v3211_v57 = vadd.s32 128, %v6663_v45  ;;  %vm7179_vm8 = vmand %vm3709_vm1, %vm3673_vm0 }
 0x1bd   : > { %v5013_v50 = vpop.f32.mrf.mxu1  ;;  %v2300_v54 = vpop.f32.mrf.mxu0  ;;  %v7127_v29 = vmul.u32.u64.low 3817748708, %v7094_v12  ;;  %v7128_v35 = vmul.u32.u64.high 3817748708, %v7094_v12, %v7127_v29  ;;  %v3781_v52 = vadd.s32 18, %v7054_v24  ;;  %v3427_v8 = vshrl.u32 %v7066_v26, 4 }
 0x1be   : > { %8671 = vst [vmem:[#allocation20_spill] sm:$0xff] %v7116_v7  ;;  %v7132_v39 = vadd.f32 %v5013_v50, %v6812_v56  ;;  %v7135_v1 = vadd.f32 %v2300_v54, %v6787_v43  ;;  %vm3671_vm2 = vcmp.ne.s32.totalorder %v7104_v40, 0  ;;  %v3374_v19 = vsub.s32 %v6936_v23, %v3373_v59 }
 0x1bf   : > { %v2146_v17 = vpop.f32.mrf.mxu1  ;;  %v5032_v9 = vpop.f32.mrf.mxu0  ;;  %v7142_v47 = vmul.u32.u64.low 3817748708, %v7110_v30  ;;  %v7143_v29 = vmul.u32.u64.high 3817748708, %v7110_v30, %v7142_v47  ;;  %vm3707_vm3 = vcmp.lt.s32.totalorder %v7104_v40, 0  ;;  %v7153_v26 = vadd.s32 19, %v3213_v6 }
 0x1c0   : > { %8672 = vst [vmem:[#allocation21_spill] sm:$0xff] %v7135_v1  ;;  %v7147_v43 = vadd.f32 %v2146_v17, %v6825_v15  ;;  %v7150_v56 = vadd.f32 %v5032_v9, %v6795_v62  ;;  %v3779_v23 = vadd.s32 18, %v7104_v40  ;;  %vm3674_vm4 = vcmp.ne.s32.totalorder %v7124_v28, 0  ;;  %vm7195_vm11 = vmand %vm3707_vm3, %vm3671_vm2 }
 0x1c1   : > { %v5014_v3 = vpop.f32.mrf.mxu1  ;;  %v2303_v50 = vpop.f32.mrf.mxu0  ;;  %vm3710_vm6 = vcmp.lt.s32.totalorder %v7124_v28, 0  ;;  %v7158_v59 = vadd.s32 19, %v3211_v57  ;;  %v3782_v54 = vadd.s32 18, %v7124_v28  ;;  %v3428_v17 = vmul.u32 18, %v3427_v8  ;;  %v8679_v8 = vld [vmem:[#allocation5_spill] sm:$0xff] }
 0x1c2   : > { %8673 = vst [vmem:[#allocation22_spill] sm:$0xff] %v7150_v56  ;;  %v7161_v15 = vadd.f32 %v5014_v3, %v6839_v0  ;;  %v7164_v62 = vadd.f32 %v2303_v50, %v6809_v37  ;;  %vm3672_vm9 = vcmp.ne.s32.totalorder %v3374_v19, 0  ;;  %vm3708_vm10 = vcmp.lt.s32.totalorder %v3374_v19, 0  ;;  %vm7207_vm12 = vmand %vm3710_vm6, %vm3674_vm4 }
 0x1c3   : > { %v2149_v9 = vpop.f32.mrf.mxu1  ;;  %v5035_v57 = vpop.f32.mrf.mxu0  ;;  %v3405_v0 = vshrl.u32 %v7108_v46, 4  ;;  %v3214_v47 = vadd.s32 152, %v6663_v45  ;;  %vm7224_vm13 = vmand %vm3708_vm10, %vm3672_vm9  ;;  %v7229_v21 = vsub.s32 %v7010_v63, %v3428_v17  ;;  %v8689_v63 = vld [vmem:[#allocation6_spill] sm:$0xff] }
 0x1c4   : > { %8674 = vst [vmem:[#allocation23_spill] sm:$0xff] %v7164_v62  ;;  %v7186_v3 = vadd.f32 %v2149_v9, %v6851_v2  ;;  %v7189_v50 = vadd.f32 %v5035_v57, %v8679_v8  ;;  %v7200_v62 = vmul.u32.u64.low 3817748708, %v7153_v26  ;;  %v7201_v42 = vmul.u32.u64.high 3817748708, %v7153_v26, %v7200_v62  ;;  %v5326_v2 = vld [vmem:[%s8554_s3 + $0x10] sm:$0xff]  }
 0x1c5   : > { %v5017_v46 = vpop.f32.mrf.mxu1  ;;  %v2316_v56 = vpop.f32.mrf.mxu0  ;;  %v3780_v9 = vadd.s32 18, %v3374_v19  ;;  %v3438_v57 = vshrl.u32 %v7128_v35, 4  ;;  %v8685_v62 = vld [vmem:[#allocation7_spill] sm:$0xff]  ;;  %v3212_v35 = vadd.s32 136, %v6663_v45  ;;  %vm3677_vm14 = vcmp.ne.s32.totalorder %v7229_v21, 0  ;;  %5144 = vmatpush3.bf16.msra.mxu1 %v5326_v2 }
 0x1c6   : > { %8680 = vst [vmem:[#allocation5_spill] sm:$0xff] %v7189_v50  ;;  %v7213_v8 = vmul.u32.u64.low 3817748708, %v7158_v59  ;;  %v7214_v50 = vmul.u32.u64.high 3817748708, %v7158_v59, %v7213_v8  ;;  %v7217_v1 = vadd.f32 %v5017_v46, %v6872_v44  ;;  %v7220_v7 = vadd.f32 %v2316_v56, %v8685_v62  ;;  %5145 = vmatprep.subr.bf16.mxu1 %v8651_v61 }
 0x1c7   : > { %v2162_v58 = vpop.f32.mrf.mxu1  ;;  %v5036_v51 = vpop.f32.mrf.mxu0  ;;  %v7236_v44 = vsel %vm7170_vm7, %v7092_v49, %v7040_v60  ;;  %v3406_v56 = vmul.u32 18, %v3405_v0  ;;  %v3416_v46 = vshrl.u32 %v7143_v29, 4  ;;  %v7239_v8 = vadd.s32 19, %v3214_v47 }
 0x1c8   : > { %8686 = vst [vmem:[#allocation7_spill] sm:$0xff] %v7220_v7  ;;  %v7242_v62 = vadd.f32 %v2162_v58, %v6891_v20  ;;  %v7245_v17 = vadd.f32 %v5036_v51, %v8689_v63  ;;  %v7250_v7 = vsel %vm7179_vm8, %v3781_v52, %v7054_v24  ;;  %v7255_v60 = vsel %vm7195_vm11, %v3779_v23, %v7104_v40 }
 0x1c9   : > { %8690 = vst [vmem:[#allocation6_spill] sm:$0xff] %v7250_v7  ;;  %8691 = vst [vmem:[#allocation24_spill] sm:$0xff] %v7255_v60  ;;  %v5018_v49 = vpop.f32.mrf.mxu1  ;;  %v2319_v29 = vpop.f32.mrf.mxu0  ;;  %v7260_v20 = vsel %vm7207_vm12, %v3782_v54, %v7124_v28  ;;  %v7264_v51 = vsel %vm7224_vm13, %v3780_v9, %v3374_v19  ;;  %v3439_v58 = vmul.u32 18, %v3438_v57  ;;  %v3217_v24 = vadd.s32 176, %v6663_v45 }
 0x1ca   : > { %8692 = vst [vmem:[#allocation25_spill] sm:$0xff] %v7260_v20  ;;  %8693 = vst [vmem:[#allocation26_spill] sm:$0xff] %v7264_v51  ;;  %v7268_v52 = vadd.f32 %v5018_v49, %v6912_v4  ;;  %v7271_v40 = vadd.f32 %v2319_v29, %v8694_v14  ;;  %v7274_v23 = vadd.s32 19, %v3212_v35  ;;  %v3407_v54 = vsub.s32 %v7074_v53, %v3406_v56 }
 0x1cb   : > { %v2165_v6 = vpop.f32.mrf.mxu1  ;;  %v5039_v28 = vpop.f32.mrf.mxu0  ;;  %v3417_v31 = vmul.u32 18, %v3416_v46  ;;  %v7278_v19 = vmul.u32.u64.low 3817748708, %v7239_v8  ;;  %v7279_v37 = vmul.u32.u64.high 3817748708, %v7239_v8, %v7278_v19  ;;  %vm3713_vm15 = vcmp.lt.s32.totalorder %v7229_v21, 0 }
 0x1cc   : > { %v7282_v0 = vadd.f32 %v2165_v6, %v6924_v25  ;;  %v7285_v4 = vadd.f32 %v5039_v28, %v6888_v38  ;;  %v3215_v47 = vadd.s32 160, %v6663_v45  ;;  %v3785_v57 = vadd.s32 18, %v7229_v21  ;;  %v5327_v6 = vld [vmem:[%s8554_s3 + $0x8] sm:$0xff]   ;;  %vm7327_vm2 = vmand %vm3713_vm15, %vm3677_vm14 }
 0x1cd   : > { %v7292_v53 = vpop.f32.mrf.mxu1  ;;  %v2332_v9 = vpop.f32.mrf.mxu0  ;;  %v3440_v35 = vsub.s32 %v7094_v12, %v3439_v58  ;;  %v3471_v25 = vshrl.u32 %v7201_v42, 4  ;;  %v7297_v56 = vadd.s32 19, %v3217_v24  ;;  %v3449_v46 = vshrl.u32 %v7214_v50, 4  ;;  %5146 = vmatpush3.bf16.msra.mxu1 %v5327_v6 }
 0x1ce   : > { %v7300_v38 = vadd.f32 %v2332_v9, %v6909_v13  ;;  %v7304_v63 = vmul.u32.u64.low 3817748708, %v7274_v23  ;;  %v7305_v49 = vmul.u32.u64.high 3817748708, %v7274_v23, %v7304_v63  ;;  %vm3675_vm0 = vcmp.ne.s32.totalorder %v3407_v54, 0  ;;  %5147 = vmatprep.subr.bf16.mxu1 %v8651_v61 }
 0x1cf   : > { %v7307_v29 = vpop.f32.mrf.mxu1  ;;  %v5040_v14 = vpop.f32.mrf.mxu0  ;;  %vm3711_vm1 = vcmp.lt.s32.totalorder %v3407_v54, 0  ;;  %v3418_v12 = vsub.s32 %v7110_v30, %v3417_v31  ;;  %v3218_v42 = vadd.s32 184, %v6663_v45  ;;  %v3783_v50 = vadd.s32 18, %v3407_v54 }
 0x1d0   : > { %8695 = vst [vmem:[#allocation9_spill] sm:$0xff] %v7300_v38  ;;  %v7313_v13 = vadd.f32 %v5040_v14, %v6921_v32  ;;  %v7315_v58 = vadd.s32 19, %v3215_v47  ;;  %v3216_v24 = vadd.s32 168, %v6663_v45  ;;  %vm3678_vm3 = vcmp.ne.s32.totalorder %v3440_v35, 0  ;;  %vm7340_vm6 = vmand %vm3711_vm1, %vm3675_vm0 }
 0x1d1   : > { %v7321_v28 = vpop.f32.mrf.mxu1  ;;  %v2335_v19 = vpop.f32.mrf.mxu0  ;;  %vm3714_vm4 = vcmp.lt.s32.totalorder %v3440_v35, 0  ;;  %v7332_v32 = vmul.u32.u64.low 3817748708, %v7297_v56  ;;  %v7333_v31 = vmul.u32.u64.high 3817748708, %v7297_v56, %v7332_v32  ;;  %v3786_v9 = vadd.s32 18, %v3440_v35 }
 0x1d2   : > { %8696 = vst [vmem:[#allocation27_spill] sm:$0xff] %v7313_v13  ;;  %v7336_v47 = vadd.f32 %v2335_v19, %v6939_v48  ;;  %v3472_v63 = vmul.u32 18, %v3471_v25  ;;  %v3450_v14 = vmul.u32 18, %v3449_v46  ;;  %vm3676_vm7 = vcmp.ne.s32.totalorder %v3418_v12, 0  ;;  %vm7355_vm9 = vmand %vm3714_vm4, %vm3678_vm3 }
 0x1d3   : > { %v7344_v13 = vpop.f32.mrf.mxu1  ;;  %v5043_v38 = vpop.f32.mrf.mxu0  ;;  %vm3712_vm8 = vcmp.lt.s32.totalorder %v3418_v12, 0  ;;  %v3482_v32 = vshrl.u32 %v7279_v37, 4  ;;  %v7347_v20 = vadd.s32 19, %v3218_v42  ;;  %v7363_v19 = vadd.s32 19, %v3216_v24  ;;  %v5328_v37 = vld [vmem:[%s8554_s3] sm:$0xff]  }
 0x1d4   : > { %8699 = vst [vmem:[#allocation28_spill] sm:$0xff] %v7336_v47  ;;  %v7351_v48 = vadd.f32 %v5043_v38, %v6960_v16  ;;  %v7360_v46 = vmul.u32.u64.low 3817748708, %v7315_v58  ;;  %v7361_v6 = vmul.u32.u64.high 3817748708, %v7315_v58, %v7360_v46  ;;  %v7373_v38 = vsel %vm7327_vm2, %v3785_v57, %v7229_v21  ;;  %vm7385_vm10 = vmand %vm3712_vm8, %vm3676_vm7  ;;  %5148 = vmatpush3.bf16.msra.mxu1 %v5328_v37 }
 0x1d5   : > { %v7368_v42 = vpop.f32.mrf.mxu1  ;;  %v2348_v16 = vpop.f32.mrf.mxu0  ;;  %8705 = vst [vmem:[#allocation30_spill] sm:$0xff] %v7373_v38  ;;  %v3784_v47 = vadd.s32 18, %v3418_v12  ;;  %v3221_v24 = vadd.s32 208, %v6663_v45  ;;  %v7390_v30 = vsub.s32 %v7153_v26, %v3472_v63  ;;  %v7393_v21 = vsub.s32 %v7158_v59, %v3450_v14  ;;  %5153 = vmatprep.subr.bf16.mxu1 %v8651_v61 }
 0x1d6   : > { %8702 = vst [vmem:[#allocation29_spill] sm:$0xff] %v7351_v48  ;;  %v7377_v48 = vsel %vm7340_vm6, %v3783_v50, %v3407_v54  ;;  %v7381_v46 = vadd.f32 %v2348_v16, %v6986_v27  ;;  %v3460_v54 = vshrl.u32 %v7305_v49, 4  ;;  %v7400_v27 = vsel %vm7355_vm9, %v3786_v9, %v3440_v35 }
 0x1d7   : > { %8706 = vst [vmem:[#allocation31_spill] sm:$0xff] %v7377_v48  ;;  %v7396_v57 = vpop.f32.mrf.mxu1  ;;  %v5044_v50 = vpop.f32.mrf.mxu0  ;;  %8710 = vst [vmem:[#allocation33_spill] sm:$0xff] %v7400_v27  ;;  %v7403_v2 = vmul.u32.u64.low 3817748708, %v7347_v20  ;;  %v7404_v16 = vmul.u32.u64.high 3817748708, %v7347_v20, %v7403_v2  ;;  %v3219_v26 = vadd.s32 192, %v6663_v45  ;;  %v3483_v49 = vmul.u32 18, %v3482_v32 }
 0x1d8   : > { %8707 = vst [vmem:[#allocation32_spill] sm:$0xff] %v7381_v46  ;;  %v7409_v59 = vadd.f32 %v5044_v50, %v7004_v34  ;;  %v7412_v63 = vmul.u32.u64.low 3817748708, %v7363_v19  ;;  %v7413_v14 = vmul.u32.u64.high 3817748708, %v7363_v19, %v7412_v63  ;;  %v7419_v9 = vsel %vm7385_vm10, %v3784_v47, %v3418_v12 }
 0x1d9   : > { %v7415_v37 = vpop.f32.mrf.mxu1  ;;  %v2351_v35 = vpop.f32.mrf.mxu0  ;;  %8712 = vst [vmem:[#allocation35_spill] sm:$0xff] %v7419_v9  ;;  %v3515_v25 = vshrl.u32 %v7333_v31, 4  ;;  %v7422_v2 = vadd.s32 19, %v3221_v24  ;;  %v3222_v46 = vadd.s32 216, %v6663_v45  ;;  %vm3681_vm11 = vcmp.ne.s32.totalorder %v7390_v30, 0 }
 0x1da   : > { %8711 = vst [vmem:[#allocation34_spill] sm:$0xff] %v7409_v59  ;;  %v7426_v34 = vadd.f32 %v2351_v35, %v7025_v10  ;;  %vm3717_vm12 = vcmp.lt.s32.totalorder %v7390_v30, 0  ;;  %v3461_v32 = vmul.u32 18, %v3460_v54  ;;  %v3789_v7 = vadd.s32 18, %v7390_v30 }
 0x1db   : > { %v7430_v50 = vpop.f32.mrf.mxu1  ;;  %v5047_v63 = vpop.f32.mrf.mxu0  ;;  %vm3679_vm13 = vcmp.ne.s32.totalorder %v7393_v21, 0  ;;  %v7434_v12 = vadd.s32 19, %v3219_v26  ;;  %v3220_v31 = vadd.s32 200, %v6663_v45  ;;  %vm3715_vm14 = vcmp.lt.s32.totalorder %v7393_v21, 0  ;;  %vm7476_vm1 = vmand %vm3717_vm12, %vm3681_vm11 }
 0x1dc   : > { %8713 = vst [vmem:[#allocation36_spill] sm:$0xff] %v7426_v34  ;;  %v7438_v47 = vadd.f32 %v5047_v63, %v7059_v36  ;;  %v3484_v10 = vsub.s32 %v7239_v8, %v3483_v49  ;;  %v3493_v24 = vshrl.u32 %v7361_v6, 4  ;;  %v3516_v34 = vmul.u32 18, %v3515_v25  ;;  %vm7496_vm4 = vmand %vm3715_vm14, %vm3679_vm13 }
 0x1dd   : > { %v7443_v54 = vpop.f32.mrf.mxu1  ;;  %v2364_v35 = vpop.f32.mrf.mxu0  ;;  %v7446_v59 = vmul.u32.u64.low 3817748708, %v7422_v2  ;;  %v7447_v27 = vmul.u32.u64.high 3817748708, %v7422_v2, %v7446_v59  ;;  %v7449_v26 = vadd.s32 19, %v3222_v46  ;;  %v3787_v36 = vadd.s32 18, %v7393_v21 }
 0x1de   : > { %8714 = vst [vmem:[#allocation37_spill] sm:$0xff] %v7438_v47  ;;  %v7452_v38 = vadd.f32 %v2364_v35, %v7079_v22  ;;  %v3462_v63 = vsub.s32 %v7274_v23, %v3461_v32  ;;  %v3225_v8 = vadd.s32 240, %v6663_v45  ;;  %v3526_v25 = vshrl.u32 %v7404_v16, 4 }
 0x1df   : > { %v7457_v6 = vpop.f32.mrf.mxu1  ;;  %v5048_v49 = vpop.f32.mrf.mxu0  ;;  %v7461_v47 = vmul.u32.u64.low 3817748708, %v7434_v12  ;;  %v7462_v9 = vmul.u32.u64.high 3817748708, %v7434_v12, %v7461_v47  ;;  %v7464_v46 = vadd.s32 19, %v3220_v31  ;;  %vm3682_vm15 = vcmp.ne.s32.totalorder %v3484_v10, 0 }
 0x1e0   : > { %8715 = vst [vmem:[#allocation38_spill] sm:$0xff] %v7452_v38  ;;  %v7467_v22 = vadd.f32 %v5048_v49, %v7097_v41  ;;  %vm3718_vm0 = vcmp.lt.s32.totalorder %v3484_v10, 0  ;;  %v3504_v23 = vshrl.u32 %v7413_v14, 4  ;;  %v3517_v31 = vsub.s32 %v7297_v56, %v3516_v34 }
 0x1e1   : > { %v7470_v59 = vpop.f32.mrf.mxu1  ;;  %v2367_v32 = vpop.f32.mrf.mxu0  ;;  %v3494_v47 = vmul.u32 18, %v3493_v24  ;;  %v7482_v41 = vmul.u32.u64.low 3817748708, %v7449_v26  ;;  %v7483_v35 = vmul.u32.u64.high 3817748708, %v7449_v26, %v7482_v41  ;;  %vm3680_vm2 = vcmp.ne.s32.totalorder %v3462_v63, 0  ;;  %vm7514_vm6 = vmand %vm3718_vm0, %vm3682_vm15 }
 0x1e2   : > { %8716 = vst [vmem:[#allocation39_spill] sm:$0xff] %v7467_v22  ;;  %v7486_v14 = vadd.f32 %v2367_v32, %v7113_v11  ;;  %vm3716_vm3 = vcmp.lt.s32.totalorder %v3462_v63, 0  ;;  %v7488_v49 = vadd.s32 19, %v3225_v8  ;;  %v3790_v34 = vadd.s32 18, %v3484_v10 }
 0x1e3   : > { %v7490_v22 = vpop.f32.mrf.mxu1  ;;  %v5051_v38 = vpop.f32.mrf.mxu0  ;;  %v3527_v24 = vmul.u32 18, %v3526_v25  ;;  %v7501_v11 = vmul.u32.u64.low 3817748708, %v7464_v46  ;;  %v7502_v32 = vmul.u32.u64.high 3817748708, %v7464_v46, %v7501_v11  ;;  %v7510_v41 = vsel %vm7476_vm1, %v3789_v7, %v7390_v30  ;;  %vm7522_vm7 = vmand %vm3716_vm3, %vm3680_vm2 }
 0x1e4   : > { %8719 = vst [vmem:[#allocation40_spill] sm:$0xff] %v7486_v14  ;;  %v7505_v8 = vadd.f32 %v5051_v38, %v7132_v39  ;;  %8723 = vst [vmem:[#allocation42_spill] sm:$0xff] %v7510_v41  ;;  %v3788_v48 = vadd.s32 18, %v3462_v63  ;;  %v3505_v25 = vmul.u32 18, %v3504_v23  ;;  %vm3685_vm8 = vcmp.ne.s32.totalorder %v3517_v31, 0 }
 0x1e5   : > { %v7518_v51 = vpop.f32.mrf.mxu1  ;;  %v2380_v60 = vpop.f32.mrf.mxu0  ;;  %vm3721_vm9 = vcmp.lt.s32.totalorder %v3517_v31, 0  ;;  %v3495_v38 = vsub.s32 %v7315_v58, %v3494_v47  ;;  %v3559_v30 = vshrl.u32 %v7447_v27, 4  ;;  %v3223_v11 = vadd.s32 224, %v6663_v45 }
 0x1e6   : > { %8722 = vst [vmem:[#allocation41_spill] sm:$0xff] %v7505_v8  ;;  %v7529_v7 = vadd.f32 %v2380_v60, %v7147_v43  ;;  %v7532_v23 = vmul.u32.u64.low 3817748708, %v7488_v49  ;;  %v7533_v16 = vmul.u32.u64.high 3817748708, %v7488_v49, %v7532_v23  ;;  %v7541_v61 = vsel %vm7496_vm4, %v3787_v36, %v7393_v21  ;;  %vm7563_vm10 = vmand %vm3721_vm9, %vm3685_vm8 }
 0x1e7   : > { %v7536_v8 = vpop.f32.mrf.mxu1  ;;  %v5052_v41 = vpop.f32.mrf.mxu0  ;;  %v7545_v58 = vsel %vm7514_vm6, %v3790_v34, %v3484_v10  ;;  %v3528_v43 = vsub.s32 %v7347_v20, %v3527_v24  ;;  %v3537_v60 = vshrl.u32 %v7462_v9, 4  ;;  %v7554_v47 = vsel %vm7522_vm7, %v3788_v48, %v3462_v63 }
 0x1e8   : > { %v7550_v27 = vadd.f32 %v5052_v41, %v7161_v15  ;;  %v3793_v23 = vadd.s32 18, %v3517_v31  ;;  %v7557_v56 = vsub.s32 %v7363_v19, %v3505_v25  ;;  %vm3683_vm11 = vcmp.ne.s32.totalorder %v3495_v38, 0 }
 0x1e9   : > { %v7559_v21 = vpop.f32.mrf.mxu1  ;;  %v2383_v36 = vpop.f32.mrf.mxu0  ;;  %vm3719_vm12 = vcmp.lt.s32.totalorder %v3495_v38, 0  ;;  %v3560_v15 = vmul.u32 18, %v3559_v30  ;;  %v3570_v9 = vshrl.u32 %v7483_v35, 4  ;;  %v7570_v48 = vadd.f32 %v7292_v53, %v6942_v18 }
 0x1ea   : > { %8728 = vst [vmem:[#allocation43_spill] sm:$0xff] %v7550_v27  ;;  %v7573_v19 = vadd.f32 %v2383_v36, %v7186_v3  ;;  %v3791_v10 = vadd.s32 18, %v3495_v38  ;;  %v7575_v63 = vadd.s32 19, %v3223_v11  ;;  %vm3686_vm13 = vcmp.ne.s32.totalorder %v3528_v43, 0  ;;  %vm7589_vm15 = vmand %vm3719_vm12, %vm3683_vm11  ;;  %v8745_v11 = vld [vmem:[#allocation11_spill] sm:$0xff]  ;;  %v8772_v27 = vld [vmem:[#allocation18_spill] sm:$0xff] }
 0x1eb   : > { %v7577_v14 = vpop.f32.mrf.mxu1  ;;  %v5055_v34 = vpop.f32.mrf.mxu0  ;;  %vm3722_vm14 = vcmp.lt.s32.totalorder %v3528_v43, 0  ;;  %v3538_v24 = vmul.u32 18, %v3537_v60  ;;  %v3548_v41 = vshrl.u32 %v7502_v32, 4  ;;  %v7585_v18 = vsel %vm7563_vm10, %v3793_v23, %v3517_v31 }
 0x1ec   : > { %8731 = vst [vmem:[#allocation44_spill] sm:$0xff] %v7573_v19  ;;  %v7581_v35 = vadd.f32 %v5055_v34, %v7217_v1  ;;  %v3794_v53 = vadd.s32 18, %v3528_v43  ;;  %vm3684_vm0 = vcmp.ne.s32.totalorder %v7557_v56, 0  ;;  %vm3720_vm1 = vcmp.lt.s32.totalorder %v7557_v56, 0  ;;  %vm7606_vm2 = vmand %vm3722_vm14, %vm3686_vm13 }
 0x1ed   : > { %v7594_v25 = vpop.f32.mrf.mxu1  ;;  %v2396_v39 = vpop.f32.mrf.mxu0  ;;  %v7598_v1 = vsub.s32 %v7422_v2, %v3560_v15  ;;  %v3571_v32 = vmul.u32 18, %v3570_v9  ;;  %v3226_v31 = vadd.s32 248, %v6663_v45  ;;  %v3603_v60 = vshrl.u32 %v7533_v16, 4  ;;  %vm7652_vm6 = vmand %vm3720_vm1, %vm3684_vm0 }
 0x1ee   : > { %8732 = vst [vmem:[#allocation45_spill] sm:$0xff] %v7581_v35  ;;  %v7602_v30 = vadd.f32 %v2396_v39, %v7242_v62  ;;  %v7612_v23 = vmul.u32.u64.low 3817748708, %v7575_v63  ;;  %v7613_v36 = vmul.u32.u64.high 3817748708, %v7575_v63, %v7612_v23  ;;  %v2769_v2 = vadd.f32 %v7307_v29, %v6963_v55 }
 0x1ef   : > { %v7617_v20 = vpop.f32.mrf.mxu1  ;;  %v5056_v15 = vpop.f32.mrf.mxu0  ;;  %v7621_v62 = vsel %vm7589_vm15, %v3791_v10, %v3495_v38  ;;  %v7624_v9 = vsub.s32 %v7434_v12, %v3538_v24  ;;  %v3549_v34 = vmul.u32 18, %v3548_v41  ;;  %v2772_v16 = vadd.f32 %v7321_v28, %v6989_v33  ;;  %v8739_v23 = vld [vmem:[#allocation13_spill] sm:$0xff]  ;;  %v8740_v24 = vld [vmem:[#allocation15_spill] sm:$0xff] }
 0x1f0   : > { %8735 = vst [vmem:[#allocation46_spill] sm:$0xff] %v7602_v30  ;;  %v7630_v39 = vadd.f32 %v7344_v13, %v7007_v5  ;;  %v7633_v55 = vadd.f32 %v5056_v15, %v7268_v52  ;;  %v3792_v29 = vadd.s32 18, %v7557_v56  ;;  %v7638_v38 = vadd.f32 %v7368_v42, %v8739_v23  ;;  %v8747_v15 = vld [vmem:[#allocation8_spill] sm:$0xff] }
 0x1f1   : > { %v7640_v10 = vpop.f32.mrf.mxu1  ;;  %v2399_v12 = vpop.f32.mrf.mxu0  ;;  %vm3843_vm3 = vcmp.ge.s32.totalorder %v8740_v24, 1  ;;  %vm3879_vm4 = vcmp.le.s32.totalorder %v8740_v24, 16  ;;  %v7646_v33 = vsel %vm7606_vm2, %v3794_v53, %v3528_v43  ;;  %v7657_v52 = vsub.s32 %v7449_v26, %v3571_v32  ;;  %v8744_v43 = vld [vmem:[#allocation14_spill] sm:$0xff]  ;;  %v8746_v26 = vld [vmem:[#allocation17_spill] sm:$0xff] }
 0x1f2   : > { %8738 = vst [vmem:[#allocation47_spill] sm:$0xff] %v7633_v55  ;;  %v7659_v13 = vadd.s32 19, %v3226_v31  ;;  %v7662_v28 = vadd.f32 %v2399_v12, %v7282_v0  ;;  %vm3689_vm7 = vcmp.ne.s32.totalorder %v7598_v1, 0  ;;  %vm3725_vm8 = vcmp.lt.s32.totalorder %v7598_v1, 0  ;;  %v7745_v55 = vld [vmem:[%s8553_s2] ss:$0 sm:$0xff] }
 0x1f3   : > { %v3604_v42 = vmul.u32 18, %v3603_v60  ;;  %v7668_v41 = vadd.f32 %v7396_v57, %v8744_v43  ;;  %v7670_v3 = vpop.f32.mrf.mxu1  ;;  %v5099_v53 = vpop.f32.mrf.mxu0  ;;  %vm3844_vm9 = vcmp.ge.s32.totalorder %v8745_v11, 1  ;;  %vm3880_vm10 = vcmp.le.s32.totalorder %v8745_v11, 16  ;;  %vm7696_vm15 = vmand %vm3725_vm8, %vm3689_vm7  ;;  %v8780_v24 = vld [vmem:[#allocation26_spill] sm:$0xff] }
 0x1f4   : > { %8743 = vst [vmem:[#allocation13_spill] sm:$0xff] %v7662_v28  ;;  %vm3687_vm11 = vcmp.ne.s32.totalorder %v7624_v9, 0  ;;  %vm3723_vm12 = vcmp.lt.s32.totalorder %v7624_v9, 0  ;;  %v7677_v0 = vsub.s32 %v7464_v46, %v3549_v34  ;;  %v7681_v32 = vadd.f32 %v7415_v37, %v8746_v26  ;;  %v8750_v34 = vld [vmem:[#allocation19_spill] sm:$0xff] }
 0x1f5   : > { %v7686_v57 = vsel %vm7652_vm6, %v3792_v29, %v7557_v56  ;;  %v3797_v31 = vadd.s32 18, %v7598_v1  ;;  %v3795_v60 = vadd.s32 18, %v7624_v9  ;;  %vm3845_vm13 = vcmp.ge.s32.totalorder %v8747_v15, 1  ;;  %v2936_v23 = vpop.f32.mrf.mxu0  ;;  %vm7714_vm2 = vmand %vm3723_vm12, %vm3687_vm11  ;;  %v7722_v28 = vpop.f32.mrf.mxu1  ;;  %v8760_v37 = vld [vmem:[#allocation23_spill] sm:$0xff] }
 0x1f6   : > { %vm3881_vm14 = vcmp.le.s32.totalorder %v8747_v15, 16  ;;  %vm3690_vm0 = vcmp.ne.s32.totalorder %v7657_v52, 0  ;;  %vm3726_vm1 = vcmp.lt.s32.totalorder %v7657_v52, 0  ;;  %v7708_v29 = vadd.f32 %v7430_v50, %v8750_v34  ;;  %v8753_v34 = vld [vmem:[#allocation10_spill] sm:$0xff] }
 0x1f7   : > { %v7703_v46 = vmul.u32.u64.low 3817748708, %v7659_v13  ;;  %v7704_v56 = vmul.u32.u64.high 3817748708, %v7659_v13, %v7703_v46  ;;  %v3079_v12 = vadd.f32 %v2936_v23, %v2769_v2  ;;  %v7719_v43 = vsub.s32 %v7488_v49, %v3604_v42  ;;  %v5100_v50 = vpop.f32.mrf.mxu0  ;;  %v8754_v23 = vld [vmem:[#allocation20_spill] sm:$0xff]  ;;  %vm7756_vm12 = vmand %vm3726_vm1, %vm3690_vm0  ;;  %v7788_v5 = vpop.f32.mrf.mxu1 }
 0x1f8   : > { %v3581_v26 = vshrl.u32 %v7613_v36, 4  ;;  %v3081_v46 = vadd.f32 %v5099_v53, %v7570_v48  ;;  %vm3882_vm7 = vcmp.le.s32.totalorder %v8753_v34, 16  ;;  %v3798_v2 = vadd.s32 18, %v7657_v52  ;;  %v8755_v36 = vld [vmem:[#allocation21_spill] sm:$0xff]  ;;  %v8756_v48 = vld [vmem:[#allocation22_spill] sm:$0xff] }
 0x1f9   : > { %vm3688_vm8 = vcmp.ne.s32.totalorder %v7677_v0, 0  ;;  %vm3724_vm11 = vcmp.lt.s32.totalorder %v7677_v0, 0  ;;  %v7732_v49 = vadd.f32 %v7443_v54, %v8754_v23  ;;  %v7736_v42 = vadd.f32 %v7457_v6, %v8755_v36  ;;  %v2939_v23 = vpop.f32.mrf.mxu0  ;;  %v8759_v36 = vld [vmem:[#allocation16_spill] sm:$0xff] }
 0x1fa   : > { %v7740_v53 = vadd.f32 %v7470_v59, %v8756_v48  ;;  %v7750_v30 = vsel %vm7696_vm15, %v3797_v31, %v7598_v1  ;;  %v3122_v6 = vadd.f32 %v7745_v55, %v3079_v12  ;;  %v3082_v59 = vadd.f32 %v5100_v50, %v2772_v16  ;;  %vm7777_vm15 = vmand %vm3724_vm11, %vm3688_vm8 }
 0x1fb   : > { %vm3847_vm5 = vcmp.ge.s32.totalorder %v8759_v36, 1  ;;  %vm3883_vm6 = vcmp.le.s32.totalorder %v8759_v36, 16  ;;  %v7766_v1 = vsel %vm7714_vm2, %v3795_v60, %v7624_v9  ;;  %v3796_v31 = vadd.s32 18, %v7677_v0  ;;  %v8763_v60 = vld [vmem:[#allocation5_spill] sm:$0xff]  ;;  %vm7810_vm11 = vmand %vm3843_vm3, %vm3879_vm4 }
 0x1fc   : > { %v7771_v48 = vadd.f32 %v7490_v22, %v8760_v37  ;;  %vm3693_vm0 = vcmp.ne.s32.totalorder %v7719_v43, 0  ;;  %vm3729_vm1 = vcmp.lt.s32.totalorder %v7719_v43, 0  ;;  %v3582_v9 = vmul.u32 18, %v3581_v26  ;;  %v5103_v37 = vpop.f32.mrf.mxu0  ;;  %v8764_v26 = vld [vmem:[#allocation7_spill] sm:$0xff]  ;;  %vm7841_vm4 = vmand %vm3844_vm9, %vm3880_vm10 }
 0x1fd   : > { %v7785_v12 = vadd.f32 %v7518_v51, %v8763_v60  ;;  %v3124_v22 = vadd.f32 %v7745_v55, %v3081_v46  ;;  %v3080_v50 = vadd.f32 %v2939_v23, %v7630_v39  ;;  %vm3884_vm8 = vcmp.le.s32.totalorder %v7236_v44, 16  ;;  %v8767_v60 = vld [vmem:[#allocation12_spill] sm:$0xff]  ;;  %vm7829_vm3 = vmand %vm3729_vm1, %vm3693_vm0 }
 0x1fe   : > { %v7796_v35 = vsel %vm7756_vm12, %v3798_v2, %v7657_v52  ;;  %v7800_v51 = vadd.f32 %v7536_v8, %v8764_v26  ;;  %v7804_v46 = vadd.f32 %v7559_v21, %v7245_v17  ;;  %v3801_v54 = vadd.s32 18, %v7719_v43  ;;  %v2952_v17 = vpop.f32.mrf.mxu0  ;;  %v7850_v26 = vpop.f32.mrf.mxu1  ;;  %vm7863_vm10 = vmand %vm3845_vm13, %vm3881_vm14 }
 0x1ff   : > { %v3224_v52 = vadd.s32 232, %v6663_v45  ;;  %v3158_v2 = vmax.f32 %v3122_v6, 0.0  ;;  %v3125_v8 = vadd.f32 %v7745_v55, %v3082_v59  ;;  %v3123_v23 = vadd.f32 %v7745_v55, %v3080_v50 }
 0x200   : > { %vm3849_vm12 = vcmp.ge.s32.totalorder %v8767_v60, 1  ;;  %vm3885_vm2 = vcmp.le.s32.totalorder %v8767_v60, 16  ;;  %v7823_v21 = vsel %vm7777_vm15, %v3796_v31, %v7677_v0  ;;  %v7835_v6 = vadd.f32 %v7577_v14, %v7271_v40  ;;  %v5104_v19 = vpop.f32.mrf.mxu0 }
 0x201   : > { %v3083_v0 = vadd.f32 %v2952_v17, %v7668_v41  ;;  %v7847_v31 = vsub.s32 %v7575_v63, %v3582_v9  ;;  %v3614_v16 = vshrl.u32 %v7704_v56, 4  ;;  %v3160_v50 = vmax.f32 %v3124_v22, 0.0  ;;  %v8783_v63 = vld [vmem:[#allocation6_spill] sm:$0xff] }
 0x202   : > { %v3159_v40 = vmax.f32 %v3123_v23, 0.0  ;;  %v3085_v14 = vadd.f32 %v5103_v37, %v7638_v38  ;;  %vm3850_vm15 = vcmp.ge.s32.totalorder %v8772_v27, 1  ;;  %vm3886_vm9 = vcmp.le.s32.totalorder %v8772_v27, 16  ;;  %v2955_v37 = vpop.f32.mrf.mxu0  ;;  %v8776_v23 = vld [vmem:[#allocation24_spill] sm:$0xff] }
 0x203   : > { %v7857_v11 = vadd.f32 %v7594_v25, %v7285_v4  ;;  %v3126_v41 = vadd.f32 %v7745_v55, %v3083_v0  ;;  %v7871_v38 = vsel %vm7829_vm3, %v3801_v54, %v7719_v43  ;;  %v7873_v56 = vadd.s32 19, %v3224_v52  ;;  %v8793_v0 = vld [vmem:[#allocation27_spill] sm:$0xff] }
 0x204   : > { %vm8596_vm0 = vmmov 0   ;;  %v8775_v4 = vmov 0.0   ;;  %v4023_v25 = vsel %vm7810_vm11, %v3158_v2, 0.0  ;;  %v3161_v15 = vmax.f32 %v3125_v8, 0.0  ;;  %v5107_v17 = vpop.f32.mrf.mxu0 }
 0x205   : > { %5149 = vmatprep.mubr.msk.bf16.mxu1 %vm8596_vm0, %v8775_v4  ;;  %v4024_v9 = vsel %vm7841_vm4, %v3159_v40, 0.0  ;;  %v3086_v22 = vadd.f32 %v5104_v19, %v7681_v32  ;;  %vm3851_vm13 = vcmp.ge.s32.totalorder %v8776_v23, 1  ;;  %vm3887_vm14 = vcmp.le.s32.totalorder %v8776_v23, 16  ;;  %v7896_v32 = vpop.f32.mrf.mxu1 }
 0x206   : > { %vm8777_vm1 = vcmp.ge.s32.totalorder %v8753_v34, 1  ;;  %v4059_v39 = vadd.f32 %v4024_v9, %v4023_v25  ;;  %vm3691_vm11 = vcmp.ne.s32.totalorder %v7847_v31, 0  ;;  %v3615_v54 = vmul.u32 18, %v3614_v16  ;;  %v2968_v36 = vpop.f32.mrf.mxu0 }
 0x207   : > { %vm7888_vm3 = vmand %vm8777_vm1, %vm3882_vm7  ;;  %v3229_v52 = vadd.s32 272, %v6663_v45  ;;  %v4025_v19 = vsel %vm7863_vm10, %v3160_v50, 0.0  ;;  %v3128_v2 = vadd.f32 %v7745_v55, %v3085_v14  ;;  %v3162_v8 = vmax.f32 %v3126_v41, 0.0  ;;  %v7935_v43 = vpop.f32.mrf.mxu1 }
 0x208   : > { %v3084_v34 = vadd.f32 %v2955_v37, %v7708_v29  ;;  %vm3888_vm4 = vcmp.le.s32.totalorder %v8780_v24, 16  ;;  %v4060_v59 = vadd.f32 %v4059_v39, %v4025_v19  ;;  %vm7906_vm1 = vmand %vm3847_vm5, %vm3883_vm6  ;;  %vm3727_vm10 = vcmp.lt.s32.totalorder %v7847_v31, 0 }
 0x209   : > { %v7912_v16 = vmul.u32.u64.low 3817748708, %v7873_v56  ;;  %v7913_v50 = vmul.u32.u64.high 3817748708, %v7873_v56, %v7912_v16  ;;  %v4026_v29 = vsel %vm7888_vm3, %v3161_v15, 0.0  ;;  %v3129_v40 = vadd.f32 %v7745_v55, %v3086_v22  ;;  %v7992_v9 = vpop.f32.mrf.mxu1 }
 0x20a   : > { %v3127_v14 = vadd.f32 %v7745_v55, %v3084_v34  ;;  %vm3853_vm0 = vcmp.ge.s32.totalorder %v8783_v63, 1  ;;  %vm3889_vm5 = vcmp.le.s32.totalorder %v8783_v63, 16  ;;  %v3227_v41 = vadd.s32 256, %v6663_v45  ;;  %v8787_v16 = vld [vmem:[#allocation25_spill] sm:$0xff]  ;;  %v8811_v63 = vld [vmem:[#allocation32_spill] sm:$0xff] }
 0x20b   : > { %v4061_v25 = vadd.f32 %v4060_v59, %v4026_v29  ;;  %vm8784_vm6 = vcmp.ge.s32.totalorder %v7236_v44, 1  ;;  %v3087_v15 = vadd.f32 %v2968_v36, %v7736_v42  ;;  %v3799_v22 = vadd.s32 18, %v7847_v31  ;;  %v5108_v59 = vpop.f32.mrf.mxu0  ;;  %v8790_v42 = vld [vmem:[#allocation9_spill] sm:$0xff] }
 0x20c   : > { %vm7926_vm7 = vmand %vm8784_vm6, %vm3884_vm8  ;;  %v7933_v37 = vsub.s32 %v7659_v13, %v3615_v54  ;;  %v3164_v39 = vmax.f32 %v3128_v2, 0.0  ;;  %v4027_v19 = vsel %vm7906_vm1, %v3162_v8, 0.0  ;;  %v3163_v34 = vmax.f32 %v3127_v14, 0.0 }
 0x20d   : > { %v3089_v44 = vadd.f32 %v5107_v17, %v7732_v49  ;;  %vm3854_vm8 = vcmp.ge.s32.totalorder %v8787_v16, 1  ;;  %vm3890_vm3 = vcmp.le.s32.totalorder %v8787_v16, 16  ;;  %vm7946_vm6 = vmand %vm3727_vm10, %vm3691_vm11  ;;  %v7952_v54 = vadd.f32 %v7617_v20, %v8790_v42  ;;  %v2971_v60 = vpop.f32.mrf.mxu0  ;;  %v8794_v42 = vld [vmem:[#allocation31_spill] sm:$0xff]  ;;  %v8800_v49 = vld [vmem:[#allocation30_spill] sm:$0xff] }
 0x20e   : > { %vm7958_vm1 = vmand %vm3849_vm12, %vm3885_vm2  ;;  %v4062_v2 = vadd.f32 %v4061_v25, %v4027_v19  ;;  %v3130_v8 = vadd.f32 %v7745_v55, %v3087_v15  ;;  %v7963_v17 = vadd.s32 19, %v3229_v52  ;;  %v7967_v29 = vadd.f32 %v7640_v10, %v8793_v0 }
 0x20f   : > { %v3165_v14 = vmax.f32 %v3129_v40, 0.0  ;;  %v4028_v20 = vsel %vm7926_vm7, %v3163_v34, 0.0  ;;  %v3090_v36 = vadd.f32 %v5108_v59, %v7740_v53  ;;  %vm3855_vm2 = vcmp.ge.s32.totalorder %v8794_v42, 1  ;;  %vm7978_vm11 = vmand %vm3850_vm15, %vm3886_vm9  ;;  %v5111_v34 = vpop.f32.mrf.mxu0  ;;  %v8797_v59 = vld [vmem:[#allocation35_spill] sm:$0xff] }
 0x210   : > { %vm3891_vm12 = vcmp.le.s32.totalorder %v8794_v42, 16  ;;  %v4063_v10 = vadd.f32 %v4062_v2, %v4028_v20  ;;  %v7985_v40 = vsel %vm7946_vm6, %v3799_v22, %v7847_v31  ;;  %vm3694_vm7 = vcmp.ne.s32.totalorder %v7933_v37, 0  ;;  %vm8002_vm10 = vmand %vm3851_vm13, %vm3887_vm14  ;;  %v8804_v20 = vld [vmem:[#allocation33_spill] sm:$0xff]  ;;  %v8817_v42 = vld [vmem:[#allocation42_spill] sm:$0xff] }
 0x211   : > { %v7988_v53 = vadd.s32 19, %v3227_v41  ;;  %v4029_v25 = vsel %vm7958_vm1, %v3164_v39, 0.0  ;;  %v3132_v27 = vadd.f32 %v7745_v55, %v3089_v44  ;;  %v3166_v15 = vmax.f32 %v3130_v8, 0.0  ;;  %v2984_v23 = vpop.f32.mrf.mxu0 }
 0x212   : > { %v3088_v19 = vadd.f32 %v2971_v60, %v7771_v48  ;;  %vm3892_vm9 = vcmp.le.s32.totalorder %v8797_v59, 16  ;;  %v4064_v31 = vadd.f32 %v4063_v10, %v4029_v25  ;;  %vm3730_vm6 = vcmp.lt.s32.totalorder %v7933_v37, 0 }
 0x213   : > { %v8008_v22 = vmul.u32.u64.low 3817748708, %v7963_v17  ;;  %v8009_v39 = vmul.u32.u64.high 3817748708, %v7963_v17, %v8008_v22  ;;  %v4030_v48 = vsel %vm7978_vm11, %v3165_v14, 0.0  ;;  %v3133_v44 = vadd.f32 %v7745_v55, %v3090_v36 }
 0x214   : > { %v3131_v13 = vadd.f32 %v7745_v55, %v3088_v19  ;;  %vm3893_vm13 = vcmp.le.s32.totalorder %v8800_v49, 16  ;;  %v3592_v2 = vshrl.u32 %v7913_v50, 4  ;;  %v4065_v8 = vadd.f32 %v4064_v31, %v4030_v48  ;;  %v8031_v50 = vpop.f32.mrf.mxu1  ;;  %v5112_v19 = vpop.f32.mrf.mxu0  ;;  %v8807_v31 = vld [vmem:[#allocation28_spill] sm:$0xff] }
 0x215   : > { %vm8801_vm14 = vcmp.ge.s32.totalorder %v8780_v24, 1  ;;  %v3091_v14 = vadd.f32 %v2984_v23, %v7800_v51  ;;  %vm3858_vm11 = vcmp.ge.s32.totalorder %v8804_v20, 1  ;;  %vm3894_vm1 = vcmp.le.s32.totalorder %v8804_v20, 16 }
 0x216   : > { %vm8022_vm15 = vmand %vm8801_vm14, %vm3888_vm4  ;;  %v3802_v36 = vadd.s32 18, %v7933_v37  ;;  %v3230_v60 = vadd.s32 280, %v6663_v45  ;;  %v3168_v52 = vmax.f32 %v3132_v27, 0.0  ;;  %v4031_v24 = vsel %vm8002_vm10, %v3166_v15, 0.0  ;;  %v8808_v27 = vld [vmem:[#allocation29_spill] sm:$0xff]  ;;  %v2987_v23 = vpop.f32.mrf.mxu0 }
 0x217   : > { %v3167_v10 = vmax.f32 %v3131_v13, 0.0  ;;  %v3093_v25 = vadd.f32 %v5111_v34, %v7785_v12  ;;  %vm8040_vm4 = vmand %vm3730_vm6, %vm3694_vm7  ;;  %v8046_v22 = vadd.f32 %v7670_v3, %v8807_v31  ;;  %v8050_v41 = vadd.f32 %v7722_v28, %v8808_v27 }
 0x218   : > { %vm8056_vm10 = vmand %vm3853_vm0, %vm3889_vm5  ;;  %v4066_v15 = vadd.f32 %v4065_v8, %v4031_v24  ;;  %v3134_v34 = vadd.f32 %v7745_v55, %v3091_v14  ;;  %v3169_v48 = vmax.f32 %v3133_v44, 0.0  ;;  %v3094_v13 = vadd.f32 %v5112_v19, %v7804_v46 }
 0x219   : > { %v4032_v3 = vsel %vm8022_vm15, %v3167_v10, 0.0  ;;  %vm3859_vm7 = vcmp.ge.s32.totalorder %v7541_v61, 1  ;;  %vm3895_vm6 = vcmp.le.s32.totalorder %v7541_v61, 16  ;;  %v3593_v28 = vmul.u32 18, %v3592_v2  ;;  %vm8074_vm0 = vmand %vm3854_vm8, %vm3890_vm3  ;;  %v8085_v2 = vpop.f32.mrf.mxu1  ;;  %v5115_v10 = vpop.f32.mrf.mxu0 }
 0x21a   : > { %v8068_v31 = vadd.f32 %v7788_v5, %v8811_v63  ;;  %v4067_v8 = vadd.f32 %v4066_v15, %v4032_v3  ;;  %v8081_v46 = vsel %vm8040_vm4, %v3802_v36, %v7933_v37  ;;  %v8083_v0 = vadd.s32 19, %v3230_v60  ;;  %vm8097_vm3 = vmand %vm3855_vm2, %vm3891_vm12 }
 0x21b   : > { %v4033_v5 = vsel %vm8056_vm10, %v3168_v52, 0.0  ;;  %v3136_v14 = vadd.f32 %v7745_v55, %v3093_v25  ;;  %v3170_v16 = vmax.f32 %v3134_v34, 0.0  ;;  %v3092_v24 = vadd.f32 %v2987_v23, %v7835_v6  ;;  %v8816_v52 = vld [vmem:[#allocation34_spill] sm:$0xff]  ;;  %v3000_v12 = vpop.f32.mrf.mxu0  ;;  %v8129_v3 = vpop.f32.mrf.mxu1 }
 0x21c   : > { %vm3860_vm5 = vcmp.ge.s32.totalorder %v7554_v47, 1  ;;  %vm3896_vm8 = vcmp.le.s32.totalorder %v7554_v47, 16  ;;  %v4068_v19 = vadd.f32 %v4067_v8, %v4033_v5  ;;  %v3137_v36 = vadd.f32 %v7745_v55, %v3094_v13 }
 0x21d   : > { %v3647_v60 = vshrl.u32 %v8009_v39, 4  ;;  %v3228_v6 = vadd.s32 264, %v6663_v45  ;;  %v8106_v25 = vadd.f32 %v7850_v26, %v8816_v52  ;;  %v4034_v51 = vsel %vm8074_vm0, %v3169_v48, 0.0  ;;  %v8169_v37 = vpop.f32.mrf.mxu1 }
 0x21e   : > { %v3135_v27 = vadd.f32 %v7745_v55, %v3092_v24  ;;  %vm3861_vm2 = vcmp.ge.s32.totalorder %v8817_v42, 1  ;;  %vm3897_vm12 = vcmp.le.s32.totalorder %v8817_v42, 16  ;;  %v8114_v15 = vsub.s32 %v7873_v56, %v3593_v28 }
 0x21f   : > { %v4069_v39 = vadd.f32 %v4068_v19, %v4034_v51  ;;  %vm8818_vm15 = vcmp.ge.s32.totalorder %v8797_v59, 1  ;;  %v3095_v26 = vadd.f32 %v3000_v12, %v7952_v54  ;;  %v3172_v13 = vmax.f32 %v3136_v14, 0.0  ;;  %v5116_v59 = vpop.f32.mrf.mxu0  ;;  %v8824_v14 = vld [vmem:[#allocation36_spill] sm:$0xff]  ;;  %v8827_v51 = vld [vmem:[#allocation37_spill] sm:$0xff] }
 0x220   : > { %vm8120_vm14 = vmand %vm8818_vm15, %vm3892_vm9  ;;  %v8126_v34 = vmul.u32.u64.low 3817748708, %v7988_v53  ;;  %v8127_v48 = vmul.u32.u64.high 3817748708, %v7988_v53, %v8126_v34  ;;  %v4035_v56 = vsel %vm8097_vm3, %v3170_v16, 0.0  ;;  %v3171_v23 = vmax.f32 %v3135_v27, 0.0 }
 0x221   : > { %v3097_v28 = vadd.f32 %v5115_v10, %v7857_v11  ;;  %vm3898_vm4 = vcmp.le.s32.totalorder %v7545_v58, 16  ;;  %vm8821_vm10 = vcmp.ge.s32.totalorder %v8800_v49, 1  ;;  %v4070_v63 = vadd.f32 %v4069_v39, %v4035_v56  ;;  %vm8153_vm3 = vmand %vm3858_vm11, %vm3894_vm1  ;;  %v3003_v10 = vpop.f32.mrf.mxu0 }
 0x222   : > { %vm8140_vm0 = vmand %vm8821_vm10, %vm3893_vm13  ;;  %v3173_v44 = vmax.f32 %v3137_v36, 0.0  ;;  %v3138_v8 = vadd.f32 %v7745_v55, %v3095_v26  ;;  %v3648_v5 = vmul.u32 18, %v3647_v60  ;;  %v8147_v11 = vadd.f32 %v7896_v32, %v8824_v14 }
 0x223   : > { %v4036_v49 = vsel %vm8120_vm14, %v3171_v23, 0.0  ;;  %v3098_v24 = vadd.f32 %v5116_v59, %v7967_v29  ;;  %vm3863_vm13 = vcmp.ge.s32.totalorder %v7621_v62, 1  ;;  %vm3899_vm15 = vcmp.le.s32.totalorder %v7621_v62, 16  ;;  %v5119_v52 = vpop.f32.mrf.mxu0  ;;  %vm8185_vm14 = vmand %vm3859_vm7, %vm3895_vm6 }
 0x224   : > { %v8162_v32 = vadd.s32 19, %v3228_v6  ;;  %v4071_v19 = vadd.f32 %v4070_v63, %v4036_v49  ;;  %vm3864_vm10 = vcmp.ge.s32.totalorder %v7686_v57, 1  ;;  %vm3900_vm1 = vcmp.le.s32.totalorder %v7686_v57, 16  ;;  %vm8212_vm6 = vmand %vm3860_vm5, %vm3896_vm8  ;;  %v8221_v63 = vpop.f32.mrf.mxu1 }
 0x225   : > { %vm3692_vm11 = vcmp.ne.s32.totalorder %v8114_v15, 0  ;;  %vm3728_vm9 = vcmp.lt.s32.totalorder %v8114_v15, 0  ;;  %v3800_v20 = vadd.s32 18, %v8114_v15  ;;  %v4037_v29 = vsel %vm8140_vm0, %v3172_v13, 0.0  ;;  %v3016_v34 = vpop.f32.mrf.mxu0 }
 0x226   : > { %v3140_v36 = vadd.f32 %v7745_v55, %v3097_v28  ;;  %v3174_v60 = vmax.f32 %v3138_v8, 0.0  ;;  %v3096_v6 = vadd.f32 %v3003_v10, %v8046_v22  ;;  %v8177_v27 = vadd.f32 %v7935_v43, %v8827_v51  ;;  %vm8200_vm7 = vmand %vm3728_vm9, %vm3692_vm11  ;;  %v8836_v10 = vld [vmem:[#allocation38_spill] sm:$0xff] }
 0x227   : > { %v4038_v12 = vsel %vm8153_vm3, %v3173_v44, 0.0  ;;  %v4072_v39 = vadd.f32 %v4071_v19, %v4037_v29  ;;  %v8190_v26 = vsub.s32 %v7963_v17, %v3648_v5  ;;  %v3141_v22 = vadd.f32 %v7745_v55, %v3098_v24  ;;  %v5120_v47 = vpop.f32.mrf.mxu0  ;;  %vm8232_vm9 = vmand %vm3861_vm2, %vm3897_vm12 }
 0x228   : > { %v3139_v43 = vadd.f32 %v7745_v55, %v3096_v6  ;;  %vm3865_vm0 = vcmp.ge.s32.totalorder %v7585_v18, 1  ;;  %vm3901_vm3 = vcmp.le.s32.totalorder %v7585_v18, 16  ;;  %v3099_v28 = vadd.f32 %v3016_v34, %v8068_v31  ;;  %v8837_v6 = vld [vmem:[#allocation39_spill] sm:$0xff]  ;;  %vm8274_vm2 = vmand %vm3863_vm13, %vm3899_vm15 }
 0x229   : > { %v8205_v17 = vmul.u32.u64.low 3817748708, %v8162_v32  ;;  %v8206_v13 = vmul.u32.u64.high 3817748708, %v8162_v32, %v8205_v17  ;;  %v4073_v56 = vadd.f32 %v4072_v39, %v4038_v12  ;;  %v3176_v44 = vmax.f32 %v3140_v36, 0.0 }
 0x22a   : > { %v8218_v59 = vmul.u32.u64.low 3817748708, %v8083_v0  ;;  %v8219_v54 = vmul.u32.u64.high 3817748708, %v8083_v0, %v8218_v59  ;;  %v4039_v8 = vsel %vm8185_vm14, %v3174_v60, 0.0  ;;  %v3175_v5 = vmax.f32 %v3139_v43, 0.0  ;;  %v3019_v60 = vpop.f32.mrf.mxu0 }
 0x22b   : > { %v3101_v14 = vadd.f32 %v5119_v52, %v8050_v41  ;;  %vm3866_vm5 = vcmp.ge.s32.totalorder %v7646_v33, 1  ;;  %vm3902_vm8 = vcmp.le.s32.totalorder %v7646_v33, 16  ;;  %v4074_v16 = vadd.f32 %v4073_v56, %v4039_v8  ;;  %v8846_v56 = vld [vmem:[#allocation41_spill] sm:$0xff]  ;;  %v8854_v33 = vld [vmem:[#allocation44_spill] sm:$0xff] }
 0x22c   : > { %v3142_v49 = vadd.f32 %v7745_v55, %v3099_v28  ;;  %v8240_v41 = vsel %vm8200_vm7, %v3800_v20, %v8114_v15  ;;  %v3625_v24 = vshrl.u32 %v8127_v48, 4  ;;  %v2793_v19 = vadd.f32 %v7992_v9, %v8836_v10  ;;  %v5123_v12 = vpop.f32.mrf.mxu0 }
 0x22d   : > { %v3177_v29 = vmax.f32 %v3141_v22, 0.0  ;;  %v4040_v42 = vsel %vm8212_vm6, %v3175_v5, 0.0  ;;  %v3102_v36 = vadd.f32 %v5120_v47, %v8106_v25  ;;  %vm3903_vm12 = vcmp.le.s32.totalorder %v7766_v1, 16  ;;  %v2741_v25 = vpop.f32.mrf.mxu1 }
 0x22e   : > { %v2796_v15 = vadd.f32 %v8031_v50, %v8837_v6  ;;  %vm8838_vm11 = vcmp.ge.s32.totalorder %v7545_v58, 1  ;;  %v4075_v48 = vadd.f32 %v4074_v16, %v4040_v42  ;;  %vm3697_vm7 = vcmp.ne.s32.totalorder %v8190_v26, 0  ;;  %v8841_v58 = vld [vmem:[#allocation40_spill] sm:$0xff] }
 0x22f   : > { %vm8256_vm14 = vmand %vm8838_vm11, %vm3898_vm4  ;;  %vm3733_vm6 = vcmp.lt.s32.totalorder %v8190_v26, 0  ;;  %v4041_v20 = vsel %vm8232_vm9, %v3176_v44, 0.0  ;;  %v3144_v52 = vadd.f32 %v7745_v55, %v3101_v14  ;;  %v3178_v50 = vmax.f32 %v3142_v49, 0.0  ;;  %v8305_v8 = vpop.f32.mrf.mxu1 }
 0x230   : > { %v3100_v51 = vadd.f32 %v3019_v60, %v8147_v11  ;;  %vm3868_vm4 = vcmp.ge.s32.totalorder %v7823_v21, 1  ;;  %vm3904_vm11 = vcmp.le.s32.totalorder %v7823_v21, 16  ;;  %v2794_v39 = vadd.f32 %v8085_v2, %v8841_v58  ;;  %vm8287_vm9 = vmand %vm3864_vm10, %vm3900_vm1  ;;  %v3032_v2 = vpop.f32.mrf.mxu0 }
 0x231   : > { %v4076_v45 = vadd.f32 %v4075_v48, %v4041_v20  ;;  %v3626_v43 = vmul.u32 18, %v3625_v24  ;;  %v3636_v11 = vshrl.u32 %v8206_v13, 4  ;;  %v4042_v34 = vsel %vm8256_vm14, %v3177_v29, 0.0  ;;  %vm8300_vm10 = vmand %vm3733_vm6, %vm3697_vm7  ;;  %v2754_v9 = vpop.f32.mrf.mxu1 }
 0x232   : > { %v3145_v61 = vadd.f32 %v7745_v55, %v3102_v36  ;;  %v3143_v17 = vadd.f32 %v7745_v55, %v3100_v51  ;;  %vm3869_vm13 = vcmp.ge.s32.totalorder %v7750_v30, 1  ;;  %vm3905_vm15 = vcmp.le.s32.totalorder %v7750_v30, 16  ;;  %v5124_v31 = vpop.f32.mrf.mxu0  ;;  %vm8316_vm7 = vmand %vm3865_vm0, %vm3901_vm3  ;;  %v8851_v36 = vld [vmem:[#allocation43_spill] sm:$0xff] }
 0x233   : > { %v3805_v13 = vadd.s32 18, %v8190_v26  ;;  %v2799_v23 = vadd.f32 %v8129_v3, %v8846_v56  ;;  %v4077_v28 = vadd.f32 %v4076_v45, %v4042_v34  ;;  %v3103_v59 = vadd.f32 %v3032_v2, %v2793_v19  ;;  %vm8341_vm3 = vmand %vm3866_vm5, %vm3902_vm8  ;;  %v5094_v34 = vpop.f32.mrf.mxu1 }
 0x234   : > { %v3658_v44 = vshrl.u32 %v8219_v54, 4  ;;  %v3180_v5 = vmax.f32 %v3144_v52, 0.0  ;;  %v4043_v14 = vsel %vm8274_vm2, %v3178_v50, 0.0  ;;  %v3179_v47 = vmax.f32 %v3143_v17, 0.0  ;;  %v3035_v42 = vpop.f32.mrf.mxu0 }
 0x235   : > { %v3105_v3 = vadd.f32 %v5123_v12, %v8177_v27  ;;  %vm3870_vm1 = vcmp.ge.s32.totalorder %v7796_v35, 1  ;;  %vm3906_vm14 = vcmp.le.s32.totalorder %v7796_v35, 16  ;;  %v4078_v16 = vadd.f32 %v4077_v28, %v4043_v14  ;;  %v8862_v28 = vld [vmem:[#allocation45_spill] sm:$0xff] }
 0x236   : > { %v3146_v49 = vadd.f32 %v7745_v55, %v3103_v59  ;;  %v8322_v24 = vsub.s32 %v7988_v53, %v3626_v43  ;;  %v3637_v27 = vmul.u32 18, %v3636_v11  ;;  %v3181_v10 = vmax.f32 %v3145_v61, 0.0  ;;  %v5127_v20 = vpop.f32.mrf.mxu0  ;;  %v5332_v35 = vld [vmem:[%s8556_s5 + $0x20] sm:$0xff]  }
 0x237   : > { %v4044_v19 = vsel %vm8287_vm9, %v3179_v47, 0.0  ;;  %v3106_v29 = vadd.f32 %v5124_v31, %v2796_v15  ;;  %vm3871_vm2 = vcmp.ge.s32.totalorder %v7985_v40, 1  ;;  %vm3907_vm0 = vcmp.le.s32.totalorder %v7985_v40, 16 }
 0x238   : > { %v8331_v18 = vsel %vm8300_vm10, %v3805_v13, %v8190_v26  ;;  %v2797_v53 = vadd.f32 %v8169_v37, %v7529_v7  ;;  %v2800_v60 = vadd.f32 %v8221_v63, %v8851_v36  ;;  %v4079_v15 = vadd.f32 %v4078_v16, %v4044_v19 }
 0x239   : > { %vm3908_vm9 = vcmp.le.s32.totalorder %v8240_v41, 16  ;;  %v3659_v26 = vmul.u32 18, %v3658_v44  ;;  %v4045_v7 = vsel %vm8316_vm7, %v3180_v5, 0.0  ;;  %v3148_v37 = vadd.f32 %v7745_v55, %v3105_v3  ;;  %v2757_v3 = vpop.f32.mrf.mxu1 }
 0x23a   : > { %v3182_v63 = vmax.f32 %v3146_v49, 0.0  ;;  %v3104_v48 = vadd.f32 %v3035_v42, %v2794_v39  ;;  %v2798_v52 = vadd.f32 %v2741_v25, %v8854_v33  ;;  %v4080_v50 = vadd.f32 %v4079_v15, %v4045_v7  ;;  %v8874_v7 = vld [vmem:[#allocation13_spill] sm:$0xff] }
 0x23b   : > { %vm8855_vm5 = vcmp.ge.s32.totalorder %v7766_v1, 1  ;;  %vm3695_vm10 = vcmp.ne.s32.totalorder %v8322_v24, 0  ;;  %v3638_v12 = vsub.s32 %v8162_v32, %v3637_v27  ;;  %v4046_v58 = vsel %vm8341_vm3, %v3181_v10, 0.0  ;;  %v3048_v1 = vpop.f32.mrf.mxu0  ;;  %v8869_v10 = vld [vmem:[#allocation46_spill] sm:$0xff] }
 0x23c   : > { %vm8355_vm8 = vmand %vm8855_vm5, %vm3903_vm12  ;;  %v3149_v39 = vadd.f32 %v7745_v55, %v3106_v29  ;;  %v3147_v25 = vadd.f32 %v7745_v55, %v3104_v48  ;;  %vm3909_vm6 = vcmp.le.s32.totalorder %v7871_v38, 16  ;;  %vm3731_vm12 = vcmp.lt.s32.totalorder %v8322_v24, 0  ;;  %v8870_v29 = vld [vmem:[#allocation47_spill] sm:$0xff] }
 0x23d   : > { %v4081_v45 = vadd.f32 %v4080_v50, %v4046_v58  ;;  %vm8372_vm5 = vmand %vm3868_vm4, %vm3904_vm11  ;;  %v3107_v22 = vadd.f32 %v3048_v1, %v2797_v53  ;;  %v3803_v43 = vadd.s32 18, %v8322_v24  ;;  %v3660_v11 = vsub.s32 %v8083_v0, %v3659_v26  ;;  %v5128_v13 = vpop.f32.mrf.mxu0 }
 0x23e   : > { %v3184_v61 = vmax.f32 %v3148_v37, 0.0  ;;  %v4047_v17 = vsel %vm8355_vm8, %v3182_v63, 0.0  ;;  %v3183_v62 = vmax.f32 %v3147_v25, 0.0  ;;  %v3109_v2 = vadd.f32 %v5127_v20, %v2799_v23  ;;  %vm8386_vm11 = vmand %vm3869_vm13, %vm3905_vm15 }
 0x23f   : > { %vm3910_vm4 = vcmp.le.s32.totalorder %v8081_v46, 16  ;;  %v4082_v0 = vadd.f32 %v4081_v45, %v4047_v17  ;;  %v3150_v56 = vadd.f32 %v7745_v55, %v3107_v22  ;;  %vm3696_vm7 = vcmp.ne.s32.totalorder %v3638_v12, 0  ;;  %v3051_v5 = vpop.f32.mrf.mxu0  ;;  %vm8399_vm13 = vmand %vm3731_vm12, %vm3695_vm10 }
 0x240   : > { %vm3732_vm8 = vcmp.lt.s32.totalorder %v3638_v12, 0  ;;  %v2803_v23 = vadd.f32 %v8305_v8, %v8862_v28  ;;  %v3185_v59 = vmax.f32 %v3149_v39, 0.0  ;;  %v4048_v57 = vsel %vm8372_vm5, %v3183_v62, 0.0  ;;  %vm8407_vm15 = vmand %vm3870_vm1, %vm3906_vm14 }
 0x241   : > { %v3110_v44 = vadd.f32 %v5128_v13, %v2800_v60  ;;  %v4083_v14 = vadd.f32 %v4082_v0, %v4048_v57  ;;  %vm3698_vm5 = vcmp.ne.s32.totalorder %v3660_v11, 0  ;;  %vm3734_vm3 = vcmp.lt.s32.totalorder %v3660_v11, 0  ;;  %v5131_v27 = vpop.f32.mrf.mxu0  ;;  %vm8416_vm10 = vmand %vm3732_vm8, %vm3696_vm7 }
 0x242   : > { %v3804_v47 = vadd.s32 18, %v3638_v12  ;;  %v4049_v31 = vsel %vm8386_vm11, %v3184_v61, 0.0  ;;  %v3152_v54 = vadd.f32 %v7745_v55, %v3109_v2  ;;  %v3186_v16 = vmax.f32 %v3150_v56, 0.0  ;;  %vm3943_vm1 = vmand %vm3871_vm2, %vm3907_vm0 }
 0x243   : > { %v3108_v49 = vadd.f32 %v3051_v5, %v2798_v52  ;;  %v2801_v19 = vadd.f32 %v2754_v9, %v8869_v10  ;;  %v2804_v42 = vadd.f32 %v5094_v34, %v8870_v29  ;;  %v4084_v53 = vadd.f32 %v4083_v14, %v4049_v31  ;;  %v3064_v40 = vpop.f32.mrf.mxu0  ;;  %vm3770_vm2 = vmand %vm3734_vm3, %vm3698_vm5  ;;  %v5333_v10 = vld [vmem:[%s8556_s5 + $0x18] sm:$0xff]   ;;  %v5335_v29 = vld [vmem:[%s8556_s5 + $0x8] sm:$0xff]  }
 0x244   : > { %v3839_v36 = vsel %vm8399_vm13, %v3803_v43, %v8322_v24  ;;  %v4050_v60 = vsel %vm8407_vm15, %v3185_v59, 0.0  ;;  %v3153_v6 = vadd.f32 %v7745_v55, %v3110_v44  ;;  %vm8871_vm14 = vcmp.ge.s32.totalorder %v8240_v41, 1 }
 0x245   : > { %v3151_v15 = vadd.f32 %v7745_v55, %v3108_v49  ;;  %vm8437_vm7 = vmand %vm8871_vm14, %vm3908_vm9  ;;  %v3806_v9 = vadd.s32 18, %v3660_v11  ;;  %v2802_v37 = vadd.f32 %v2757_v3, %v8874_v7  ;;  %v4085_v24 = vadd.f32 %v4084_v53, %v4050_v60  ;;  %v5132_v50 = vpop.f32.mrf.mxu0  ;;  %v5330_v49 = vld [vmem:[%s8556_s5 + $0x30] sm:$0xff]   ;;  %v4120_v53 = vld [vmem:[%s8555_s4] sm:$0x1] }
 0x246   : > { %v3111_v63 = vadd.f32 %v3064_v40, %v2801_v19  ;;  %v3840_v48 = vsel %vm8416_vm10, %v3804_v47, %v3638_v12  ;;  %v3188_v20 = vmax.f32 %v3152_v54, 0.0  ;;  %v4051_v33 = vsel %vm3943_vm1, %v3186_v16, 0.0  ;;  %v5329_v54 = vld [vmem:[%s8556_s5 + $0x38] sm:$0xff]   ;;  %v5334_v19 = vld [vmem:[%s8556_s5 + $0x10] sm:$0xff]  }
 0x247   : > { %v3187_v52 = vmax.f32 %v3151_v15, 0.0  ;;  %v3113_v41 = vadd.f32 %v5131_v27, %v2803_v23  ;;  %vm8875_vm0 = vcmp.ge.s32.totalorder %v7871_v38, 1  ;;  %v4086_v51 = vadd.f32 %v4085_v24, %v4051_v33  ;;  %v3067_v45 = vpop.f32.mrf.mxu0  ;;  %v5331_v27 = vld [vmem:[%s8556_s5 + $0x28] sm:$0xff]  }
 0x248   : > { %vm3945_vm9 = vmand %vm8875_vm0, %vm3909_vm6  ;;  %v3154_v58 = vadd.f32 %v7745_v55, %v3111_v63  ;;  %vm3875_vm12 = vcmp.ge.s32.totalorder %v3839_v36, 1  ;;  %v3114_v39 = vadd.f32 %v5132_v50, %v2804_v42  ;;  %v3189_v25 = vmax.f32 %v3153_v6, 0.0  ;;  %v5336_v42 = vld [vmem:[%s8556_s5] sm:$0xff]  }
 0x249   : > { %v4052_v1 = vsel %vm8437_vm7, %v3187_v52, 0.0  ;;  %vm3911_vm3 = vcmp.le.s32.totalorder %v3839_v36, 16  ;;  %v3842_v12 = vsel %vm3770_vm2, %v3806_v9, %v3660_v11  ;;  %vm8876_vm11 = vcmp.ge.s32.totalorder %v8081_v46, 1 }
 0x24a   : > { %vm3946_vm8 = vmand %vm8876_vm11, %vm3910_vm4  ;;  %v4087_v32 = vadd.f32 %v4086_v51, %v4052_v1  ;;  %v3157_v38 = vadd.f32 %v7745_v55, %v3114_v39  ;;  %vm3876_vm6 = vcmp.ge.s32.totalorder %v3840_v48, 1  ;;  %vm3912_vm13 = vcmp.le.s32.totalorder %v3840_v48, 16 }
 0x24b   : > { %v4053_v22 = vsel %vm3945_vm9, %v3188_v20, 0.0  ;;  %v3156_v43 = vadd.f32 %v7745_v55, %v3113_v41  ;;  %v3190_v34 = vmax.f32 %v3154_v58, 0.0  ;;  %v3112_v61 = vadd.f32 %v3067_v45, %v2802_v37  ;;  %vm3947_vm15 = vmand %vm3875_vm12, %vm3911_vm3 }
 0x24c   : > { %v4088_v17 = vadd.f32 %v4087_v32, %v4053_v22  ;;  %vm3878_vm5 = vcmp.ge.s32.totalorder %v3842_v12, 1  ;;  %vm3914_vm10 = vcmp.le.s32.totalorder %v3842_v12, 16  ;;  %v4054_v11 = vsel %vm3946_vm8, %v3189_v25, 0.0  ;;  %vm3948_vm14 = vmand %vm3876_vm6, %vm3912_vm13 }
 0x24d   : > { %vm3877_vm1 = vcmp.ge.s32.totalorder %v8331_v18, 1  ;;  %vm3913_vm4 = vcmp.le.s32.totalorder %v8331_v18, 16  ;;  %v3155_v46 = vadd.f32 %v7745_v55, %v3112_v61  ;;  %v3193_v2 = vmax.f32 %v3157_v38, 0.0  ;;  %vm3950_vm7 = vmand %vm3878_vm5, %vm3914_vm10 }
 0x24e   : > { %v4089_v62 = vadd.f32 %v4088_v17, %v4054_v11  ;;  %v3192_v13 = vmax.f32 %v3156_v43, 0.0  ;;  %v4055_v21 = vsel %vm3947_vm15, %v3190_v34, 0.0  ;;  %vm3949_vm2 = vmand %vm3877_vm1, %vm3913_vm4  ;;  %vm8877_vm0 = vcmask 1045504  }
 0x24f   : > { %v3191_v0 = vmax.f32 %v3155_v46, 0.0  ;;  %v4058_v23 = vsel %vm3950_vm7, %v3193_v2, 0.0  ;;  %vm8878_vm9 = vmmov 0  }
 0x250   : > { %v4090_v56 = vadd.f32 %v4089_v62, %v4055_v21  ;;  %v4057_v57 = vsel %vm3949_vm2, %v3192_v13, 0.0  ;;  %v4094_v18 = vsel %vm8877_vm0, %v4058_v23, 0.0 }
 0x251   : > { %v4056_v28 = vsel %vm3948_vm14, %v3191_v0, 0.0 }
 0x252   : > { %v4091_v59 = vadd.f32 %v4090_v56, %v4056_v28 }
 0x254   : > { %v4092_v44 = vadd.f32 %v4091_v59, %v4057_v57 }
 0x256   : > { %v4095_v5 = vadd.f32 %v4094_v18, %v4092_v44 }
 0x258   : > { %v4096_v55 = vrot.slane %v4095_v5, 4 }
 0x25a   : > { %v4097_v30 = vadd.f32 %v4096_v55, %v4095_v5 }
 0x25c   : > { %v4098_v8 = vrot.slane %v4097_v30, 2 }
 0x25e   : > { %v4099_v14 = vadd.f32 %v4098_v8, %v4097_v30 }
 0x260   : > { %v4100_v47 = vrot.slane %v4099_v14, 1 }
 0x262   : > { %v4101_v3 = vadd.f32 %v4100_v47, %v4099_v14 }
 0x264   : > { %v4102_v31 = vmul.f32 0.00390625, %v4101_v3 }
 0x266   : > { %v4103_v16 = vpack.c.bf16 %v4102_v31, %v4102_v31 }
 0x268   : > { %5150 = vmatmul.mubr.bf16.vlgmr.msra.gmra.mxu1 %v4103_v16 }
 0x269   : > { %5154 = vmatpush3.bf16.msra.mxu1 %v5329_v54  ;;  %5169 = vmatprep.mubr.msk.bf16.mxu1 %vm8878_vm9, %v8775_v4 }
 0x26a   : > { %5155 = vmatprep.subr.bf16.mxu1 %v8775_v4 }
 0x26d   : > { %5156 = vmatpush3.bf16.msra.mxu1 %v5330_v49 }
 0x26e   : > { %5157 = vmatprep.subr.bf16.mxu1 %v8775_v4 }
 0x271   : > { %5158 = vmatpush3.bf16.msra.mxu1 %v5331_v27 }
 0x272   : > { %5159 = vmatprep.subr.bf16.mxu1 %v8775_v4 }
 0x275   : > { %5160 = vmatpush3.bf16.msra.mxu1 %v5332_v35 }
 0x276   : > { %5161 = vmatprep.subr.bf16.mxu1 %v8775_v4 }
 0x279   : > { %5162 = vmatpush3.bf16.msra.mxu1 %v5333_v10 }
 0x27a   : > { %5163 = vmatprep.subr.bf16.mxu1 %v8775_v4 }
 0x27d   : > { %5164 = vmatpush3.bf16.msra.mxu1 %v5334_v19 }
 0x27e   : > { %5165 = vmatprep.subr.bf16.mxu1 %v8775_v4 }
 0x281   : > { %5166 = vmatpush3.bf16.msra.mxu1 %v5335_v29 }
 0x282   : > { %5167 = vmatprep.subr.bf16.mxu1 %v8775_v4  ;;  %v4227_v4 = vld [vmem:[%s8557_s6] sm:$0x1] }
 0x285   : > { %5168 = vmatpush3.bf16.msra.mxu1 %v5336_v42 }
 0x328   : > { %v4203_v36 = vpop.f32.mrf.mxu1 }
 0x329   : > { %v4204_v60 = vadd.f32 %v4203_v36, %v4120_v53 }
 0x32a   : > { %v5151_v6 = vpop.f32.mrf.mxu1 }
 0x32b   : > { %v4209_v15 = vmax.f32 %v4204_v60, 0.0 }
 0x32c   : > { %v4206_v26 = vpop.f32.mrf.mxu1 }
 0x32d   : > { %v4210_v40 = vpack.c.bf16 %v4209_v15, %v4209_v15 }
 0x32e   : > { %v5152_v9 = vpop.f32.mrf.mxu1 }
 0x32f   : > { %5170 = vmatmul.mubr.bf16.vlgmr.msra.gmra.mxu1 %v4210_v40 }
 0x3ef   : > { %v4310_v7 = vpop.f32.mrf.mxu1 }
 0x3f0   : > { %v4311_v37 = vadd.f32 %v4310_v7, %v4227_v4 }
 0x3f1   : > { %v5171_v24 = vpop.f32.mrf.mxu1 }
 0x3f2   : > { %4316 = vst [vmem:[%s270_s20] sm:$0x1] %v4311_v37 }
 0x3f3   : > { %v4313_v63 = vpop.f32.mrf.mxu1 }
 0x3f4   : > { %5367 = shalt.err (!%p5364_p3)
}
 0x3f5   : > { %s5368_s15 = scalar_lea.hbm %s8510_s29, 16  ;;  %s5372_s18 = scalar_lea.hbm %s8558_s7, 32 }
 0x3f6   : > { %p5369_p4 = scmp.ne.s32.totalorder %s8510_s29, %s5368_s15  ;;  %p5373_p9 = scmp.lt.s32.totalorder %s8510_s29, %s8558_s7 }
 0x3f7   : > { %p5374_p10 = scmp.lt.s32.totalorder %s5372_s18, %s5368_s15 }
 0x3f8   : > { %p5370_p7 = pnand %p5369_p4, %p5497_p5 }
 0x3f9   : > { %p5375_p11 = por %p5374_p10, %p5373_p9 }
 0x3fa   : > { %p5371_p8 = pneg %p5370_p7 }
 0x3fc   : > { %p5376_p12 = pnand %p5375_p11, %p5371_p8 }
 0x3fe   : > { %5379 = shalt.err (!%p5376_p12)
}
 0x3ff   : > { %5258 = dma.vmem_to_hbm [thread:$0]  (%p5497_p5), %s8512_s21, 16, %s8510_s29, %s4318_s8   ;;  %v5172_v48 = vpop.f32.mrf.mxu1 }
 0x400 PF: > { %p5264_p13 = scmp.ge.s32.totalorder %s5414_s27, 2  ;;  %s4342_s22 = sand.u32 1, %s5402_s24  }
 0x401   : > { %s4343_s23 = scalar_lea.sflag [#allocation3], %s4342_s22 }
 0x402   : > { %p5261_p0 = pnand %p5264_p13, %p5501_p6 }
 0x404   : > { %p5262_p1 = pneg %p5261_p0 }
 0x406   : > { %5397 = dma.done.wait (%p5262_p1), %s4343_s23, 16  }
 0x407   : > { %5399 = vsyncadd (%p5262_p1), %s4343_s23, 4294967280  ;;  %p17_p2 = scmp.ge.s32.totalorder %s5484_s30, 4   ;;  %s8879_s24 = smov %s5406_s25 }
 0x408   : > { %s8880_s25 = smov %s5410_s26  ;;  %s8881_s26 = smov %s5495_s10 }
 0x409   : > { %s8882_s27 = smov %s5484_s30  ;;  %19 = sbr.rel (!%p17_p2) target bundleno = 3 (0x3), region = 91 }
 0x40e   :  { %4347 = vsyncpa [#allocation3], 1 }
 0x40f   :  { %4349 = vsyncpa [#allocation3 + $0x1], 1 }

</bundles_post_ra>
